<compile_context>
chip_gen: v7x
topology: tpu7x:2x2x1
jax: 0.10.0
libtpu: 0.0.40
codegen_flags: <defaults>
</compile_context>

<pallas_src>
import jax
import jax.numpy as jnp
import numpy as np
from jax.experimental import pallas as pl
from jax.experimental.pallas import tpu as pltpu


# ---------------------------------------------------------------------------
# Kernel: all output rows of one image, one Cout tile, per grid step
# ---------------------------------------------------------------------------

def _make_conv_kernel(k: int, wp: int, m: int):
    """x_ref: (1, Lflat, Cin) bf16 flattened padded image (row-major H x Wp)
    w_ref: (k, k, Cin, TN) bf16, o_ref: (1, M, TN), acc_ref: (M, TN) f32."""

    def kernel(x_ref, w_ref, o_ref, acc_ref):
        first = True
        for dh in range(k):
            for dw in range(k):
                start = dh * wp + dw                       # static offset slice of the ref
                slab = x_ref[0, start:start + m, :]        # (M, Cin)
                contrib = jnp.dot(slab, w_ref[dh, dw],     # (M, Cin) @ (Cin, TN)
                                  preferred_element_type=jnp.float32)
                if first:
                    acc_ref[...] = contrib
                    first = False
                else:
                    acc_ref[...] += contrib
        o_ref[...] = acc_ref[...].astype(o_ref.dtype)[None]

    return kernel


def conv2d_pallas(x_nchw, w_kkio, kernel_size: int, *, compute_dtype=jnp.bfloat16):
    """kxk conv, stride 1, padding (k-1)//2, no bias. x: NCHW, w: (k,k,Cin,Cout)."""
    B, Cin, H, W = x_nchw.shape
    k = kernel_size
    p = (k - 1) // 2
    Cout = w_kkio.shape[-1]
    Hp, Wp = H + 2 * p, W + 2 * p
    H_out, W_out = Hp - k + 1, Wp - k + 1
    extra = 1 if k > 1 else 0          # guard row: padded-width columns of the last
    M = H_out * Wp                     # output row read (and discard) k-1 extra elems
    Lflat = (Hp + extra) * Wp

    # Lane-dense Cout tile when possible (unmasked vst on the output path).
    if Cout % 256 == 0:
        TN = 256
    elif Cout % 128 == 0:
        TN = 128
    else:
        TN = Cout
    n_cout = Cout // TN

    # Channels-last once, pad spatially once, bf16 operands, free flat reshape.
    x_nhwc = jnp.transpose(x_nchw, (0, 2, 3, 1))
    xp = jnp.pad(x_nhwc, ((0, 0), (p, p + extra), (p, p), (0, 0)))
    xp = xp.astype(compute_dtype).reshape(B, Lflat, Cin)
    w = w_kkio.astype(compute_dtype)

    kernel = _make_conv_kernel(k, Wp, M)

    # grid = (cout tiles, batch): b is the fast axis, so the weight tile stays
    # resident across all images of a cout tile; the image is fetched once per step.
    x_spec = pl.BlockSpec((1, Lflat, Cin), lambda j, b: (b, 0, 0))
    w_spec = pl.BlockSpec((k, k, Cin, TN), lambda j, b: (0, 0, 0, j))
    o_spec = pl.BlockSpec((1, M, TN), lambda j, b: (b, 0, j))

    in_item = jnp.dtype(compute_dtype).itemsize
    out_item = jnp.dtype(x_nchw.dtype).itemsize
    flops = 2 * B * M * k * k * Cin * Cout
    bytes_accessed = int(B * Lflat * Cin * in_item + w.size * in_item
                         + B * M * Cout * out_item)

    # Explicit VMEM budget: double-buffered blocks + f32 accumulator.
    vmem_est = 2 * (Lflat * Cin * in_item + k * k * Cin * TN * in_item
                    + M * TN * out_item) + M * TN * 4
    vmem_limit = int(min(max(vmem_est + (8 << 20), 32 << 20), 60 << 20))

    out_flat = pl.pallas_call(
        kernel,
        out_shape=jax.ShapeDtypeStruct((B, M, Cout), x_nchw.dtype),
        grid=(n_cout, B),
        in_specs=[x_spec, w_spec],
        out_specs=o_spec,
        scratch_shapes=[pltpu.VMEM((M, TN), jnp.float32)],
        compiler_params=pltpu.CompilerParams(
            dimension_semantics=("parallel", "parallel"),
            vmem_limit_bytes=vmem_limit),
        cost_estimate=pl.CostEstimate(
            flops=flops, transcendentals=0, bytes_accessed=bytes_accessed),
    )(xp, w)

    # Drop the k-1 padded-width columns, back to NCHW (module interface is NCHW).
    out = out_flat.reshape(B, H_out, Wp, Cout)[:, :, :W_out, :]
    return jnp.transpose(out, (0, 3, 1, 2))


# ---------------------------------------------------------------------------
# ConvLayer (normal / split modes), matching the PyTorch module's forward
# ---------------------------------------------------------------------------

def _init_conv_weight(key, cin, cout, k, dtype=jnp.float32):
    scale = 1.0 / np.sqrt(cin * k * k)
    return scale * jax.random.normal(key, (k, k, cin, cout), dtype)


class ConvLayerPallas:
    """Pallas re-implementation of SwinFace ConvLayer."""

    def __init__(self, in_chans=768, out_chans=512, conv_mode="normal",
                 kernel_size=3, *, key=None):
        if key is None:
            key = jax.random.PRNGKey(0)
        self.conv_mode = conv_mode
        self.kernel_size = kernel_size
        if conv_mode == "normal":
            self.w = _init_conv_weight(key, in_chans, out_chans, kernel_size)
        elif conv_mode == "split":
            keys = jax.random.split(key, len(in_chans))
            self.ws = [
                _init_conv_weight(keys[j], in_chans[j], out_chans[j], kernel_size)
                for j in range(len(in_chans))
            ]
            self.cut = [0] * (len(in_chans) + 1)
            self.ocut = [0] * (len(out_chans) + 1)
            for i in range(1, len(in_chans) + 1):
                self.cut[i] = self.cut[i - 1] + in_chans[i - 1]
                self.ocut[i] = self.ocut[i - 1] + out_chans[i - 1]
            # Fused single-call split mode: block-diagonal weight is exactly
            # equivalent to per-group conv + torch.cat(dim=1), and keeps the
            # output lane-dense with one pallas_call.
            # TODO(synk): for many/large groups, a PrefetchScalarGridSpec
            # per-group grid axis would avoid the off-diagonal zero FLOPs.
            wbd = jnp.zeros((kernel_size, kernel_size, self.cut[-1], self.ocut[-1]),
                            jnp.float32)
            for j in range(len(in_chans)):
                wbd = wbd.at[:, :, self.cut[j]:self.cut[j + 1],
                             self.ocut[j]:self.ocut[j + 1]].set(self.ws[j])
            self.w_blockdiag = wbd
        else:
            raise ValueError(f"unknown conv_mode {conv_mode}")

    def __call__(self, x):
        if self.conv_mode == "normal":
            return conv2d_pallas(x, self.w, self.kernel_size)
        return conv2d_pallas(x, self.w_blockdiag, self.kernel_size)


# ---------------------------------------------------------------------------
# Pure-JAX reference (correctness check only)
# ---------------------------------------------------------------------------

def _reference_conv(x_nchw, w_kkio, k):
    p = (k - 1) // 2
    w_oihw = jnp.transpose(w_kkio, (3, 2, 0, 1))
    return jax.lax.conv_general_dilated(
        x_nchw, w_oihw, window_strides=(1, 1), padding=[(p, p), (p, p)],
        dimension_numbers=("NCHW", "OIHW", "NCHW"))


if __name__ == "__main__":
    key = jax.random.PRNGKey(0)
    kx, kw1, kw2 = jax.random.split(key, 3)

    B, C, H, W = 2, 8, 16, 16
    x = jax.random.normal(kx, (B, C, H, W), jnp.float32)

    # --- 'normal' mode -----------------------------------------------------
    layer = ConvLayerPallas(in_chans=C, out_chans=32, conv_mode="normal",
                            kernel_size=3, key=kw1)
    y = layer(x)
    jax.block_until_ready(y)
    assert y.shape == (B, 32, H, W)
    y_ref = _reference_conv(x, layer.w, 3)
    np.testing.assert_allclose(np.asarray(y), np.asarray(y_ref),
                               atol=5e-2, rtol=5e-2)

    # --- 'split' mode ------------------------------------------------------
    layer_s = ConvLayerPallas(in_chans=[4, 4], out_chans=[16, 16],
                              conv_mode="split", kernel_size=3, key=kw2)
    ys = layer_s(x)
    jax.block_until_ready(ys)
    assert ys.shape == (B, 32, H, W)
    ys_ref = jnp.concatenate(
        [_reference_conv(x[:, 0:4], layer_s.ws[0], 3),
         _reference_conv(x[:, 4:8], layer_s.ws[1], 3)], axis=1)
    np.testing.assert_allclose(np.asarray(ys), np.asarray(ys_ref),
                               atol=5e-2, rtol=5e-2)

    print("KERNEL_OK")
</pallas_src>

<mosaic_0001>
module attributes {stable_mosaic.version = 11 : i64} {
  func.func @kernel(%arg0: i32, %arg1: i32, %arg2: memref<1x342x8xbf16, #tpu.memory_space<vmem>>, %arg3: memref<3x3x8x32xbf16, #tpu.memory_space<vmem>>, %arg4: memref<1x288x32xf32, #tpu.memory_space<vmem>>, %arg5: memref<288x32xf32, #tpu.memory_space<vmem>>) attributes {dimension_semantics = [#tpu.dimension_semantics<parallel>, #tpu.dimension_semantics<parallel>], iteration_bounds = array<i64: 1, 2>, scalar_prefetch = 0 : i64, scratch_operands = 1 : i64, tpu.core_type = #tpu.core_type<tc>, window_params = [{transform_indices = @transform_0, window_bounds = array<i64: 1, 342, 8>}, {transform_indices = @transform_1, window_bounds = array<i64: 3, 3, 8, 32>}, {transform_indices = @transform_2, window_bounds = array<i64: 1, 288, 32>}]} {
    %c0 = arith.constant 0 : index
    %c0_0 = arith.constant 0 : index
    %c0_1 = arith.constant 0 : index
    %0 = vector.load %arg2[%c0, %c0_0, %c0_1] : memref<1x342x8xbf16, #tpu.memory_space<vmem>>, vector<1x288x8xbf16>
    %1 = vector.shape_cast %0 : vector<1x288x8xbf16> to vector<288x8xbf16>
    %c0_2 = arith.constant 0 : index
    %c0_3 = arith.constant 0 : index
    %c0_4 = arith.constant 0 : index
    %c0_5 = arith.constant 0 : index
    %2 = vector.load %arg3[%c0_2, %c0_3, %c0_4, %c0_5] : memref<3x3x8x32xbf16, #tpu.memory_space<vmem>>, vector<1x1x8x32xbf16>
    %3 = vector.shape_cast %2 : vector<1x1x8x32xbf16> to vector<8x32xbf16>
    %cst = arith.constant dense<0.000000e+00> : vector<288x32xf32>
    %4 = tpu.matmul %1, %3, %cst {dimension_numbers = #tpu.dot_dimension_numbers<[1], [0], [0], [1], [0, 0, 1, 1], [], []>} : vector<288x8xbf16>, vector<8x32xbf16>, vector<288x32xf32> -> vector<288x32xf32>
    %c0_6 = arith.constant 0 : index
    %c0_7 = arith.constant 0 : index
    %5 = vector.load %arg5[%c0_6, %c0_7] : memref<288x32xf32, #tpu.memory_space<vmem>>, vector<288x32xf32>
    tpu.vector_store %arg5[%c0_6, %c0_7], %4 {strides = array<i32>} : memref<288x32xf32, #tpu.memory_space<vmem>>, vector<288x32xf32>,
    %c0_8 = arith.constant 0 : index
    %c1 = arith.constant 1 : index
    %c0_9 = arith.constant 0 : index
    %6 = vector.load %arg2[%c0_8, %c1, %c0_9] : memref<1x342x8xbf16, #tpu.memory_space<vmem>>, vector<1x288x8xbf16>
    %7 = vector.shape_cast %6 : vector<1x288x8xbf16> to vector<288x8xbf16>
    %c0_10 = arith.constant 0 : index
    %c1_11 = arith.constant 1 : index
    %c0_12 = arith.constant 0 : index
    %c0_13 = arith.constant 0 : index
    %8 = vector.load %arg3[%c0_10, %c1_11, %c0_12, %c0_13] : memref<3x3x8x32xbf16, #tpu.memory_space<vmem>>, vector<1x1x8x32xbf16>
    %9 = vector.shape_cast %8 : vector<1x1x8x32xbf16> to vector<8x32xbf16>
    %cst_14 = arith.constant dense<0.000000e+00> : vector<288x32xf32>
    %10 = tpu.matmul %7, %9, %cst_14 {dimension_numbers = #tpu.dot_dimension_numbers<[1], [0], [0], [1], [0, 0, 1, 1], [], []>} : vector<288x8xbf16>, vector<8x32xbf16>, vector<288x32xf32> -> vector<288x32xf32>
    %c0_15 = arith.constant 0 : index
    %c0_16 = arith.constant 0 : index
    %11 = vector.load %arg5[%c0_15, %c0_16] : memref<288x32xf32, #tpu.memory_space<vmem>>, vector<288x32xf32>
    %12 = arith.addf %11, %10 : vector<288x32xf32>
    %c0_17 = arith.constant 0 : index
    %c0_18 = arith.constant 0 : index
    %13 = vector.load %arg5[%c0_17, %c0_18] : memref<288x32xf32, #tpu.memory_space<vmem>>, vector<288x32xf32>
    tpu.vector_store %arg5[%c0_17, %c0_18], %12 {strides = array<i32>} : memref<288x32xf32, #tpu.memory_space<vmem>>, vector<288x32xf32>,
    %c0_19 = arith.constant 0 : index
    %c2 = arith.constant 2 : index
    %c0_20 = arith.constant 0 : index
    %14 = vector.load %arg2[%c0_19, %c2, %c0_20] : memref<1x342x8xbf16, #tpu.memory_space<vmem>>, vector<1x288x8xbf16>
    %15 = vector.shape_cast %14 : vector<1x288x8xbf16> to vector<288x8xbf16>
    %c0_21 = arith.constant 0 : index
    %c2_22 = arith.constant 2 : index
    %c0_23 = arith.constant 0 : index
    %c0_24 = arith.constant 0 : index
    %16 = vector.load %arg3[%c0_21, %c2_22, %c0_23, %c0_24] : memref<3x3x8x32xbf16, #tpu.memory_space<vmem>>, vector<1x1x8x32xbf16>
    %17 = vector.shape_cast %16 : vector<1x1x8x32xbf16> to vector<8x32xbf16>
    %cst_25 = arith.constant dense<0.000000e+00> : vector<288x32xf32>
    %18 = tpu.matmul %15, %17, %cst_25 {dimension_numbers = #tpu.dot_dimension_numbers<[1], [0], [0], [1], [0, 0, 1, 1], [], []>} : vector<288x8xbf16>, vector<8x32xbf16>, vector<288x32xf32> -> vector<288x32xf32>
    %c0_26 = arith.constant 0 : index
    %c0_27 = arith.constant 0 : index
    %19 = vector.load %arg5[%c0_26, %c0_27] : memref<288x32xf32, #tpu.memory_space<vmem>>, vector<288x32xf32>
    %20 = arith.addf %19, %18 : vector<288x32xf32>
    %c0_28 = arith.constant 0 : index
    %c0_29 = arith.constant 0 : index
    %21 = vector.load %arg5[%c0_28, %c0_29] : memref<288x32xf32, #tpu.memory_space<vmem>>, vector<288x32xf32>
    tpu.vector_store %arg5[%c0_28, %c0_29], %20 {strides = array<i32>} : memref<288x32xf32, #tpu.memory_space<vmem>>, vector<288x32xf32>,
    %c0_30 = arith.constant 0 : index
    %c18 = arith.constant 18 : index
    %c0_31 = arith.constant 0 : index
    %22 = vector.load %arg2[%c0_30, %c18, %c0_31] : memref<1x342x8xbf16, #tpu.memory_space<vmem>>, vector<1x288x8xbf16>
    %23 = vector.shape_cast %22 : vector<1x288x8xbf16> to vector<288x8xbf16>
    %c1_32 = arith.constant 1 : index
    %c0_33 = arith.constant 0 : index
    %c0_34 = arith.constant 0 : index
    %c0_35 = arith.constant 0 : index
    %24 = vector.load %arg3[%c1_32, %c0_33, %c0_34, %c0_35] : memref<3x3x8x32xbf16, #tpu.memory_space<vmem>>, vector<1x1x8x32xbf16>
    %25 = vector.shape_cast %24 : vector<1x1x8x32xbf16> to vector<8x32xbf16>
    %cst_36 = arith.constant dense<0.000000e+00> : vector<288x32xf32>
    %26 = tpu.matmul %23, %25, %cst_36 {dimension_numbers = #tpu.dot_dimension_numbers<[1], [0], [0], [1], [0, 0, 1, 1], [], []>} : vector<288x8xbf16>, vector<8x32xbf16>, vector<288x32xf32> -> vector<288x32xf32>
    %c0_37 = arith.constant 0 : index
    %c0_38 = arith.constant 0 : index
    %27 = vector.load %arg5[%c0_37, %c0_38] : memref<288x32xf32, #tpu.memory_space<vmem>>, vector<288x32xf32>
    %28 = arith.addf %27, %26 : vector<288x32xf32>
    %c0_39 = arith.constant 0 : index
    %c0_40 = arith.constant 0 : index
    %29 = vector.load %arg5[%c0_39, %c0_40] : memref<288x32xf32, #tpu.memory_space<vmem>>, vector<288x32xf32>
    tpu.vector_store %arg5[%c0_39, %c0_40], %28 {strides = array<i32>} : memref<288x32xf32, #tpu.memory_space<vmem>>, vector<288x32xf32>,
    %c0_41 = arith.constant 0 : index
    %c19 = arith.constant 19 : index
    %c0_42 = arith.constant 0 : index
    %30 = vector.load %arg2[%c0_41, %c19, %c0_42] : memref<1x342x8xbf16, #tpu.memory_space<vmem>>, vector<1x288x8xbf16>
    %31 = vector.shape_cast %30 : vector<1x288x8xbf16> to vector<288x8xbf16>
    %c1_43 = arith.constant 1 : index
    %c1_44 = arith.constant 1 : index
    %c0_45 = arith.constant 0 : index
    %c0_46 = arith.constant 0 : index
    %32 = vector.load %arg3[%c1_43, %c1_44, %c0_45, %c0_46] : memref<3x3x8x32xbf16, #tpu.memory_space<vmem>>, vector<1x1x8x32xbf16>
    %33 = vector.shape_cast %32 : vector<1x1x8x32xbf16> to vector<8x32xbf16>
    %cst_47 = arith.constant dense<0.000000e+00> : vector<288x32xf32>
    %34 = tpu.matmul %31, %33, %cst_47 {dimension_numbers = #tpu.dot_dimension_numbers<[1], [0], [0], [1], [0, 0, 1, 1], [], []>} : vector<288x8xbf16>, vector<8x32xbf16>, vector<288x32xf32> -> vector<288x32xf32>
    %c0_48 = arith.constant 0 : index
    %c0_49 = arith.constant 0 : index
    %35 = vector.load %arg5[%c0_48, %c0_49] : memref<288x32xf32, #tpu.memory_space<vmem>>, vector<288x32xf32>
    %36 = arith.addf %35, %34 : vector<288x32xf32>
    %c0_50 = arith.constant 0 : index
    %c0_51 = arith.constant 0 : index
    %37 = vector.load %arg5[%c0_50, %c0_51] : memref<288x32xf32, #tpu.memory_space<vmem>>, vector<288x32xf32>
    tpu.vector_store %arg5[%c0_50, %c0_51], %36 {strides = array<i32>} : memref<288x32xf32, #tpu.memory_space<vmem>>, vector<288x32xf32>,
    %c0_52 = arith.constant 0 : index
    %c20 = arith.constant 20 : index
    %c0_53 = arith.constant 0 : index
    %38 = vector.load %arg2[%c0_52, %c20, %c0_53] : memref<1x342x8xbf16, #tpu.memory_space<vmem>>, vector<1x288x8xbf16>
    %39 = vector.shape_cast %38 : vector<1x288x8xbf16> to vector<288x8xbf16>
    %c1_54 = arith.constant 1 : index
    %c2_55 = arith.constant 2 : index
    %c0_56 = arith.constant 0 : index
    %c0_57 = arith.constant 0 : index
    %40 = vector.load %arg3[%c1_54, %c2_55, %c0_56, %c0_57] : memref<3x3x8x32xbf16, #tpu.memory_space<vmem>>, vector<1x1x8x32xbf16>
    %41 = vector.shape_cast %40 : vector<1x1x8x32xbf16> to vector<8x32xbf16>
    %cst_58 = arith.constant dense<0.000000e+00> : vector<288x32xf32>
    %42 = tpu.matmul %39, %41, %cst_58 {dimension_numbers = #tpu.dot_dimension_numbers<[1], [0], [0], [1], [0, 0, 1, 1], [], []>} : vector<288x8xbf16>, vector<8x32xbf16>, vector<288x32xf32> -> vector<288x32xf32>
    %c0_59 = arith.constant 0 : index
    %c0_60 = arith.constant 0 : index
    %43 = vector.load %arg5[%c0_59, %c0_60] : memref<288x32xf32, #tpu.memory_space<vmem>>, vector<288x32xf32>
    %44 = arith.addf %43, %42 : vector<288x32xf32>
    %c0_61 = arith.constant 0 : index
    %c0_62 = arith.constant 0 : index
    %45 = vector.load %arg5[%c0_61, %c0_62] : memref<288x32xf32, #tpu.memory_space<vmem>>, vector<288x32xf32>
    tpu.vector_store %arg5[%c0_61, %c0_62], %44 {strides = array<i32>} : memref<288x32xf32, #tpu.memory_space<vmem>>, vector<288x32xf32>,
    %c0_63 = arith.constant 0 : index
    %c36 = arith.constant 36 : index
    %c0_64 = arith.constant 0 : index
    %46 = vector.load %arg2[%c0_63, %c36, %c0_64] : memref<1x342x8xbf16, #tpu.memory_space<vmem>>, vector<1x288x8xbf16>
    %47 = vector.shape_cast %46 : vector<1x288x8xbf16> to vector<288x8xbf16>
    %c2_65 = arith.constant 2 : index
    %c0_66 = arith.constant 0 : index
    %c0_67 = arith.constant 0 : index
    %c0_68 = arith.constant 0 : index
    %48 = vector.load %arg3[%c2_65, %c0_66, %c0_67, %c0_68] : memref<3x3x8x32xbf16, #tpu.memory_space<vmem>>, vector<1x1x8x32xbf16>
    %49 = vector.shape_cast %48 : vector<1x1x8x32xbf16> to vector<8x32xbf16>
    %cst_69 = arith.constant dense<0.000000e+00> : vector<288x32xf32>
    %50 = tpu.matmul %47, %49, %cst_69 {dimension_numbers = #tpu.dot_dimension_numbers<[1], [0], [0], [1], [0, 0, 1, 1], [], []>} : vector<288x8xbf16>, vector<8x32xbf16>, vector<288x32xf32> -> vector<288x32xf32>
    %c0_70 = arith.constant 0 : index
    %c0_71 = arith.constant 0 : index
    %51 = vector.load %arg5[%c0_70, %c0_71] : memref<288x32xf32, #tpu.memory_space<vmem>>, vector<288x32xf32>
    %52 = arith.addf %51, %50 : vector<288x32xf32>
    %c0_72 = arith.constant 0 : index
    %c0_73 = arith.constant 0 : index
    %53 = vector.load %arg5[%c0_72, %c0_73] : memref<288x32xf32, #tpu.memory_space<vmem>>, vector<288x32xf32>
    tpu.vector_store %arg5[%c0_72, %c0_73], %52 {strides = array<i32>} : memref<288x32xf32, #tpu.memory_space<vmem>>, vector<288x32xf32>,
    %c0_74 = arith.constant 0 : index
    %c37 = arith.constant 37 : index
    %c0_75 = arith.constant 0 : index
    %54 = vector.load %arg2[%c0_74, %c37, %c0_75] : memref<1x342x8xbf16, #tpu.memory_space<vmem>>, vector<1x288x8xbf16>
    %55 = vector.shape_cast %54 : vector<1x288x8xbf16> to vector<288x8xbf16>
    %c2_76 = arith.constant 2 : index
    %c1_77 = arith.constant 1 : index
    %c0_78 = arith.constant 0 : index
    %c0_79 = arith.constant 0 : index
    %56 = vector.load %arg3[%c2_76, %c1_77, %c0_78, %c0_79] : memref<3x3x8x32xbf16, #tpu.memory_space<vmem>>, vector<1x1x8x32xbf16>
    %57 = vector.shape_cast %56 : vector<1x1x8x32xbf16> to vector<8x32xbf16>
    %cst_80 = arith.constant dense<0.000000e+00> : vector<288x32xf32>
    %58 = tpu.matmul %55, %57, %cst_80 {dimension_numbers = #tpu.dot_dimension_numbers<[1], [0], [0], [1], [0, 0, 1, 1], [], []>} : vector<288x8xbf16>, vector<8x32xbf16>, vector<288x32xf32> -> vector<288x32xf32>
    %c0_81 = arith.constant 0 : index
    %c0_82 = arith.constant 0 : index
    %59 = vector.load %arg5[%c0_81, %c0_82] : memref<288x32xf32, #tpu.memory_space<vmem>>, vector<288x32xf32>
    %60 = arith.addf %59, %58 : vector<288x32xf32>
    %c0_83 = arith.constant 0 : index
    %c0_84 = arith.constant 0 : index
    %61 = vector.load %arg5[%c0_83, %c0_84] : memref<288x32xf32, #tpu.memory_space<vmem>>, vector<288x32xf32>
    tpu.vector_store %arg5[%c0_83, %c0_84], %60 {strides = array<i32>} : memref<288x32xf32, #tpu.memory_space<vmem>>, vector<288x32xf32>,
    %c0_85 = arith.constant 0 : index
    %c38 = arith.constant 38 : index
    %c0_86 = arith.constant 0 : index
    %62 = vector.load %arg2[%c0_85, %c38, %c0_86] : memref<1x342x8xbf16, #tpu.memory_space<vmem>>, vector<1x288x8xbf16>
    %63 = vector.shape_cast %62 : vector<1x288x8xbf16> to vector<288x8xbf16>
    %c2_87 = arith.constant 2 : index
    %c2_88 = arith.constant 2 : index
    %c0_89 = arith.constant 0 : index
    %c0_90 = arith.constant 0 : index
    %64 = vector.load %arg3[%c2_87, %c2_88, %c0_89, %c0_90] : memref<3x3x8x32xbf16, #tpu.memory_space<vmem>>, vector<1x1x8x32xbf16>
    %65 = vector.shape_cast %64 : vector<1x1x8x32xbf16> to vector<8x32xbf16>
    %cst_91 = arith.constant dense<0.000000e+00> : vector<288x32xf32>
    %66 = tpu.matmul %63, %65, %cst_91 {dimension_numbers = #tpu.dot_dimension_numbers<[1], [0], [0], [1], [0, 0, 1, 1], [], []>} : vector<288x8xbf16>, vector<8x32xbf16>, vector<288x32xf32> -> vector<288x32xf32>
    %c0_92 = arith.constant 0 : index
    %c0_93 = arith.constant 0 : index
    %67 = vector.load %arg5[%c0_92, %c0_93] : memref<288x32xf32, #tpu.memory_space<vmem>>, vector<288x32xf32>
    %68 = arith.addf %67, %66 : vector<288x32xf32>
    %c0_94 = arith.constant 0 : index
    %c0_95 = arith.constant 0 : index
    %69 = vector.load %arg5[%c0_94, %c0_95] : memref<288x32xf32, #tpu.memory_space<vmem>>, vector<288x32xf32>
    tpu.vector_store %arg5[%c0_94, %c0_95], %68 {strides = array<i32>} : memref<288x32xf32, #tpu.memory_space<vmem>>, vector<288x32xf32>,
    %c0_96 = arith.constant 0 : index
    %c0_97 = arith.constant 0 : index
    %70 = vector.load %arg5[%c0_96, %c0_97] : memref<288x32xf32, #tpu.memory_space<vmem>>, vector<288x32xf32>
    %71 = vector.shape_cast %70 : vector<288x32xf32> to vector<1x288x32xf32>
    %c0_98 = arith.constant 0 : index
    %c0_99 = arith.constant 0 : index
    %c0_100 = arith.constant 0 : index
    %72 = vector.load %arg4[%c0_98, %c0_99, %c0_100] : memref<1x288x32xf32, #tpu.memory_space<vmem>>, vector<1x288x32xf32>
    tpu.vector_store %arg4[%c0_98, %c0_99, %c0_100], %71 {strides = array<i32>} : memref<1x288x32xf32, #tpu.memory_space<vmem>>, vector<1x288x32xf32>,
    return
  }
  func.func @transform_0(%arg0: i32, %arg1: i32) -> (i32, i32, i32) {
    %c0_i32 = arith.constant 0 : i32
    %c0_i32_0 = arith.constant 0 : i32
    %c0_i32_1 = arith.constant 0 : i32
    return %arg1, %c0_i32, %c0_i32_0 : i32, i32, i32
  }
  func.func @transform_1(%arg0: i32, %arg1: i32) -> (i32, i32, i32, i32) {
    %c0_i32 = arith.constant 0 : i32
    %c0_i32_0 = arith.constant 0 : i32
    %c0_i32_1 = arith.constant 0 : i32
    %c0_i32_2 = arith.constant 0 : i32
    return %c0_i32, %c0_i32_0, %c0_i32_1, %arg0 : i32, i32, i32, i32
  }
  func.func @transform_2(%arg0: i32, %arg1: i32) -> (i32, i32, i32) {
    %c0_i32 = arith.constant 0 : i32
    %c0_i32_0 = arith.constant 0 : i32
    return %arg1, %c0_i32, %arg0 : i32, i32, i32
  }
}

</mosaic_0001>

<bundles_post_ra>
// kernel: tpu_custom_call.1
= control target key start
LH: loop header
LB: loop body
LE: loop exit
PB: predicated region body
PF: predicated region fallthrough
CT: control target
= control target key end

     0   :  { %s6328_s9 = smov 0   ;;  %s6330_s10 = smov 0   ;;  %s7439_s0 = inlined_call_operand.vmem [shape: bf16[2,342,8], index: 0, kind: input, shape index: {}]   ;;  %s7440_s1 = inlined_call_operand.vmem [shape: bf16[3,3,8,32], index: 1, kind: input, shape index: {}]   ;;  %s7441_s2 = inlined_call_operand.vmem [shape: f32[2,288,32], index: 2, kind: output, shape index: {}]  }
   0x1   :  { %s6332_s11 = smov 0  }
   0x2 LB: > { %s21_s12 = sadd.s32 1, %s6307_s10  ;;  %p5223_p0 = scmp.ge.s32.totalorder %s6311_s11, 1  ;;  %s6311_s11 = sphi %s6332_s11, %s12_s11   ;;  %s6307_s10 = sphi %s6330_s10, %s7443_s10   ;;  %s6303_s9 = sphi %s6328_s9, %s7442_s9  }
   0x3   : > { %p22_p1 = scmp.ge.s32.totalorder %s21_s12, 2  ;;  %p135_p2 = scmp.lt.s32.totalorder %s6311_s11, 3 }
   0x5   : > { %s7445_s12 = smov (%p22_p1, %s21_s12), 0  ;;  %p136_p3 = pnand %p5223_p0, %p135_p2 }
   0x6   : > { %v218_v0 = vld [vmem:[%s7440_s1] sm:$0xf] (!%p136_p3)  ;;  %vm364_vm0 = vcmask (!%p136_p3), 1043456   ;;  %p164_p4 = scmp.lt.s32.totalorder (!%p136_p3), %s6303_s9, 1  ;;  %v5262_v2 = vld [vmem:[%s7440_s1 + $0x4] sm:$0xf] (!%p136_p3) }
   0x7   : > { %139 = sbr.rel (%p136_p3) target bundleno = 569 (0x239), region = 28  ;;  %6084 = vmatprep.subr.msk.bf16.mxu1 (!%p136_p3), %vm364_vm0, %v218_v0  ;;  %6083 = vmatprep.subr.msk.bf16.mxu0 (!%p136_p3), %vm364_vm0, %v218_v0  ;;  %v366_v1 = vsel (!%p136_p3), %vm364_vm0, %v218_v0, 0  ;;  %v5300_v3 = vld [vmem:[%s7440_s1 + $0x8] sm:$0xf] (!%p136_p3)  ;;  %vm309_vm1 = vcmask (!%p136_p3), 64512   ;;  %v918_v10 = vsel (!%p136_p3), %vm364_vm0, %v5262_v2, 0 }
   0x8   : > { %6082 = vmatpush3.bf16.msra.mxu1 (!%p136_p3), %v366_v1  ;;  %5740 = vmatpush3.bf16.msra.mxu0 (!%p136_p3), %v366_v1  ;;  %v1430_v7 = vsel (!%p136_p3), %vm364_vm0, %v5300_v3, 0  ;;  %v6376_v8 = vld [vmem:[%s7440_s1 + $0xc] sm:$0xf] (!%p136_p3)  ;;  %v6384_v11 = vld [vmem:[%s7440_s1 + $0x10] sm:$0xf] (!%p136_p3)  ;;  %vm1337_vm3 = vcmask (!%p136_p3), 1046528  }
   0x9   : > { %6085 = vmatprep.subr.msk.bf16.mxu1 (!%p136_p3), %vm364_vm0, %v5262_v2  ;;  %6086 = vmatprep.subr.msk.bf16.mxu0 (!%p136_p3), %vm364_vm0, %v5300_v3  ;;  %vm714_vm2 = vsmask.f32 (!%p136_p3), 7424  ;;  %v6436_v57 = vld [vmem:[%s7440_s1 + $0x14] sm:$0xf] (!%p136_p3)  ;;  %v1941_v58 = vsel (!%p136_p3), %vm364_vm0, %v6376_v8, 0  ;;  %vm3005_vm5 = vcmask (!%p136_p3), 1045504  }
   0xa   : > { %vm2360_vm4 = vsmask.f32 (!%p136_p3), 6400  ;;  %vm545_vm6 = vcmask (!%p136_p3), 261120   ;;  %vm4028_vm7 = vsmask.f32 (!%p136_p3), 5376  ;;  %vm4673_vm8 = vcmask (!%p136_p3), 1044480  }
   0xe   : > { %s7447_s9 = smov (!%p164_p4, %s6303_s9), 1 }
   0xf   : > { %s6093_s19 = smul.u32 172, %s7447_s9 }
  0x10   : > { %s6094_s7 = smul.u32 288, %s7447_s9 }
  0x11   : > { %s6366_s22 = scalar_lea.vmem %s7439_s0, %s6093_s19 }
  0x12   : > { %v6119_v4 = vld [vmem:[%s6366_s22] sm:$0xff]   ;;  %v6120_v5 = vld [vmem:[%s6366_s22 + $0x50] sm:$0xff]   ;;  %v6121_v6 = vld [vmem:[%s6366_s22 + $0x8] sm:$0xff]   ;;  %s7296_s9 = scalar_lea.vmem %s7441_s2, %s6094_s7 }
  0x13   : > { %5741 = vmatprep.mubr.msk.bf16.mxu0 %vm309_vm1, %v6119_v4  ;;  %5761 = vmatprep.mubr.msk.bf16.mxu1 %vm309_vm1, %v6120_v5  ;;  %v6122_v9 = vld [vmem:[%s6366_s22 + $0x58] sm:$0xff]   ;;  %v6123_v12 = vld [vmem:[%s6366_s22 + $0x10] sm:$0xff]   ;;  %v6124_v13 = vld [vmem:[%s6366_s22 + $0x60] sm:$0xff]  }
  0x14   : > { %5742 = vmatmul.mubr.msk.bf16.vlgmr.msra.gmra.mrb[0].mxu0 %vm309_vm1, %v6121_v6  ;;  %5762 = vmatmul.mubr.msk.bf16.vlgmr.msra.gmra.mrb[0].mxu1 %vm309_vm1, %v6122_v9  ;;  %v6125_v14 = vld [vmem:[%s6366_s22 + $0x18] sm:$0xff]   ;;  %v6126_v15 = vld [vmem:[%s6366_s22 + $0x68] sm:$0xff]   ;;  %v6127_v16 = vld [vmem:[%s6366_s22 + $0x20] sm:$0xff]  }
  0x15   : > { %5816 = vmatpush3.bf16.msra.mxu0 %v1430_v7  ;;  %5778 = vmatpush3.bf16.msra.mxu1 %v918_v10  ;;  %v6128_v17 = vld [vmem:[%s6366_s22 + $0x70] sm:$0xff]   ;;  %v6129_v18 = vld [vmem:[%s6366_s22 + $0x28] sm:$0xff]   ;;  %v6130_v19 = vld [vmem:[%s6366_s22 + $0x78] sm:$0xff]  }
  0x16   : > { %5745 = vmatprep.mubr.msk.bf16.mxu0 %vm309_vm1, %v6123_v12  ;;  %5765 = vmatprep.mubr.msk.bf16.mxu1 %vm309_vm1, %v6124_v13  ;;  %v6131_v20 = vld [vmem:[%s6366_s22 + $0x30] sm:$0xff]   ;;  %v6132_v21 = vld [vmem:[%s6366_s22 + $0x80] sm:$0xff]   ;;  %v6137_v23 = vld [vmem:[%s6366_s22 + $0x8] sm:$0xff]  }
  0x17   : > { %6087 = vmatprep.subr.msk.bf16.mxu1 %vm364_vm0, %v6376_v8  ;;  %6088 = vmatprep.subr.msk.bf16.mxu0 %vm364_vm0, %v6384_v11  ;;  %v6136_v22 = vld [vmem:[%s6366_s22] sm:$0xff]   ;;  %v723_v26 = vshll.u32 %v6137_v23, 16  ;;  %v6139_v27 = vld [vmem:[%s6366_s22 + $0x10] sm:$0xff]   ;;  %v6133_v28 = vld [vmem:[%s6366_s22 + $0x38] sm:$0xff]   ;;  %v727_v35 = vshrl.u32 %v6137_v23, 16  ;;  %v2586_v8 = vsel %vm364_vm0, %v6384_v11, 0 }
  0x18   : > { %v716_v24 = vshrl.u32 %v6136_v22, 16  ;;  %v718_v25 = vshll.u32 %v6136_v22, 16  ;;  %v6140_v31 = vld [vmem:[%s6366_s22 + $0x18] sm:$0xff]   ;;  %v6134_v32 = vld [vmem:[%s6366_s22 + $0x88] sm:$0xff]   ;;  %v6135_v34 = vld [vmem:[%s6366_s22 + $0x40] sm:$0xff]   ;;  %v731_v36 = vshll.u32 %v6139_v27, 16 }
  0x19   : > { %v725_v30 = vrot.slane %v723_v26, 1  ;;  %v6142_v37 = vld [vmem:[%s6366_s22 + $0x8] sm:$0xff]   ;;  %v6141_v38 = vld [vmem:[%s6366_s22] sm:$0xfe]   ;;  %v735_v40 = vshrl.u32 %v6139_v27, 16  ;;  %v739_v41 = vshll.u32 %v6140_v31, 16 }
  0x1a   : > { %v720_v29 = vrot.slane %v718_v25, 1  ;;  %v6143_v42 = vld [vmem:[%s6366_s22 + $0x20] sm:$0xff]   ;;  %v733_v43 = vrot.slane %v731_v36, 1  ;;  %v1338_v45 = vrot.slane %v6141_v38, 1  ;;  %v1339_v46 = vrot.slane %v6142_v37, 1  ;;  %v6145_v49 = vld [vmem:[%s6366_s22 + $0x28] sm:$0xff]  }
  0x1b   : > { %v729_v44 = vor.u32 %v727_v35, %v725_v30  ;;  %v741_v48 = vrot.slane %v739_v41, 1  ;;  %v6138_v50 = vld [vmem:[%s6366_s22 + $0x48] sm:$0xff]   ;;  %v747_v51 = vshll.u32 %v6143_v42, 16  ;;  %v6144_v52 = vld [vmem:[%s6366_s22 + $0x10] sm:$0xff]   ;;  %v743_v55 = vshrl.u32 %v6140_v31, 16  ;;  %v6146_v56 = vld [vmem:[%s6366_s22 + $0x18] sm:$0xff]  }
  0x1c   : > { %5746 = vmatmul.mubr.msk.bf16.gmra.mrb[4].mxu0 %vm309_vm1, %v6125_v14  ;;  %5766 = vmatmul.mubr.msk.bf16.gmra.mrb[4].mxu1 %vm309_vm1, %v6126_v15  ;;  %v721_v33 = vor.u32 %v720_v29, %v716_v24  ;;  %v737_v47 = vor.u32 %v735_v40, %v733_v43  ;;  %v1340_v54 = vsel %vm1337_vm3, %v1338_v45, %v1339_v46  ;;  %v751_v60 = vshrl.u32 %v6143_v42, 16  ;;  %v6147_v0 = vld [vmem:[%s6366_s22 + $0x30] sm:$0xff]   ;;  %v6149_v5 = vld [vmem:[%s6366_s22 + $0x38] sm:$0xff]   ;;  %v6148_v6 = vld [vmem:[%s6366_s22 + $0x20] sm:$0xff]  }
  0x1d   : > { %5749 = vmatprep.mubr.msk.bf16.mxu0 %vm309_vm1, %v6127_v16  ;;  %5769 = vmatprep.mubr.msk.bf16.mxu1 %vm309_vm1, %v6128_v17  ;;  %v734_v53 = vsel %vm714_vm2, %v729_v44, %v733_v43  ;;  %v755_v61 = vshll.u32 %v6145_v49, 16  ;;  %v749_v62 = vrot.slane %v747_v51, 1  ;;  %v1341_v63 = vrot.slane %v6144_v52, 1  ;;  %v6150_v13 = vld [vmem:[%s6366_s22 + $0x28] sm:$0xff]   ;;  %v6458_v14 = vld [vmem:[%s7440_s1 + $0x18] sm:$0xf] }
  0x1e   : > { %v726_v39 = vsel %vm714_vm2, %v721_v33, %v725_v30  ;;  %v742_v59 = vsel %vm714_vm2, %v737_v47, %v741_v48  ;;  %v745_v1 = vor.u32 %v743_v55, %v741_v48  ;;  %v1343_v2 = vrot.slane %v6146_v56, 1  ;;  %v6153_v25 = vld [vmem:[%s6366_s22 + $0x48] sm:$0xff]   ;;  %v6152_v29 = vld [vmem:[%s6366_s22 + $0x30] sm:$0xff]   ;;  %v6154_v33 = vld [vmem:[%s6366_s22 + $0x38] sm:$0xff]  }
  0x1f   : > { %v753_v3 = vor.u32 %v751_v60, %v749_v62  ;;  %v757_v4 = vrot.slane %v755_v61, 1  ;;  %v1342_v7 = vsel %vm1337_vm3, %v1339_v46, %v1341_v63  ;;  %v763_v9 = vshll.u32 %v6147_v0, 16  ;;  %v6155_v36 = vld [vmem:[%s6366_s22 + $0x50] sm:$0xff]   ;;  %v6157_v44 = vld [vmem:[%s6366_s22 + $0x58] sm:$0xff]   ;;  %v6156_v45 = vld [vmem:[%s6366_s22 + $0x40] sm:$0xff]  }
  0x20   : > { %v750_v10 = vsel %vm714_vm2, %v745_v1, %v749_v62  ;;  %v759_v12 = vshrl.u32 %v6145_v49, 16  ;;  %v1344_v16 = vsel %vm1337_vm3, %v1341_v63, %v1343_v2  ;;  %v767_v17 = vshrl.u32 %v6147_v0, 16  ;;  %v6158_v48 = vld [vmem:[%s6366_s22 + $0x48] sm:$0xff]   ;;  %v6159_v56 = vld [vmem:[%s6366_s22 + $0x60] sm:$0xff]   ;;  %v6160_v63 = vld [vmem:[%s6366_s22 + $0x50] sm:$0xff]  }
  0x21   : > { %v758_v15 = vsel %vm714_vm2, %v753_v3, %v757_v4  ;;  %v1345_v11 = vrot.slane %v6148_v6, 1  ;;  %v1347_v22 = vrot.slane %v6150_v13, 1  ;;  %v775_v27 = vshrl.u32 %v6149_v5, 16  ;;  %v6161_v60 = vld [vmem:[%s6366_s22 + $0x68] sm:$0xff]  }
  0x22   : > { %v787_v35 = vshll.u32 %v6153_v25, 16  ;;  %v1349_v38 = vrot.slane %v6152_v29, 1  ;;  %v1351_v40 = vrot.slane %v6154_v33, 1  ;;  %v795_v43 = vshll.u32 %v6155_v36, 16 }
  0x23   : > { %v1346_v26 = vsel %vm1337_vm3, %v1343_v2, %v1345_v11  ;;  %v1348_v31 = vsel %vm1337_vm3, %v1345_v11, %v1347_v22  ;;  %v791_v47 = vshrl.u32 %v6153_v25, 16  ;;  %v1353_v55 = vrot.slane %v6156_v45, 1 }
  0x24   : > { %5750 = vmatmul.mubr.msk.bf16.gmra.mrb[8].mxu0 %vm309_vm1, %v6129_v18  ;;  %5770 = vmatmul.mubr.msk.bf16.gmra.mrb[8].mxu1 %vm309_vm1, %v6130_v19  ;;  %v771_v18 = vshll.u32 %v6149_v5, 16  ;;  %v765_v19 = vrot.slane %v763_v9, 1  ;;  %v789_v42 = vrot.slane %v787_v35, 1  ;;  %v1350_v46 = vsel %vm1337_vm3, %v1347_v22, %v1349_v38  ;;  %v6169_v35 = vld [vmem:[%s6366_s22 + $0x88] sm:$0xff]  }
  0x25   : > { %5753 = vmatprep.mubr.msk.bf16.mxu0 %vm309_vm1, %v6131_v20  ;;  %5773 = vmatprep.mubr.msk.bf16.mxu1 %vm309_vm1, %v6132_v21  ;;  %v6151_v20 = vld [vmem:[%s6366_s22 + $0x40] sm:$0xff]   ;;  %v761_v21 = vor.u32 %v759_v12, %v757_v4  ;;  %v797_v52 = vrot.slane %v795_v43, 1  ;;  %v1354_v1 = vsel %vm1337_vm3, %v1351_v40, %v1353_v55  ;;  %v811_v2 = vshll.u32 %v6159_v56, 16  ;;  %v6163_v12 = vld [vmem:[%s6366_s22 + $0x70] sm:$0xff]  }
  0x26   : > { %v769_v23 = vor.u32 %v767_v17, %v765_v19  ;;  %v773_v24 = vrot.slane %v771_v18, 1  ;;  %v807_v4 = vshrl.u32 %v6157_v44, 16  ;;  %v815_v5 = vshrl.u32 %v6159_v56, 16  ;;  %v6165_v18 = vld [vmem:[%s6366_s22 + $0x78] sm:$0xff]  }
  0x27   : > { %v766_v30 = vsel %vm714_vm2, %v761_v21, %v765_v19  ;;  %v819_v6 = vshll.u32 %v6161_v60, 16  ;;  %v1357_v9 = vrot.slane %v6160_v63, 1  ;;  %v827_v19 = vshll.u32 %v6163_v12, 16  ;;  %v6174_v63 = vld [vmem:[%s6366_s22 + $0x8] sm:$0xfe]  }
  0x28   : > { %v851_v45 = vshll.u32 %v6169_v35, 16 }
  0x29   : > { %v821_v17 = vrot.slane %v819_v6, 1 }
  0x2c   : > { %5754 = vmatmul.mubr.msk.bf16.gmra.mrb[12].mxu0 %vm309_vm1, %v6133_v28  ;;  %5774 = vmatmul.mubr.msk.bf16.gmra.mrb[12].mxu1 %vm309_vm1, %v6134_v32  ;;  %v779_v28 = vshll.u32 %v6151_v20, 16  ;;  %v783_v32 = vshrl.u32 %v6151_v20, 16  ;;  %v6164_v20 = vld [vmem:[%s6366_s22 + $0x60] sm:$0xff]  }
  0x2d   : > { %5757 = vmatprep.mubr.msk.bf16.mxu0 %vm309_vm1, %v6135_v34  ;;  %5779 = vmatprep.mubr.msk.bf16.mxu1 %vm309_vm1, %v726_v39  ;;  %v774_v34 = vsel %vm714_vm2, %v769_v23, %v773_v24  ;;  %v777_v39 = vor.u32 %v775_v27, %v773_v24  ;;  %v823_v23 = vshrl.u32 %v6161_v60, 16  ;;  %v6166_v24 = vld [vmem:[%s6366_s22 + $0x68] sm:$0xff]   ;;  %v835_v27 = vshll.u32 %v6165_v18, 16 }
  0x2e   : > { %v781_v37 = vrot.slane %v779_v28, 1  ;;  %v829_v28 = vrot.slane %v827_v19, 1  ;;  %v1361_v29 = vrot.slane %v6164_v20, 1  ;;  %v6179_v60 = vld [vmem:[%s6366_s22 + $0x8] sm:$0xfe]   ;;  %v6182_v19 = vld [vmem:[%s6366_s22 + $0x18] sm:$0xff]  }
  0x2f   : > { %v2362_v6 = vshrl.u32 %v6179_v60, 16 }
  0x30   : > { %v785_v41 = vor.u32 %v783_v32, %v781_v37  ;;  %v782_v49 = vsel %vm714_vm2, %v777_v39, %v781_v37  ;;  %v1363_v32 = vrot.slane %v6166_v24, 1 }
  0x31   : > { %v2364_v20 = vrot.slane %v2362_v6, 1 }
  0x32   : > { %v790_v51 = vsel %vm714_vm2, %v785_v41, %v789_v42  ;;  %v839_v41 = vshrl.u32 %v6165_v18, 16 }
  0x34   : > { %5758 = vmatmul.mubr.msk.bf16.gmra.mrb[16].mxu0 %vm309_vm1, %v6138_v50  ;;  %5780 = vmatmul.mubr.msk.bf16.vlgmr.msra.gmra.mrb[16].mxu1 %vm309_vm1, %v734_v53  ;;  %v1352_v50 = vsel %vm1337_vm3, %v1349_v38, %v1351_v40  ;;  %v799_v53 = vshrl.u32 %v6155_v36, 16  ;;  %v6168_v38 = vld [vmem:[%s6366_s22 + $0x70] sm:$0xff]   ;;  %v1364_v40 = vsel %vm1337_vm3, %v1361_v29, %v1363_v32 }
  0x35   : > { %5817 = vmatprep.mubr.msk.bf16.mxu0 %vm309_vm1, %v1340_v54  ;;  %5854 = vmatpush3.bf16.msra.mxu1 %v1941_v58  ;;  %v803_v54 = vshll.u32 %v6157_v44, 16  ;;  %v793_v58 = vor.u32 %v791_v47, %v789_v42  ;;  %v6170_v42 = vld [vmem:[%s6366_s22 + $0x78] sm:$0xff]  }
  0x36   : > { %5783 = vmatprep.mubr.msk.bf16.mxu1 %vm309_vm1, %v742_v59  ;;  %6089 = vmatprep.subr.msk.bf16.mxu1 %vm364_vm0, %v6436_v57  ;;  %v1355_v59 = vrot.slane %v6158_v48, 1  ;;  %v801_v61 = vor.u32 %v799_v53, %v797_v52  ;;  %v1365_v48 = vrot.slane %v6168_v38, 1  ;;  %v855_v53 = vshrl.u32 %v6169_v35, 16 }
  0x37   : > { %v805_v62 = vrot.slane %v803_v54, 1  ;;  %v798_v0 = vsel %vm714_vm2, %v793_v58, %v797_v52  ;;  %v853_v52 = vrot.slane %v851_v45, 1  ;;  %v6172_v54 = vld [vmem:[%s6366_s22 + $0x80] sm:$0xff]   ;;  %v6180_v58 = vld [vmem:[%s6366_s22 + $0x10] sm:$0xff]  }
  0x38   : > { %v1356_v3 = vsel %vm1337_vm3, %v1353_v55, %v1355_v59  ;;  %v1358_v11 = vsel %vm1337_vm3, %v1355_v59, %v1357_v9  ;;  %v6173_v55 = vld [vmem:[%s6366_s22 + $0x88] sm:$0xff]   ;;  %v1366_v59 = vsel %vm1337_vm3, %v1363_v32, %v1365_v48 }
  0x39   : > { %v809_v13 = vor.u32 %v807_v4, %v805_v62 }
  0x3c   : > { %5818 = vmatmul.mubr.msk.bf16.vlgmr.msra.gmra.mrb[20].mxu0 %vm309_vm1, %v1342_v7  ;;  %5784 = vmatmul.mubr.msk.bf16.gmra.mrb[20].mxu1 %vm309_vm1, %v750_v10  ;;  %v6162_v7 = vld [vmem:[%s6366_s22 + $0x58] sm:$0xff]   ;;  %v813_v10 = vrot.slane %v811_v2, 1  ;;  %v6175_v2 = vld [vmem:[%s6366_s22 + $0x10] sm:$0xff]  }
  0x3d   : > { %5892 = vmatpush3.bf16.msra.mxu0 %v2586_v8  ;;  %5787 = vmatprep.mubr.msk.bf16.mxu1 %vm309_vm1, %v758_v15  ;;  %v806_v8 = vsel %vm714_vm2, %v801_v61, %v805_v62  ;;  %v1359_v15 = vrot.slane %v6162_v7, 1  ;;  %v2365_v7 = vshll.u32 %v6179_v60, 16 }
  0x3e   : > { %5821 = vmatprep.mubr.msk.bf16.mxu0 %vm309_vm1, %v1344_v16  ;;  %6090 = vmatprep.subr.msk.bf16.mxu0 %vm364_vm0, %v6458_v14  ;;  %v817_v16 = vor.u32 %v815_v5, %v813_v10  ;;  %v814_v21 = vsel %vm714_vm2, %v809_v13, %v813_v10  ;;  %v1371_v5 = vrot.slane %v6173_v55, 1  ;;  %v1849_v10 = vrot.slane %v6174_v63, 1  ;;  %v6176_v13 = vld [vmem:[%s6366_s22 + $0x90] ss:$0 sps:$4 sm:$0x11]  }
  0x3f   : > { %v1360_v22 = vsel %vm1337_vm3, %v1357_v9, %v1359_v15  ;;  %v1362_v36 = vsel %vm1337_vm3, %v1359_v15, %v1361_v29  ;;  %v2373_v9 = vshll.u32 %v6180_v58, 16  ;;  %v6177_v15 = vld [vmem:[%s6366_s22 + $0x18] sm:$0xff]  }
  0x40   : > { %v822_v25 = vsel %vm714_vm2, %v817_v16, %v821_v17  ;;  %v1852_v29 = vrot.slane %v6177_v15, 1  ;;  %v6573_v55 = vld [vmem:[%s7440_s1 + $0x1c] sm:$0xf]  ;;  %v6594_v15 = vld [vmem:[%s7440_s1 + $0x20] sm:$0xf] }
  0x44   : > { %5822 = vmatmul.mubr.msk.bf16.gmra.mrb[24].mxu0 %vm309_vm1, %v1346_v26  ;;  %5788 = vmatmul.mubr.msk.bf16.gmra.mrb[24].mxu1 %vm309_vm1, %v766_v30  ;;  %v831_v26 = vshrl.u32 %v6163_v12, 16  ;;  %v6167_v30 = vld [vmem:[%s6366_s22 + $0x80] sm:$0xff]   ;;  %v1850_v12 = vrot.slane %v6175_v2, 1 }
  0x45   : > { %5825 = vmatprep.mubr.msk.bf16.mxu0 %vm309_vm1, %v1348_v31  ;;  %5791 = vmatprep.mubr.msk.bf16.mxu1 %vm309_vm1, %v774_v34  ;;  %v825_v31 = vor.u32 %v823_v23, %v821_v17  ;;  %v837_v34 = vrot.slane %v835_v27, 1  ;;  %v843_v37 = vshll.u32 %v6167_v30, 16  ;;  %v847_v44 = vshrl.u32 %v6167_v30, 16 }
  0x46   : > { %v833_v33 = vor.u32 %v831_v26, %v829_v28  ;;  %v2375_v23 = vrot.slane %v2373_v9, 2  ;;  %v1851_v24 = vsel %vm1337_vm3, %v1849_v10, %v1850_v12  ;;  %v1373_v26 = vrot.slane %v6176_v13, 1 }
  0x47   : > { %v830_v39 = vsel %vm714_vm2, %v825_v31, %v829_v28  ;;  %v845_v47 = vrot.slane %v843_v37, 1  ;;  %v2379_v27 = vshrl.u32 %v6182_v19, 16  ;;  %v2382_v28 = vshll.u32 %v6182_v19, 16 }
  0x48   : > { %v838_v43 = vsel %vm714_vm2, %v833_v33, %v837_v34  ;;  %v1374_v35 = vsel %vm1337_vm3, %v1371_v5, %v1373_v26  ;;  %v6191_v26 = vld [vmem:[%s6366_s22 + $0x50] sm:$0xff]  }
  0x49   : > { %v2381_v37 = vrot.slane %v2379_v27, 1  ;;  %v2384_v38 = vrot.slane %v2382_v28, 2 }
  0x4c   : > { %5826 = vmatmul.mubr.msk.bf16.gmra.mrb[28].mxu0 %vm309_vm1, %v1350_v46  ;;  %5792 = vmatmul.mubr.msk.bf16.gmra.mrb[28].mxu1 %vm309_vm1, %v782_v49  ;;  %v6171_v46 = vld [vmem:[%s6366_s22 + $0x90] ss:$0 sps:$4 sm:$0x11]   ;;  %v841_v49 = vor.u32 %v839_v41, %v837_v34  ;;  %v1853_v41 = vsel %vm1337_vm3, %v1850_v12, %v1852_v29 }
  0x4d   : > { %5829 = vmatprep.mubr.msk.bf16.mxu0 %vm309_vm1, %v1352_v50  ;;  %5795 = vmatprep.mubr.msk.bf16.mxu1 %vm309_vm1, %v790_v51  ;;  %v1367_v50 = vrot.slane %v6170_v42, 1  ;;  %v849_v51 = vor.u32 %v847_v44, %v845_v47  ;;  %v859_v56 = vshll.u32 %v6171_v46, 16  ;;  %v3098_v42 = vsel %vm364_vm0, %v6436_v57, 0  ;;  %v6188_v44 = vld [vmem:[%s6366_s22 + $0x30] sm:$0xff]  }
  0x4e   : > { %v846_v61 = vsel %vm714_vm2, %v841_v49, %v845_v47 }
  0x4f   : > { %v1368_v62 = vsel %vm1337_vm3, %v1365_v48, %v1367_v50  ;;  %v861_v4 = vrot.slane %v859_v56, 1  ;;  %v2385_v48 = vor.u32 %v2384_v38, %v2381_v37  ;;  %v3609_v56 = vsel %vm364_vm0, %v6458_v14, 0  ;;  %v6198_v37 = vld [vmem:[%s6366_s22 + $0x58] sm:$0xff]  }
  0x54   : > { %5830 = vmatmul.mubr.msk.bf16.gmra.mrb[32].mxu0 %vm309_vm1, %v1354_v1  ;;  %5796 = vmatmul.mubr.msk.bf16.gmra.mrb[32].mxu1 %vm309_vm1, %v798_v0  ;;  %v854_v0 = vsel %vm714_vm2, %v849_v51, %v853_v52  ;;  %v1369_v1 = vrot.slane %v6172_v54, 1  ;;  %v2406_v51 = vshrl.u32 %v6188_v44, 16 }
  0x55   : > { %5833 = vmatprep.mubr.msk.bf16.mxu0 %vm309_vm1, %v1356_v3  ;;  %5799 = vmatprep.mubr.msk.bf16.mxu1 %vm309_vm1, %v806_v8  ;;  %v857_v3 = vor.u32 %v855_v53, %v853_v52  ;;  %v2370_v8 = vshrl.u32 %v6180_v58, 16  ;;  %v2409_v52 = vshll.u32 %v6188_v44, 16  ;;  %v6185_v58 = vld [vmem:[%s6366_s22 + $0x38] sm:$0xff]   ;;  %v6200_v44 = vld [vmem:[%s6366_s22 + $0x60] sm:$0xff]  }
  0x56   : > { %v1370_v17 = vsel %vm1337_vm3, %v1367_v50, %v1369_v1  ;;  %v1372_v18 = vsel %vm1337_vm3, %v1369_v1, %v1371_v5  ;;  %v2408_v1 = vrot.slane %v2406_v51, 1  ;;  %v1860_v6 = vrot.slane %v6185_v58, 1  ;;  %v6202_v58 = vld [vmem:[%s6366_s22 + $0x68] sm:$0xff]  }
  0x57   : > { %v862_v16 = vsel %vm714_vm2, %v857_v3, %v861_v4  ;;  %v2411_v2 = vrot.slane %v2409_v52, 2  ;;  %v6192_v3 = vld [vmem:[%s6366_s22 + $0x40] sm:$0xff]   ;;  %v2460_v51 = vshrl.u32 %v6200_v44, 16  ;;  %v2463_v52 = vshll.u32 %v6200_v44, 16  ;;  %v6207_v44 = vld [vmem:[%s6366_s22 + $0x90] sm:$0xff]  }
  0x58   : > { %v2424_v10 = vshrl.u32 %v6192_v3, 16  ;;  %v2427_v12 = vshll.u32 %v6192_v3, 16  ;;  %v6199_v3 = vld [vmem:[%s6366_s22 + $0x70] sm:$0xff]  }
  0x59   : > { %v2412_v9 = vor.u32 %v2411_v2, %v2408_v1  ;;  %v2465_v1 = vrot.slane %v2463_v52, 2  ;;  %v1882_v52 = vrot.slane %v6207_v44, 1 }
  0x5c   : > { %5834 = vmatmul.mubr.msk.bf16.gmra.mrb[36].mxu0 %vm309_vm1, %v1358_v11  ;;  %5800 = vmatmul.mubr.msk.bf16.gmra.mrb[36].mxu1 %vm309_vm1, %v814_v21  ;;  %v6178_v11 = vld [vmem:[%s6366_s22 + $0x20] sm:$0xff]   ;;  %v2367_v21 = vrot.slane %v2365_v7, 2 }
  0x5d   : > { %5837 = vmatprep.mubr.msk.bf16.mxu0 %vm309_vm1, %v1360_v22  ;;  %5803 = vmatprep.mubr.msk.bf16.mxu1 %vm309_vm1, %v822_v25  ;;  %v2372_v22 = vrot.slane %v2370_v8, 1  ;;  %v6184_v25 = vld [vmem:[%s6366_s22 + $0x20] sm:$0xff]   ;;  %v1854_v32 = vrot.slane %v6178_v11, 1 }
  0x5e   : > { %v2368_v30 = vor.u32 %v2367_v21, %v2364_v20  ;;  %v2388_v33 = vshrl.u32 %v6184_v25, 16  ;;  %v2391_v34 = vshll.u32 %v6184_v25, 16  ;;  %v6196_v20 = vld [vmem:[%s6366_s22 + $0x50] sm:$0xff]  }
  0x5f   : > { %v2376_v31 = vor.u32 %v2375_v23, %v2372_v22  ;;  %v1855_v45 = vsel %vm1337_vm3, %v1852_v29, %v1854_v32  ;;  %v2426_v23 = vrot.slane %v2424_v10, 1  ;;  %v1874_v10 = vrot.slane %v6199_v3, 1 }
  0x60   : > { %v2390_v46 = vrot.slane %v2388_v33, 1  ;;  %v2393_v47 = vrot.slane %v2391_v34, 2  ;;  %v2445_v33 = vshll.u32 %v6196_v20, 16  ;;  %v1866_v34 = vrot.slane %v6191_v26, 1 }
  0x61   : > { %v2386_v60 = vsel %vm2360_vm4, %v2376_v31, %v2385_v48 }
  0x62   : > { %v2394_v54 = vor.u32 %v2393_v47, %v2390_v46  ;;  %v6195_v46 = vld [vmem:[%s6366_s22 + $0x60] sm:$0xff]   ;;  %v2451_v47 = vshrl.u32 %v6198_v37, 16 }
  0x64   : > { %5838 = vmatmul.mubr.msk.bf16.gmra.mrb[40].mxu0 %vm309_vm1, %v1362_v36  ;;  %5804 = vmatmul.mubr.msk.bf16.gmra.mrb[40].mxu1 %vm309_vm1, %v830_v39  ;;  %v6181_v36 = vld [vmem:[%s6366_s22 + $0x28] sm:$0xff]   ;;  %v6183_v39 = vld [vmem:[%s6366_s22 + $0x30] sm:$0xff]   ;;  %v2395_v14 = vsel %vm2360_vm4, %v2385_v48, %v2394_v54 }
  0x65   : > { %5841 = vmatprep.mubr.msk.bf16.mxu0 %vm309_vm1, %v1364_v40  ;;  %5807 = vmatprep.mubr.msk.bf16.mxu1 %vm309_vm1, %v838_v43  ;;  %v6186_v40 = vld [vmem:[%s6366_s22 + $0x28] sm:$0xff]   ;;  %v2377_v43 = vsel %vm2360_vm4, %v2368_v30, %v2376_v31  ;;  %v1856_v57 = vrot.slane %v6181_v36, 1  ;;  %v1858_v53 = vrot.slane %v6183_v39, 1  ;;  %v2442_v30 = vshrl.u32 %v6196_v20, 16 }
  0x66   : > { %v2397_v49 = vshrl.u32 %v6186_v40, 16  ;;  %v2400_v50 = vshll.u32 %v6186_v40, 16 }
  0x67   : > { %v1857_v63 = vsel %vm1337_vm3, %v1854_v32, %v1856_v57  ;;  %v1859_v4 = vsel %vm1337_vm3, %v1856_v57, %v1858_v53  ;;  %v1861_v21 = vsel %vm1337_vm3, %v1858_v53, %v1860_v6  ;;  %v2444_v40 = vrot.slane %v2442_v30, 1 }
  0x68   : > { %v1870_v53 = vrot.slane %v6195_v46, 1 }
  0x6c   : > { %5842 = vmatmul.mubr.msk.bf16.gmra.mrb[44].mxu0 %vm309_vm1, %v1366_v59  ;;  %5808 = vmatmul.mubr.msk.bf16.gmra.mrb[44].mxu1 %vm309_vm1, %v846_v61  ;;  %v6190_v59 = vld [vmem:[%s6366_s22 + $0x38] sm:$0xff]   ;;  %v2399_v61 = vrot.slane %v2397_v49, 1 }
  0x6d   : > { %5845 = vmatprep.mubr.msk.bf16.mxu0 %vm309_vm1, %v1368_v62  ;;  %5811 = vmatprep.mubr.msk.bf16.mxu1 %vm309_vm1, %v854_v0  ;;  %v2402_v62 = vrot.slane %v2400_v50, 2  ;;  %v6187_v0 = vld [vmem:[%s6366_s22 + $0x40] sm:$0xff]   ;;  %v2415_v5 = vshrl.u32 %v6190_v59, 16  ;;  %v2418_v8 = vshll.u32 %v6190_v59, 16  ;;  %v2454_v50 = vshll.u32 %v6198_v37, 16 }
  0x6e   : > { %v1862_v13 = vrot.slane %v6187_v0, 1  ;;  %v2462_v0 = vrot.slane %v2460_v51, 1  ;;  %v6214_v51 = vld [vmem:[%s6366_s22 + $0x98] ss:$0 sps:$4 sm:$0x33]  }
  0x6f   : > { %v2403_v7 = vor.u32 %v2402_v62, %v2399_v61  ;;  %v2420_v19 = vrot.slane %v2418_v8, 2  ;;  %v6204_v61 = vld [vmem:[%s6366_s22 + $0x70] sm:$0xff]  }
  0x70   : > { %v1863_v25 = vsel %vm1337_vm3, %v1860_v6, %v1862_v13  ;;  %v2478_v6 = vshrl.u32 %v6204_v61, 16  ;;  %v2466_v8 = vor.u32 %v2465_v1, %v2462_v0  ;;  %v6213_v1 = vld [vmem:[%s6366_s22 + $0x10] sm:$0xff]  }
  0x71   : > { %v2404_v11 = vsel %vm2360_vm4, %v2394_v54, %v2403_v7  ;;  %v2413_v22 = vsel %vm2360_vm4, %v2403_v7, %v2412_v9  ;;  %v6197_v54 = vld [vmem:[%s6366_s22 + $0x68] sm:$0xff]  }
  0x72   : > { %v1872_v7 = vrot.slane %v6197_v54, 1 }
  0x74   : > { %5846 = vmatmul.mubr.msk.bf16.gmra.mrb[48].mxu0 %vm309_vm1, %v1370_v17  ;;  %5812 = vmatmul.mubr.msk.bf16.gmra.mrb[48].mxu1 %vm309_vm1, %v862_v16  ;;  %v6189_v16 = vld [vmem:[%s6366_s22 + $0x48] sm:$0xff]   ;;  %v2417_v17 = vrot.slane %v2415_v5, 1 }
  0x75   : > { %5849 = vmatprep.mubr.msk.bf16.mxu0 %vm309_vm1, %v1372_v18  ;;  %5855 = vmatprep.mubr.msk.bf16.mxu1 %vm309_vm1, %v1851_v24  ;;  %v6194_v18 = vld [vmem:[%s6366_s22 + $0x48] sm:$0xff]   ;;  %v2429_v24 = vrot.slane %v2427_v12, 2  ;;  %v1864_v31 = vrot.slane %v6189_v16, 1  ;;  %v6201_v12 = vld [vmem:[%s6366_s22 + $0x78] sm:$0xff]  }
  0x76   : > { %v2433_v27 = vshrl.u32 %v6194_v18, 16  ;;  %v2421_v28 = vor.u32 %v2420_v19, %v2417_v17  ;;  %v2436_v29 = vshll.u32 %v6194_v18, 16  ;;  %v2480_v18 = vrot.slane %v2478_v6, 1 }
  0x77   : > { %v2430_v32 = vor.u32 %v2429_v24, %v2426_v23  ;;  %v1873_v19 = vsel %vm1337_vm3, %v1870_v53, %v1872_v7  ;;  %v1875_v23 = vsel %vm1337_vm3, %v1872_v7, %v1874_v10  ;;  %v6203_v24 = vld [vmem:[%s6366_s22 + $0x80] sm:$0xff]   ;;  %v3007_v7 = vrot.slane %v6213_v1, 2 }
  0x78   : > { %v2435_v36 = vrot.slane %v2433_v27, 1  ;;  %v2422_v38 = vsel %vm2360_vm4, %v2412_v9, %v2421_v28  ;;  %v2438_v39 = vrot.slane %v2436_v29, 2  ;;  %v2481_v9 = vshll.u32 %v6204_v61, 16 }
  0x7a   : > { %v2439_v49 = vor.u32 %v2438_v39, %v2435_v36 }
  0x7c   : > { %5850 = vmatmul.mubr.msk.bf16.gmra.mrb[52].mxu0 %vm309_vm1, %v1374_v35  ;;  %5856 = vmatmul.mubr.msk.bf16.vlgmr.msra.gmra.mrb[52].mxu1 %vm309_vm1, %v1853_v41  ;;  %v6193_v35 = vld [vmem:[%s6366_s22 + $0x58] sm:$0xff]   ;;  %v1865_v41 = vsel %vm1337_vm3, %v1862_v13, %v1864_v31  ;;  %v2440_v59 = vsel %vm2360_vm4, %v2430_v32, %v2439_v49 }
  0x7d   : > { %5893 = vmatprep.mubr.msk.bf16.mxu0 %vm309_vm1, %v2377_v43  ;;  %5930 = vmatpush3.bf16.msra.mxu1 %v3098_v42  ;;  %v2431_v42 = vsel %vm2360_vm4, %v2421_v28, %v2430_v32  ;;  %v2447_v43 = vrot.slane %v2445_v33, 2  ;;  %v1868_v48 = vrot.slane %v6193_v35, 1  ;;  %v1878_v32 = vrot.slane %v6203_v24, 1  ;;  %v6205_v33 = vld [vmem:[%s6366_s22 + $0x88] sm:$0xff]   ;;  %v6211_v35 = vld [vmem:[%s6366_s22 + $0x90] sm:$0xff]  }
  0x7e   : > { %5859 = vmatprep.mubr.msk.bf16.mxu1 %vm309_vm1, %v1855_v45  ;;  %6091 = vmatprep.subr.msk.bf16.mxu1 %vm364_vm0, %v6573_v55  ;;  %v1867_v45 = vsel %vm1337_vm3, %v1864_v31, %v1866_v34 }
  0x7f   : > { %v2448_v57 = vor.u32 %v2447_v43, %v2444_v40  ;;  %v1869_v62 = vsel %vm1337_vm3, %v1866_v34, %v1868_v48  ;;  %v1871_v2 = vsel %vm1337_vm3, %v1868_v48, %v1870_v53  ;;  %v6210_v34 = vld [vmem:[%s6366_s22 + $0x88] sm:$0xff]   ;;  %v2514_v48 = vshrl.u32 %v6211_v35, 16  ;;  %v6209_v53 = vld [vmem:[%s6366_s22 + $0x98] ss:$0 sps:$4 sm:$0x11]  }
  0x80   : > { %v2505_v46 = vshrl.u32 %v6210_v34, 16 }
  0x81   : > { %v2516_v61 = vrot.slane %v2514_v48, 1 }
  0x84   : > { %5894 = vmatmul.mubr.msk.bf16.vlgmr.msra.gmra.mrb[56].mxu0 %vm309_vm1, %v2386_v60  ;;  %5860 = vmatmul.mubr.msk.bf16.gmra.mrb[56].mxu1 %vm309_vm1, %v1857_v63  ;;  %v2456_v60 = vrot.slane %v2454_v50, 2  ;;  %v2449_v63 = vsel %vm2360_vm4, %v2439_v49, %v2448_v57 }
  0x85   : > { %5968 = vmatpush3.bf16.msra.mxu0 %v3609_v56  ;;  %5863 = vmatprep.mubr.msk.bf16.mxu1 %vm309_vm1, %v1859_v4  ;;  %v2453_v56 = vrot.slane %v2451_v47, 1  ;;  %v2469_v4 = vshrl.u32 %v6202_v58, 16  ;;  %v2508_v47 = vshll.u32 %v6210_v34, 16 }
  0x86   : > { %5897 = vmatprep.mubr.msk.bf16.mxu0 %vm309_vm1, %v2395_v14  ;;  %6092 = vmatprep.subr.msk.bf16.mxu0 %vm364_vm0, %v6594_v15  ;;  %v2472_v14 = vshll.u32 %v6202_v58, 16 }
  0x87   : > { %v2457_v5 = vor.u32 %v2456_v60, %v2453_v56  ;;  %v2471_v13 = vrot.slane %v2469_v4, 1  ;;  %v2507_v56 = vrot.slane %v2505_v46, 1  ;;  %v2510_v58 = vrot.slane %v2508_v47, 2 }
  0x88   : > { %v2474_v16 = vrot.slane %v2472_v14, 2  ;;  %v2526_v4 = vshll.u32 %v6214_v51, 16  ;;  %v1884_v14 = vrot.slane %v6209_v53, 1  ;;  %v6230_v53 = vld [vmem:[%s6366_s22 + $0x48] sm:$0xff]  }
  0x89   : > { %v2458_v17 = vsel %vm2360_vm4, %v2448_v57, %v2457_v5  ;;  %v2467_v20 = vsel %vm2360_vm4, %v2457_v5, %v2466_v8  ;;  %v2517_v57 = vshll.u32 %v6211_v35, 16  ;;  %v2511_v3 = vor.u32 %v2510_v58, %v2507_v56  ;;  %v6229_v56 = vld [vmem:[%s6366_s22 + $0x50] sm:$0xff]  }
  0x8a   : > { %v2475_v26 = vor.u32 %v2474_v16, %v2471_v13  ;;  %v6218_v13 = vld [vmem:[%s6366_s22 + $0x18] sm:$0xff]   ;;  %v1885_v16 = vsel %vm1337_vm3, %v1882_v52, %v1884_v14  ;;  %v6233_v14 = vld [vmem:[%s6366_s22 + $0x60] sm:$0xff]  }
  0x8c   : > { %5898 = vmatmul.mubr.msk.bf16.gmra.mrb[60].mxu0 %vm309_vm1, %v2404_v11  ;;  %5864 = vmatmul.mubr.msk.bf16.gmra.mrb[60].mxu1 %vm309_vm1, %v1861_v21  ;;  %v6206_v11 = vld [vmem:[%s6366_s22 + $0x78] sm:$0xff]   ;;  %v2483_v21 = vrot.slane %v2481_v9, 2  ;;  %v2476_v36 = vsel %vm2360_vm4, %v2466_v8, %v2475_v26 }
  0x8d   : > { %5901 = vmatprep.mubr.msk.bf16.mxu0 %vm309_vm1, %v2413_v22  ;;  %5867 = vmatprep.mubr.msk.bf16.mxu1 %vm309_vm1, %v1863_v25  ;;  %v6208_v22 = vld [vmem:[%s6366_s22 + $0x80] sm:$0xff]   ;;  %v1876_v25 = vrot.slane %v6201_v12, 1  ;;  %v2487_v27 = vshrl.u32 %v6206_v11, 16  ;;  %v2490_v28 = vshll.u32 %v6206_v11, 16  ;;  %v6215_v9 = vld [vmem:[%s6366_s22 + $0x18] sm:$0xff]   ;;  %v2528_v12 = vrot.slane %v2526_v4, 2 }
  0x8e   : > { %v2484_v29 = vor.u32 %v2483_v21, %v2480_v18  ;;  %v2496_v30 = vshrl.u32 %v6208_v22, 16  ;;  %v2499_v31 = vshll.u32 %v6208_v22, 16  ;;  %v6217_v18 = vld [vmem:[%s6366_s22 + $0x10] sm:$0xfc]   ;;  %v3009_v21 = vrot.slane %v6215_v9, 2 }
  0x8f   : > { %v2489_v37 = vrot.slane %v2487_v27, 1  ;;  %v1877_v39 = vsel %vm1337_vm3, %v1874_v10, %v1876_v25  ;;  %v1879_v43 = vsel %vm1337_vm3, %v1876_v25, %v1878_v32  ;;  %v3517_v22 = vrot.slane %v6217_v18, 2  ;;  %v6220_v27 = vld [vmem:[%s6366_s22 + $0x20] sm:$0xff]  }
  0x90   : > { %v2485_v40 = vsel %vm2360_vm4, %v2475_v26, %v2484_v29  ;;  %v6219_v26 = vld [vmem:[%s6366_s22 + $0x28] sm:$0xff]   ;;  %v3520_v34 = vrot.slane %v6220_v27, 2 }
  0x91   : > { %v3013_v35 = vrot.slane %v6219_v26, 2 }
  0x94   : > { %5902 = vmatmul.mubr.msk.bf16.gmra.mrb[64].mxu0 %vm309_vm1, %v2422_v38  ;;  %5868 = vmatmul.mubr.msk.bf16.gmra.mrb[64].mxu1 %vm309_vm1, %v1865_v41  ;;  %v2492_v38 = vrot.slane %v2490_v28, 2  ;;  %v2498_v41 = vrot.slane %v2496_v30, 1  ;;  %v3010_v28 = vsel %vm3005_vm5, %v3007_v7, %v3009_v21  ;;  %v6221_v30 = vld [vmem:[%s6366_s22 + $0x30] sm:$0xff]  }
  0x95   : > { %5905 = vmatprep.mubr.msk.bf16.mxu0 %vm309_vm1, %v2431_v42  ;;  %5871 = vmatprep.mubr.msk.bf16.mxu1 %vm309_vm1, %v1867_v45  ;;  %v2501_v42 = vrot.slane %v2499_v31, 2  ;;  %v1880_v45 = vrot.slane %v6205_v33, 1  ;;  %v4254_v31 = vsel %vm364_vm0, %v6573_v55, 0  ;;  %v6222_v33 = vld [vmem:[%s6366_s22 + $0x28] sm:$0xff]  }
  0x96   : > { %v2493_v49 = vor.u32 %v2492_v38, %v2489_v37  ;;  %v3522_v37 = vrot.slane %v6222_v33, 2  ;;  %v6223_v38 = vld [vmem:[%s6366_s22 + $0x38] sm:$0xff]  }
  0x97   : > { %v2502_v50 = vor.u32 %v2501_v42, %v2498_v41  ;;  %v1883_v0 = vsel %vm1337_vm3, %v1880_v45, %v1882_v52  ;;  %v4766_v41 = vsel %vm364_vm0, %v6594_v15, 0  ;;  %v6226_v42 = vld [vmem:[%s6366_s22 + $0x38] sm:$0xff]   ;;  %v3017_v15 = vrot.slane %v6223_v38, 2  ;;  %v6227_v52 = vld [vmem:[%s6366_s22 + $0x48] sm:$0xff]  }
  0x98   : > { %v2494_v54 = vsel %vm2360_vm4, %v2484_v29, %v2493_v49  ;;  %v3523_v44 = vsel %vm3005_vm5, %v3520_v34, %v3522_v37  ;;  %v3526_v47 = vrot.slane %v6226_v42, 2 }
  0x99   : > { %v2503_v60 = vsel %vm2360_vm4, %v2493_v49, %v2502_v50  ;;  %v2512_v10 = vsel %vm2360_vm4, %v2502_v50, %v2511_v3  ;;  %v6228_v50 = vld [vmem:[%s6366_s22 + $0x40] sm:$0xff]  }
  0x9a   : > { %v3528_v58 = vrot.slane %v6228_v50, 2 }
  0x9c   : > { %5906 = vmatmul.mubr.msk.bf16.gmra.mrb[68].mxu0 %vm309_vm1, %v2440_v59  ;;  %5872 = vmatmul.mubr.msk.bf16.gmra.mrb[68].mxu1 %vm309_vm1, %v1869_v62  ;;  %v1881_v59 = vsel %vm1337_vm3, %v1878_v32, %v1880_v45  ;;  %v2519_v62 = vrot.slane %v2517_v57, 2  ;;  %v6225_v45 = vld [vmem:[%s6366_s22 + $0x40] sm:$0xff]  }
  0x9d   : > { %5909 = vmatprep.mubr.msk.bf16.mxu0 %vm309_vm1, %v2449_v63  ;;  %5875 = vmatprep.mubr.msk.bf16.mxu1 %vm309_vm1, %v1871_v2  ;;  %v6212_v63 = vld [vmem:[%s6366_s22 + $0x8] sm:$0xfc]   ;;  %v2523_v2 = vshrl.u32 %v6214_v51, 16  ;;  %v3019_v48 = vrot.slane %v6225_v45, 2 }
  0x9e   : > { %v2520_v5 = vor.u32 %v2519_v62, %v2516_v61  ;;  %v3006_v6 = vrot.slane %v6212_v63, 2  ;;  %v3023_v61 = vrot.slane %v6229_v56, 2  ;;  %v3529_v62 = vsel %vm3005_vm5, %v3526_v47, %v3528_v58  ;;  %v6232_v63 = vld [vmem:[%s6366_s22 + $0x50] sm:$0xff]  }
  0x9f   : > { %v2525_v8 = vrot.slane %v2523_v2, 1  ;;  %v6231_v2 = vld [vmem:[%s6366_s22 + $0x58] sm:$0xff]  }
  0xa0   : > { %v3008_v11 = vsel %vm3005_vm5, %v3006_v6, %v3007_v7  ;;  %v3025_v6 = vrot.slane %v6231_v2, 2 }
  0xa4   : > { %5910 = vmatmul.mubr.msk.bf16.gmra.mrb[72].mxu0 %vm309_vm1, %v2458_v17  ;;  %5876 = vmatmul.mubr.msk.bf16.gmra.mrb[72].mxu1 %vm309_vm1, %v1873_v19  ;;  %v2521_v17 = vsel %vm2360_vm4, %v2511_v3, %v2520_v5  ;;  %v6216_v19 = vld [vmem:[%s6366_s22 + $0x20] sm:$0xff]   ;;  %v6234_v3 = vld [vmem:[%s6366_s22 + $0x58] sm:$0xff]  }
  0xa5   : > { %5913 = vmatprep.mubr.msk.bf16.mxu0 %vm309_vm1, %v2467_v20  ;;  %5879 = vmatprep.mubr.msk.bf16.mxu1 %vm309_vm1, %v1875_v23  ;;  %v2529_v20 = vor.u32 %v2528_v12, %v2525_v8  ;;  %v3518_v23 = vrot.slane %v6218_v13, 2  ;;  %v3011_v24 = vrot.slane %v6216_v19, 2  ;;  %v3534_v7 = vrot.slane %v6234_v3, 2 }
  0xa6   : > { %v3027_v8 = vrot.slane %v6233_v14, 2  ;;  %v3026_v12 = vsel %vm3005_vm5, %v3023_v61, %v3025_v6 }
  0xa7   : > { %v2530_v25 = vsel %vm2360_vm4, %v2520_v5, %v2529_v20  ;;  %v3519_v29 = vsel %vm3005_vm5, %v3517_v22, %v3518_v23  ;;  %v3012_v32 = vsel %vm3005_vm5, %v3009_v21, %v3011_v24  ;;  %v3521_v55 = vsel %vm3005_vm5, %v3518_v23, %v3520_v34  ;;  %v6239_v34 = vld [vmem:[%s6366_s22 + $0x78] sm:$0xff]  }
  0xa8   : > { %v3532_v5 = vrot.slane %v6232_v63, 2  ;;  %v3028_v18 = vsel %vm3005_vm5, %v3025_v6, %v3027_v8 }
  0xaa   : > { %v3535_v13 = vsel %vm3005_vm5, %v3532_v5, %v3534_v7 }
  0xac   : > { %5914 = vmatmul.mubr.msk.bf16.gmra.mrb[76].mxu0 %vm309_vm1, %v2476_v36  ;;  %5880 = vmatmul.mubr.msk.bf16.gmra.mrb[76].mxu1 %vm309_vm1, %v1877_v39  ;;  %v3015_v36 = vrot.slane %v6221_v30, 2  ;;  %v6224_v39 = vld [vmem:[%s6366_s22 + $0x30] sm:$0xff]  }
  0xad   : > { %5917 = vmatprep.mubr.msk.bf16.mxu0 %vm309_vm1, %v2485_v40  ;;  %5883 = vmatprep.mubr.msk.bf16.mxu1 %vm309_vm1, %v1879_v43  ;;  %v3014_v40 = vsel %vm3005_vm5, %v3011_v24, %v3013_v35  ;;  %v3524_v46 = vrot.slane %v6224_v39, 2  ;;  %v3033_v39 = vrot.slane %v6239_v34, 2 }
  0xae   : > { %v3016_v43 = vsel %vm3005_vm5, %v3013_v35, %v3015_v36  ;;  %v3018_v57 = vsel %vm3005_vm5, %v3015_v36, %v3017_v15  ;;  %v6757_v35 = vld [vmem:[%s6366_s22 + $0x78] sm:$0xff]  }
  0xaf   : > { %v3525_v49 = vsel %vm3005_vm5, %v3522_v37, %v3524_v46  ;;  %v3527_v51 = vsel %vm3005_vm5, %v3524_v46, %v3526_v47  ;;  %v6244_v47 = vld [vmem:[%s6366_s22 + $0x80] sm:$0xff]  }
  0xb4   : > { %5918 = vmatmul.mubr.msk.bf16.gmra.mrb[80].mxu0 %vm309_vm1, %v2494_v54  ;;  %5884 = vmatmul.mubr.msk.bf16.gmra.mrb[80].mxu1 %vm309_vm1, %v1881_v59  ;;  %v3020_v54 = vsel %vm3005_vm5, %v3017_v15, %v3019_v48  ;;  %v3021_v59 = vrot.slane %v6227_v52, 2  ;;  %v6783_v52 = vld [vmem:[%s6366_s22 + $0x90] sm:$0xff]  }
  0xb5   : > { %5921 = vmatprep.mubr.msk.bf16.mxu0 %vm309_vm1, %v2503_v60  ;;  %5887 = vmatprep.mubr.msk.bf16.mxu1 %vm309_vm1, %v1883_v0  ;;  %v3530_v60 = vrot.slane %v6230_v53, 2  ;;  %v6786_v53 = vld [vmem:[%s6366_s22 + $0x88] sm:$0xff]  }
  0xb6   : > { %v3022_v0 = vsel %vm3005_vm5, %v3019_v48, %v3021_v59  ;;  %v3024_v4 = vsel %vm3005_vm5, %v3021_v59, %v3023_v61  ;;  %v6251_v59 = vld [vmem:[%s6366_s22 + $0x18] sm:$0xff]   ;;  %v3546_v63 = vrot.slane %v6786_v53, 2 }
  0xb7   : > { %v3531_v1 = vsel %vm3005_vm5, %v3528_v58, %v3530_v60  ;;  %v3533_v9 = vsel %vm3005_vm5, %v3530_v60, %v3532_v5  ;;  %v6250_v58 = vld [vmem:[%s6366_s22 + $0x10] sm:$0xfc]   ;;  %v3544_v60 = vrot.slane %v6244_v47, 2  ;;  %v4038_v3 = vshrl.u32 %v6251_v59, 16  ;;  %v6839_v47 = vld [vmem:[%s6366_s22 + $0x18] sm:$0xff]  }
  0xb8   : > { %v4033_v2 = vshll.u32 %v6250_v58, 16  ;;  %v6259_v53 = vld [vmem:[%s6366_s22 + $0x38] sm:$0xff]  }
  0xbc   : > { %5922 = vmatmul.mubr.msk.bf16.gmra.mrb[84].mxu0 %vm309_vm1, %v2512_v10  ;;  %5888 = vmatmul.mubr.msk.bf16.gmra.mrb[84].mxu1 %vm309_vm1, %v1885_v16  ;;  %v6236_v10 = vld [vmem:[%s6366_s22 + $0x60] sm:$0xff]   ;;  %v6235_v16 = vld [vmem:[%s6366_s22 + $0x68] sm:$0xff]  }
  0xbd   : > { %5925 = vmatprep.mubr.msk.bf16.mxu0 %vm309_vm1, %v2521_v17  ;;  %5931 = vmatprep.mubr.msk.bf16.mxu1 %vm309_vm1, %v3008_v11  ;;  %v6238_v17 = vld [vmem:[%s6366_s22 + $0x68] sm:$0xff]   ;;  %v6237_v11 = vld [vmem:[%s6366_s22 + $0x70] sm:$0xff]   ;;  %v3536_v19 = vrot.slane %v6236_v10, 2  ;;  %v3029_v20 = vrot.slane %v6235_v16, 2  ;;  %v6253_v10 = vld [vmem:[%s6366_s22 + $0x20] sm:$0xff]  }
  0xbe   : > { %v3538_v21 = vrot.slane %v6238_v17, 2  ;;  %v3031_v23 = vrot.slane %v6237_v11, 2  ;;  %v6247_v11 = vld [vmem:[%s6366_s22 + $0x98] ss:$0 sps:$4 sm:$0x33]  }
  0xc0   : > { %v3539_v33 = vsel %vm3005_vm5, %v3536_v19, %v3538_v21  ;;  %v3032_v37 = vsel %vm3005_vm5, %v3029_v20, %v3031_v23  ;;  %v3034_v50 = vsel %vm3005_vm5, %v3031_v23, %v3033_v39  ;;  %v4040_v23 = vrot.slane %v4038_v3, 2 }
  0xc4   : > { %5926 = vmatmul.mubr.msk.bf16.gmra.mrb[88].mxu0 %vm309_vm1, %v2530_v25  ;;  %5932 = vmatmul.mubr.msk.bf16.vlgmr.msra.gmra.mrb[88].mxu1 %vm309_vm1, %v3010_v28  ;;  %v3537_v28 = vsel %vm3005_vm5, %v3534_v7, %v3536_v19  ;;  %v6815_v19 = vld [vmem:[%s6366_s22 + $0x98] sm:$0xff]  }
  0xc5   : > { %5969 = vmatprep.mubr.msk.bf16.mxu0 %vm309_vm1, %v3519_v29  ;;  %6006 = vmatpush3.bf16.msra.mxu1 %v4254_v31  ;;  %v6240_v29 = vld [vmem:[%s6366_s22 + $0x70] sm:$0xff]  }
  0xc6   : > { %5935 = vmatprep.mubr.msk.bf16.mxu1 %vm309_vm1, %v3012_v32  ;;  %v3030_v32 = vsel %vm3005_vm5, %v3027_v8, %v3029_v20  ;;  %v3540_v38 = vrot.slane %v6240_v29, 2  ;;  %v3041_v29 = vrot.slane %v6247_v11, 2 }
  0xc8   : > { %v3541_v15 = vsel %vm3005_vm5, %v3538_v21, %v3540_v38 }
  0xcc   : > { %5970 = vmatmul.mubr.msk.bf16.vlgmr.msra.gmra.mrb[92].mxu0 %vm309_vm1, %v3521_v55  ;;  %5936 = vmatmul.mubr.msk.bf16.gmra.mrb[92].mxu1 %vm309_vm1, %v3014_v40  ;;  %v6763_v55 = vld [vmem:[%s6366_s22 + $0x80] sm:$0xff]   ;;  %v3542_v40 = vrot.slane %v6757_v35, 2 }
  0xcd   : > { %6044 = vmatpush3.bf16.msra.mxu0 %v4766_v41  ;;  %5939 = vmatprep.mubr.msk.bf16.mxu1 %vm309_vm1, %v3016_v43  ;;  %v3035_v42 = vrot.slane %v6763_v55, 2  ;;  %v6252_v55 = vld [vmem:[%s6366_s22 + $0xa0] ss:$0 sps:$4 sm:$0x33]  }
  0xce   : > { %5973 = vmatprep.mubr.msk.bf16.mxu0 %vm309_vm1, %v3523_v44  ;;  %v3545_v8 = vsel %vm3005_vm5, %v3542_v40, %v3544_v60 }
  0xcf   : > { %v3036_v56 = vsel %vm3005_vm5, %v3033_v39, %v3035_v42 }
  0xd4   : > { %5974 = vmatmul.mubr.msk.bf16.gmra.mrb[96].mxu0 %vm309_vm1, %v3525_v49  ;;  %5940 = vmatmul.mubr.msk.bf16.gmra.mrb[96].mxu1 %vm309_vm1, %v3018_v57  ;;  %v3543_v57 = vsel %vm3005_vm5, %v3540_v38, %v3542_v40 }
  0xd5   : > { %5977 = vmatprep.mubr.msk.bf16.mxu0 %vm309_vm1, %v3527_v51  ;;  %5943 = vmatprep.mubr.msk.bf16.mxu1 %vm309_vm1, %v3020_v54  ;;  %v6243_v51 = vld [vmem:[%s6366_s22 + $0x88] sm:$0xff]  }
  0xd6   : > { %v3037_v61 = vrot.slane %v6243_v51, 2 }
  0xd8   : > { %v3038_v16 = vsel %vm3005_vm5, %v3035_v42, %v3037_v61 }
  0xdc   : > { %5978 = vmatmul.mubr.msk.bf16.gmra.mrb[100].mxu0 %vm309_vm1, %v3529_v62  ;;  %5944 = vmatmul.mubr.msk.bf16.gmra.mrb[100].mxu1 %vm309_vm1, %v3022_v0  ;;  %v3039_v62 = vrot.slane %v6783_v52, 2  ;;  %v3552_v52 = vrot.slane %v6252_v55, 2 }
  0xdd   : > { %5981 = vmatprep.mubr.msk.bf16.mxu0 %vm309_vm1, %v3531_v1  ;;  %5947 = vmatprep.mubr.msk.bf16.mxu1 %vm309_vm1, %v3024_v4  ;;  %v4030_v1 = vshrl.u32 %v6250_v58, 16  ;;  %v4041_v4 = vshll.u32 %v6251_v59, 16  ;;  %v4675_v58 = vrot.slane %v6839_v47, 3 }
  0xde   : > { %v3040_v17 = vsel %vm3005_vm5, %v3037_v61, %v3039_v62 }
  0xdf   : > { %v4032_v21 = vrot.slane %v4030_v1, 2 }
  0xe4   : > { %5982 = vmatmul.mubr.msk.bf16.gmra.mrb[104].mxu0 %vm309_vm1, %v3533_v9  ;;  %5948 = vmatmul.mubr.msk.bf16.gmra.mrb[104].mxu1 %vm309_vm1, %v3026_v12  ;;  %v6248_v9 = vld [vmem:[%s6366_s22 + $0x90] sm:$0xff]  }
  0xe5   : > { %5985 = vmatprep.mubr.msk.bf16.mxu0 %vm309_vm1, %v3535_v13  ;;  %5951 = vmatprep.mubr.msk.bf16.mxu1 %vm309_vm1, %v3028_v18  ;;  %v3547_v18 = vsel %vm3005_vm5, %v3544_v60, %v3546_v63 }
  0xe7   : > { %v5743_v22 = vpop.f32.mrb[0].mxu0  ;;  %v5763_v24 = vpop.f32.mrb[0].mxu1 }
  0xe8   : > { %548 = vst.msk [vmem:[#allocation2 + $0x10] sm:$0xff] %vm545_vm6, %v5743_v22  ;;  %v402_v25 = vpop.f32.mrb[1].mxu0  ;;  %568 = vst.msk [vmem:[#allocation2 + $0xb0] sm:$0xff] %vm545_vm6, %v5763_v24  ;;  %v482_v26 = vpop.f32.mrb[1].mxu1  ;;  %v4035_v22 = vrot.slane %v4033_v2, 3  ;;  %v4043_v24 = vrot.slane %v4041_v4, 3 }
  0xe9   : > { %546 = vst.msk [vmem:[#allocation2] sm:$0xff] %vm545_vm6, %v402_v25  ;;  %v5744_v27 = vpop.f32.mrb[2].mxu0  ;;  %566 = vst.msk [vmem:[#allocation2 + $0xa0] sm:$0xff] %vm545_vm6, %v482_v26  ;;  %v5764_v30 = vpop.f32.mrb[2].mxu1  ;;  %v6254_v25 = vld [vmem:[%s6366_s22 + $0x28] sm:$0xff]   ;;  %v3548_v26 = vrot.slane %v6248_v9, 2 }
  0xea   : > { %549 = vst.msk [vmem:[#allocation2 + $0x18] sm:$0xff] %vm545_vm6, %v5744_v27  ;;  %v405_v31 = vpop.f32.mrb[3].mxu0  ;;  %569 = vst.msk [vmem:[#allocation2 + $0xb8] sm:$0xff] %vm545_vm6, %v5764_v30  ;;  %v485_v36 = vpop.f32.mrb[3].mxu1  ;;  %v4047_v27 = vshrl.u32 %v6253_v10, 16  ;;  %v3550_v30 = vrot.slane %v6815_v19, 2 }
  0xeb   : > { %547 = vst.msk [vmem:[#allocation2 + $0x8] sm:$0xff] %vm545_vm6, %v405_v31  ;;  %567 = vst.msk [vmem:[#allocation2 + $0xa8] sm:$0xff] %vm545_vm6, %v485_v36  ;;  %v4056_v34 = vshrl.u32 %v6254_v25, 16  ;;  %v4059_v35 = vshll.u32 %v6254_v25, 16  ;;  %v3549_v40 = vsel %vm3005_vm5, %v3546_v63, %v3548_v26  ;;  %v4074_v63 = vshrl.u32 %v6259_v53, 16  ;;  %v6261_v4 = vld [vmem:[%s6366_s22 + $0x40] sm:$0xff]  }
  0xec   : > { %5986 = vmatmul.mubr.msk.bf16.gmra.mrb[108].mxu0 %vm309_vm1, %v3537_v28  ;;  %5952 = vmatmul.mubr.msk.bf16.gmra.mrb[108].mxu1 %vm309_vm1, %v3030_v32  ;;  %v4050_v28 = vshll.u32 %v6253_v10, 16  ;;  %v4036_v32 = vor.u32 %v4035_v22, %v4032_v21  ;;  %v6258_v10 = vld [vmem:[%s6366_s22 + $0x20] sm:$0xff]   ;;  %v6263_v21 = vld [vmem:[%s6366_s22 + $0x48] sm:$0xff]  }
  0xed   : > { %5989 = vmatprep.mubr.msk.bf16.mxu0 %vm309_vm1, %v3539_v33  ;;  %5955 = vmatprep.mubr.msk.bf16.mxu1 %vm309_vm1, %v3032_v37  ;;  %v4044_v33 = vor.u32 %v4043_v24, %v4040_v23  ;;  %v4061_v51 = vrot.slane %v4059_v35, 3  ;;  %v4095_v35 = vshll.u32 %v6263_v21, 16 }
  0xee   : > { %v4052_v42 = vrot.slane %v4050_v28, 3 }
  0xef   : > { %v5747_v41 = vpop.f32.mrb[4].mxu0  ;;  %v5767_v43 = vpop.f32.mrb[4].mxu1  ;;  %v1099_v2 = vld [vmem:[#allocation2 + $0x10] sm:$0xff] }
  0xf0   : > { %552 = vst.msk [vmem:[#allocation2 + $0x30] sm:$0xff] %vm545_vm6, %v5747_v41  ;;  %v418_v44 = vpop.f32.mrb[5].mxu0  ;;  %572 = vst.msk [vmem:[#allocation2 + $0xd0] sm:$0xff] %vm545_vm6, %v5767_v43  ;;  %v498_v45 = vpop.f32.mrb[5].mxu1  ;;  %v4049_v41 = vrot.slane %v4047_v27, 2 }
  0xf1   : > { %550 = vst.msk [vmem:[#allocation2 + $0x20] sm:$0xff] %vm545_vm6, %v418_v44  ;;  %v5748_v46 = vpop.f32.mrb[6].mxu0  ;;  %570 = vst.msk [vmem:[#allocation2 + $0xc0] sm:$0xff] %vm545_vm6, %v498_v45  ;;  %v5768_v48 = vpop.f32.mrb[6].mxu1  ;;  %v3042_v45 = vsel %vm3005_vm5, %v3039_v62, %v3041_v29  ;;  %v4083_v29 = vshrl.u32 %v6261_v4, 16 }
  0xf2   : > { %553 = vst.msk [vmem:[#allocation2 + $0x38] sm:$0xff] %vm545_vm6, %v5748_v46  ;;  %v421_v49 = vpop.f32.mrb[7].mxu0  ;;  %573 = vst.msk [vmem:[#allocation2 + $0xd8] sm:$0xff] %vm545_vm6, %v5768_v48  ;;  %v501_v54 = vpop.f32.mrb[7].mxu1  ;;  %v3551_v46 = vsel %vm3005_vm5, %v3548_v26, %v3550_v30  ;;  %v6257_v48 = vld [vmem:[%s6366_s22 + $0x30] sm:$0xff]   ;;  %v1098_v24 = vld [vmem:[#allocation2 + $0x8] sm:$0xff] }
  0xf3   : > { %551 = vst.msk [vmem:[#allocation2 + $0x28] sm:$0xff] %vm545_vm6, %v421_v49  ;;  %571 = vst.msk [vmem:[#allocation2 + $0xc8] sm:$0xff] %vm545_vm6, %v501_v54  ;;  %v4053_v54 = vor.u32 %v4052_v42, %v4049_v41  ;;  %v4065_v59 = vshrl.u32 %v6257_v48, 16  ;;  %v4068_v60 = vshll.u32 %v6257_v48, 16  ;;  %v4076_v26 = vrot.slane %v4074_v63, 2  ;;  %v6883_v41 = vld [vmem:[%s6366_s22 + $0x30] sm:$0xff]  }
  0xf4   : > { %5990 = vmatmul.mubr.msk.bf16.gmra.mrb[112].mxu0 %vm309_vm1, %v3541_v15  ;;  %5956 = vmatmul.mubr.msk.bf16.gmra.mrb[112].mxu1 %vm309_vm1, %v3034_v50  ;;  %v6255_v15 = vld [vmem:[%s6366_s22 + $0x10] sm:$0xf8]   ;;  %v4045_v50 = vsel %vm4028_vm7, %v4036_v32, %v4044_v33  ;;  %v4086_v32 = vshll.u32 %v6261_v4, 16 }
  0xf5   : > { %5993 = vmatprep.mubr.msk.bf16.mxu0 %vm309_vm1, %v3543_v57  ;;  %5959 = vmatprep.mubr.msk.bf16.mxu1 %vm309_vm1, %v3036_v56  ;;  %v4058_v57 = vrot.slane %v4056_v34, 2  ;;  %v4674_v56 = vrot.slane %v6255_v15, 3  ;;  %v4054_v9 = vsel %vm4028_vm7, %v4044_v33, %v4053_v54  ;;  %v4067_v19 = vrot.slane %v4065_v59, 2 }
  0xf6   : > { %v4092_v34 = vshrl.u32 %v6263_v21, 16  ;;  %v4088_v48 = vrot.slane %v4086_v32, 3  ;;  %v4097_v59 = vrot.slane %v4095_v35, 3  ;;  %v6269_v32 = vld [vmem:[%s6366_s22 + $0x60] sm:$0xff]  }
  0xf7   : > { %v5751_v0 = vpop.f32.mrb[8].mxu0  ;;  %v5771_v14 = vpop.f32.mrb[8].mxu1  ;;  %v6852_v62 = vor.u32 %v4061_v51, %v4058_v57  ;;  %v4676_v11 = vsel %vm4673_vm8, %v4674_v56, %v4675_v58 }
  0xf8   : > { %556 = vst.msk [vmem:[#allocation2 + $0x50] sm:$0xff] %vm545_vm6, %v5751_v0  ;;  %v434_v5 = vpop.f32.mrb[9].mxu0  ;;  %576 = vst.msk [vmem:[#allocation2 + $0xf0] sm:$0xff] %vm545_vm6, %v5771_v14  ;;  %v514_v6 = vpop.f32.mrb[9].mxu1  ;;  %v4077_v0 = vshll.u32 %v6259_v53, 16  ;;  %v4094_v47 = vrot.slane %v4092_v34, 2 }
  0xf9   : > { %554 = vst.msk [vmem:[#allocation2 + $0x40] sm:$0xff] %vm545_vm6, %v434_v5  ;;  %v5752_v7 = vpop.f32.mrb[10].mxu0  ;;  %574 = vst.msk [vmem:[#allocation2 + $0xe0] sm:$0xff] %vm545_vm6, %v514_v6  ;;  %v5772_v12 = vpop.f32.mrb[10].mxu1  ;;  %v1097_v6 = vld [vmem:[#allocation2] sm:$0xff]  ;;  %v4063_v25 = vsel %vm4028_vm7, %v4053_v54, %v6852_v62 }
  0xfa   : > { %557 = vst.msk [vmem:[#allocation2 + $0x58] sm:$0xff] %vm545_vm6, %v5752_v7  ;;  %v437_v13 = vpop.f32.mrb[11].mxu0  ;;  %577 = vst.msk [vmem:[#allocation2 + $0xf8] sm:$0xff] %vm545_vm6, %v5772_v12  ;;  %v517_v20 = vpop.f32.mrb[11].mxu1  ;;  %v6861_v12 = vld [vmem:[%s6366_s22 + $0x28] sm:$0xff]   ;;  %v4079_v27 = vrot.slane %v4077_v0, 3 }
  0xfb   : > { %555 = vst.msk [vmem:[#allocation2 + $0x48] sm:$0xff] %vm545_vm6, %v437_v13  ;;  %575 = vst.msk [vmem:[#allocation2 + $0xe8] sm:$0xff] %vm545_vm6, %v517_v20  ;;  %v4070_v20 = vrot.slane %v4068_v60, 3  ;;  %v1102_v0 = vld [vmem:[#allocation2 + $0x28] sm:$0xff] }
  0xfc   : > { %5994 = vmatmul.mubr.msk.bf16.gmra.mrb[116].mxu0 %vm309_vm1, %v3545_v8  ;;  %5960 = vmatmul.mubr.msk.bf16.gmra.mrb[116].mxu1 %vm309_vm1, %v3038_v16  ;;  %v3553_v8 = vsel %vm3005_vm5, %v3550_v30, %v3552_v52  ;;  %v4677_v30 = vrot.slane %v6258_v10, 3  ;;  %v1104_v52 = vld [vmem:[#allocation2 + $0x38] sm:$0xff] }
  0xfd   : > { %5997 = vmatprep.mubr.msk.bf16.mxu0 %vm309_vm1, %v3547_v18  ;;  %5963 = vmatprep.mubr.msk.bf16.mxu1 %vm309_vm1, %v3040_v17  ;;  %v1100_v17 = vld [vmem:[#allocation2 + $0x18] sm:$0xff]  ;;  %v4071_v33 = vor.u32 %v4070_v20, %v4067_v19 }
  0xff   : > { %v5755_v31 = vpop.f32.mrb[12].mxu0  ;;  %v5775_v36 = vpop.f32.mrb[12].mxu1  ;;  %v4072_v56 = vsel %vm4028_vm7, %v6852_v62, %v4071_v33  ;;  %v1107_v20 = vld [vmem:[#allocation2 + $0x50] sm:$0xff] }
 0x100   : > { %560 = vst.msk [vmem:[#allocation2 + $0x70] sm:$0xff] %vm545_vm6, %v5755_v31  ;;  %v450_v37 = vpop.f32.mrb[13].mxu0  ;;  %580 = vst.msk [vmem:[#allocation2 + $0x110] sm:$0xff] %vm545_vm6, %v5775_v36  ;;  %v530_v38 = vpop.f32.mrb[13].mxu1  ;;  %v4679_v31 = vrot.slane %v6861_v12, 3 }
 0x101   : > { %558 = vst.msk [vmem:[#allocation2 + $0x60] sm:$0xff] %vm545_vm6, %v450_v37  ;;  %v5756_v39 = vpop.f32.mrb[14].mxu0  ;;  %578 = vst.msk [vmem:[#allocation2 + $0x100] sm:$0xff] %vm545_vm6, %v530_v38  ;;  %v5776_v43 = vpop.f32.mrb[14].mxu1  ;;  %v6880_v37 = vor.u32 %v4079_v27, %v4076_v26  ;;  %v1103_v38 = vld [vmem:[#allocation2 + $0x30] sm:$0xff]  ;;  %v1105_v26 = vld [vmem:[#allocation2 + $0x40] sm:$0xff] }
 0x102   : > { %561 = vst.msk [vmem:[#allocation2 + $0x78] sm:$0xff] %vm545_vm6, %v5756_v39  ;;  %v453_v44 = vpop.f32.mrb[15].mxu0  ;;  %581 = vst.msk [vmem:[#allocation2 + $0x118] sm:$0xff] %vm545_vm6, %v5776_v43  ;;  %v533_v49 = vpop.f32.mrb[15].mxu1  ;;  %v4680_v15 = vsel %vm4673_vm8, %v4677_v30, %v4679_v31 }
 0x103   : > { %559 = vst.msk [vmem:[#allocation2 + $0x68] sm:$0xff] %vm545_vm6, %v453_v44  ;;  %579 = vst.msk [vmem:[#allocation2 + $0x108] sm:$0xff] %vm545_vm6, %v533_v49  ;;  %v1101_v44 = vld [vmem:[#allocation2 + $0x20] sm:$0xff]  ;;  %v6892_v49 = vld [vmem:[%s6366_s22 + $0x38] sm:$0xff]  }
 0x104   : > { %5998 = vmatmul.mubr.msk.bf16.gmra.mrb[120].mxu0 %vm309_vm1, %v3549_v40  ;;  %5964 = vmatmul.mubr.msk.bf16.gmra.mrb[120].mxu1 %vm309_vm1, %v3042_v45  ;;  %v4085_v40 = vrot.slane %v4083_v29, 2 }
 0x105   : > { %6001 = vmatprep.mubr.msk.bf16.mxu0 %vm309_vm1, %v3551_v46  ;;  %6007 = vmatprep.mubr.msk.bf16.mxu1 %vm309_vm1, %v4045_v50  ;;  %v4678_v46 = vsel %vm4673_vm8, %v4675_v58, %v4677_v30  ;;  %v6265_v50 = vld [vmem:[%s6366_s22 + $0x50] sm:$0xff]  }
 0x106   : > { %v4089_v10 = vor.u32 %v4088_v48, %v4085_v40  ;;  %v6271_v40 = vld [vmem:[%s6366_s22 + $0x68] sm:$0xff]  }
 0x107   : > { %v5759_v61 = vpop.f32.mrb[16].mxu0  ;;  %v5781_v1 = vpop.f32.mrb[16].mxu1 }
 0x108   : > { %564 = vst.msk [vmem:[#allocation2 + $0x90] sm:$0xff] %vm545_vm6, %v5759_v61  ;;  %v466_v3 = vpop.f32.mrb[17].mxu0  ;;  %v1135_v14 = vadd.f32 %v5781_v1, %v1099_v2  ;;  %v954_v5 = vpop.f32.mrb[17].mxu1  ;;  %v4081_v1 = vsel %vm4028_vm7, %v4071_v33, %v6880_v37  ;;  %v6267_v2 = vld [vmem:[%s6366_s22 + $0x58] sm:$0xff]  }
 0x109   : > { %562 = vst.msk [vmem:[#allocation2 + $0x80] sm:$0xff] %vm545_vm6, %v466_v3  ;;  %v5760_v7 = vpop.f32.mrb[18].mxu0  ;;  %v1133_v13 = vadd.f32 %v1097_v6, %v954_v5  ;;  %v5782_v16 = vpop.f32.mrb[18].mxu1  ;;  %v4681_v6 = vrot.slane %v6883_v41, 3 }
 0x10a   : > { %565 = vst.msk [vmem:[#allocation2 + $0x98] sm:$0xff] %vm545_vm6, %v5760_v7  ;;  %v469_v18 = vpop.f32.mrb[19].mxu0  ;;  %1171 = vst.msk [vmem:[#allocation2 + $0x10] sm:$0xff] %vm545_vm6, %v1135_v14  ;;  %v1136_v22 = vadd.f32 %v5782_v16, %v1100_v17  ;;  %v957_v23 = vpop.f32.mrb[19].mxu1  ;;  %v4101_v7 = vshrl.u32 %v6265_v50, 16  ;;  %v4683_v16 = vrot.slane %v6892_v49, 3 }
 0x10b   : > { %563 = vst.msk [vmem:[#allocation2 + $0x88] sm:$0xff] %vm545_vm6, %v469_v18  ;;  %1169 = vst.msk [vmem:[#allocation2] sm:$0xff] %vm545_vm6, %v1133_v13  ;;  %v1134_v28 = vadd.f32 %v1098_v24, %v957_v23  ;;  %v6911_v13 = vor.u32 %v4097_v59, %v4094_v47  ;;  %v4110_v18 = vshrl.u32 %v6267_v2, 16  ;;  %v6920_v23 = vld [vmem:[%s6366_s22 + $0x48] sm:$0xff]   ;;  %v4128_v59 = vshrl.u32 %v6271_v40, 16 }
 0x10c   : > { %6002 = vmatmul.mubr.msk.bf16.gmra.mrb[124].mxu0 %vm309_vm1, %v3553_v8  ;;  %1172 = vst.msk [vmem:[#allocation2 + $0x18] sm:$0xff] %vm545_vm6, %v1136_v22  ;;  %6008 = vmatmul.mubr.msk.bf16.vlgmr.msra.gmra.mrb[124].mxu1 %vm309_vm1, %v4054_v9  ;;  %v4104_v8 = vshll.u32 %v6265_v50, 16  ;;  %v6917_v22 = vld [vmem:[%s6366_s22 + $0x40] sm:$0xff]   ;;  %v4103_v29 = vrot.slane %v4101_v7, 2  ;;  %v4684_v12 = vsel %vm4673_vm8, %v4681_v6, %v4683_v16  ;;  %v4687_v47 = vrot.slane %v6920_v23, 3 }
 0x10d   : > { %6045 = vmatprep.mubr.msk.bf16.mxu0 %vm309_vm1, %v4676_v11  ;;  %1170 = vst.msk [vmem:[#allocation2 + $0x8] sm:$0xff] %vm545_vm6, %v1134_v28  ;;  %6011 = vmatprep.mubr.msk.bf16.mxu1 %vm309_vm1, %v4063_v25  ;;  %v4113_v11 = vshll.u32 %v6267_v2, 16  ;;  %v4682_v28 = vsel %vm4673_vm8, %v4679_v31, %v4681_v6  ;;  %v4685_v50 = vrot.slane %v6917_v22, 3 }
 0x10e   : > { %v4106_v30 = vrot.slane %v4104_v8, 3 }
 0x10f   : > { %v5819_v36 = vpop.f32.mrb[20].mxu0  ;;  %v5785_v55 = vpop.f32.mrb[20].mxu1  ;;  %v4686_v2 = vsel %vm4673_vm8, %v4683_v16, %v4685_v50  ;;  %v1112_v16 = vld [vmem:[#allocation2 + $0x78] sm:$0xff] }
 0x110   : > { %v1466_v39 = vpop.f32.mrb[21].mxu0  ;;  %v1139_v42 = vadd.f32 %v5785_v55, %v1103_v38  ;;  %v970_v43 = vpop.f32.mrb[21].mxu1  ;;  %v4090_v38 = vsel %vm4028_vm7, %v6880_v37, %v4089_v10 }
 0x111   : > { %v5820_v45 = vpop.f32.mrb[22].mxu0  ;;  %v1611_v57 = vld [vmem:[#allocation2 + $0x10] sm:$0xff]  ;;  %v1137_v51 = vadd.f32 %v1101_v44, %v970_v43  ;;  %v5786_v53 = vpop.f32.mrb[22].mxu1  ;;  %v1106_v44 = vld [vmem:[#allocation2 + $0x48] sm:$0xff] }
 0x112   : > { %v1469_v54 = vpop.f32.mrb[23].mxu0  ;;  %1175 = vst.msk [vmem:[#allocation2 + $0x30] sm:$0xff] %vm545_vm6, %v1139_v42  ;;  %v1647_v58 = vadd.f32 %v5819_v36, %v1611_v57  ;;  %v1609_v60 = vld [vmem:[#allocation2] sm:$0xff]  ;;  %v1140_v61 = vadd.f32 %v5786_v53, %v1104_v52  ;;  %v973_v63 = vpop.f32.mrb[23].mxu1  ;;  %v1108_v36 = vld [vmem:[#allocation2 + $0x58] sm:$0xff]  ;;  %v4107_v53 = vor.u32 %v4106_v30, %v4103_v29  ;;  %v4119_v52 = vshrl.u32 %v6269_v32, 16 }
 0x113   : > { %1173 = vst.msk [vmem:[#allocation2 + $0x20] sm:$0xff] %vm545_vm6, %v1137_v51  ;;  %v1645_v3 = vadd.f32 %v1609_v60, %v1466_v39  ;;  %v1612_v4 = vld [vmem:[#allocation2 + $0x18] sm:$0xff]  ;;  %v1138_v14 = vadd.f32 %v1102_v0, %v973_v63  ;;  %v4099_v39 = vsel %vm4028_vm7, %v4089_v10, %v6911_v13  ;;  %v1111_v0 = vld [vmem:[#allocation2 + $0x70] sm:$0xff] }
 0x114   : > { %6046 = vmatmul.mubr.msk.bf16.vlgmr.msra.gmra.mrb[128].mxu0 %vm309_vm1, %v4678_v46  ;;  %1683 = vst.msk [vmem:[#allocation2 + $0x10] sm:$0xff] %vm545_vm6, %v1647_v58  ;;  %1176 = vst.msk [vmem:[#allocation2 + $0x38] sm:$0xff] %vm545_vm6, %v1140_v61  ;;  %v1648_v62 = vadd.f32 %v5820_v45, %v1612_v4  ;;  %v1610_v5 = vld [vmem:[#allocation2 + $0x8] sm:$0xff]  ;;  %6012 = vmatmul.mubr.msk.bf16.gmra.mrb[128].mxu1 %vm309_vm1, %v4072_v56  ;;  %v4112_v45 = vrot.slane %v4110_v18, 2  ;;  %v4115_v46 = vrot.slane %v4113_v11, 3  ;;  %v4131_v58 = vshll.u32 %v6271_v40, 16 }
 0x115   : > { %6049 = vmatprep.mubr.msk.bf16.mxu0 %vm309_vm1, %v4680_v15  ;;  %1681 = vst.msk [vmem:[#allocation2] sm:$0xff] %vm545_vm6, %v1645_v3  ;;  %1174 = vst.msk [vmem:[#allocation2 + $0x28] sm:$0xff] %vm545_vm6, %v1138_v14  ;;  %v1646_v9 = vadd.f32 %v1610_v5, %v1469_v54  ;;  %6015 = vmatprep.mubr.msk.bf16.mxu1 %vm309_vm1, %v4081_v1  ;;  %v4122_v54 = vshll.u32 %v6269_v32, 16  ;;  %v6954_v3 = vld [vmem:[%s6366_s22 + $0x50] sm:$0xff]   ;;  %v6957_v4 = vld [vmem:[%s6366_s22 + $0x58] sm:$0xff]   ;;  %v4108_v7 = vsel %vm4028_vm7, %v6911_v13, %v4107_v53 }
 0x116   : > { %1684 = vst.msk [vmem:[#allocation2 + $0x18] sm:$0xff] %vm545_vm6, %v1648_v62  ;;  %v6947_v61 = vor.u32 %v4115_v46, %v4112_v45  ;;  %v1109_v5 = vld [vmem:[#allocation2 + $0x60] sm:$0xff]  ;;  %v4121_v8 = vrot.slane %v4119_v52, 2  ;;  %v6962_v10 = vld [vmem:[%s6366_s22 + $0x70] sm:$0xff]   ;;  %v6998_v52 = vld [vmem:[%s6366_s22 + $0x68] sm:$0xff]  }
 0x117   : > { %v5823_v17 = vpop.f32.mrb[24].mxu0  ;;  %1682 = vst.msk [vmem:[#allocation2 + $0x8] sm:$0xff] %vm545_vm6, %v1646_v9  ;;  %v5789_v19 = vpop.f32.mrb[24].mxu1  ;;  %v4124_v9 = vrot.slane %v4122_v54, 3  ;;  %v4140_v40 = vshll.u32 %v6962_v10, 16  ;;  %v6989_v46 = vld [vmem:[%s6366_s22 + $0x60] sm:$0xff]  }
 0x118   : > { %v1482_v21 = vpop.f32.mrb[25].mxu0  ;;  %v1143_v24 = vadd.f32 %v5789_v19, %v1107_v20  ;;  %v986_v25 = vpop.f32.mrb[25].mxu1  ;;  %v4688_v19 = vsel %vm4673_vm8, %v4685_v50, %v4687_v47  ;;  %v4130_v20 = vrot.slane %v4128_v59, 2  ;;  %v6277_v54 = vld [vmem:[%s6366_s22 + $0x80] sm:$0xff]  }
 0x119   : > { %v5824_v27 = vpop.f32.mrb[26].mxu0  ;;  %v1615_v33 = vld [vmem:[#allocation2 + $0x30] sm:$0xff]  ;;  %v1141_v34 = vadd.f32 %v1105_v26, %v986_v25  ;;  %v5790_v35 = vpop.f32.mrb[26].mxu1  ;;  %v1110_v26 = vld [vmem:[#allocation2 + $0x68] sm:$0xff] }
 0x11a   : > { %v1485_v55 = vpop.f32.mrb[27].mxu0  ;;  %1179 = vst.msk [vmem:[#allocation2 + $0x50] sm:$0xff] %vm545_vm6, %v1143_v24  ;;  %v1651_v31 = vadd.f32 %v5823_v17, %v1615_v33  ;;  %v1613_v41 = vld [vmem:[#allocation2 + $0x20] sm:$0xff]  ;;  %v1144_v42 = vadd.f32 %v5790_v35, %v1108_v36  ;;  %v989_v43 = vpop.f32.mrb[27].mxu1  ;;  %v4689_v35 = vrot.slane %v6954_v3, 3  ;;  %v4691_v36 = vrot.slane %v6957_v4, 3 }
 0x11b   : > { %1177 = vst.msk [vmem:[#allocation2 + $0x40] sm:$0xff] %vm545_vm6, %v1141_v34  ;;  %v1649_v37 = vadd.f32 %v1613_v41, %v1482_v21  ;;  %v1616_v15 = vld [vmem:[#allocation2 + $0x38] sm:$0xff]  ;;  %v1142_v48 = vadd.f32 %v1106_v44, %v989_v43  ;;  %v4133_v21 = vrot.slane %v4131_v58, 3  ;;  %v1115_v44 = vld [vmem:[#allocation2 + $0x90] sm:$0xff] }
 0x11c   : > { %6050 = vmatmul.mubr.msk.bf16.gmra.mrb[132].mxu0 %vm309_vm1, %v4682_v28  ;;  %1687 = vst.msk [vmem:[#allocation2 + $0x30] sm:$0xff] %vm545_vm6, %v1651_v31  ;;  %1180 = vst.msk [vmem:[#allocation2 + $0x58] sm:$0xff] %vm545_vm6, %v1144_v42  ;;  %v1652_v57 = vadd.f32 %v5824_v27, %v1616_v15  ;;  %v1614_v51 = vld [vmem:[#allocation2 + $0x28] sm:$0xff]  ;;  %6016 = vmatmul.mubr.msk.bf16.gmra.mrb[132].mxu1 %vm309_vm1, %v4090_v38  ;;  %v4117_v27 = vsel %vm4028_vm7, %v4107_v53, %v6947_v61  ;;  %v6275_v28 = vld [vmem:[%s6366_s22 + $0x78] sm:$0xff]  }
 0x11d   : > { %6053 = vmatprep.mubr.msk.bf16.mxu0 %vm309_vm1, %v4684_v12  ;;  %1685 = vst.msk [vmem:[#allocation2 + $0x20] sm:$0xff] %vm545_vm6, %v1649_v37  ;;  %1178 = vst.msk [vmem:[#allocation2 + $0x48] sm:$0xff] %vm545_vm6, %v1142_v48  ;;  %v1650_v56 = vadd.f32 %v1614_v51, %v1485_v55  ;;  %6019 = vmatprep.mubr.msk.bf16.mxu1 %vm309_vm1, %v4099_v39  ;;  %v4137_v55 = vshrl.u32 %v6962_v10, 16  ;;  %v4125_v39 = vor.u32 %v4124_v9, %v4121_v8  ;;  %v1113_v48 = vld [vmem:[#allocation2 + $0x80] sm:$0xff] }
 0x11e   : > { %1688 = vst.msk [vmem:[#allocation2 + $0x38] sm:$0xff] %vm545_vm6, %v1652_v57  ;;  %v6983_v12 = vor.u32 %v4133_v21, %v4130_v20  ;;  %v4146_v41 = vshrl.u32 %v6275_v28, 16  ;;  %v4149_v42 = vshll.u32 %v6275_v28, 16  ;;  %v4690_v57 = vsel %vm4673_vm8, %v4687_v47, %v4689_v35 }
 0x11f   : > { %v5827_v60 = vpop.f32.mrb[28].mxu0  ;;  %1686 = vst.msk [vmem:[#allocation2 + $0x28] sm:$0xff] %vm545_vm6, %v1650_v56  ;;  %v5793_v63 = vpop.f32.mrb[28].mxu1  ;;  %v4692_v51 = vsel %vm4673_vm8, %v4689_v35, %v4691_v36  ;;  %v4139_v53 = vrot.slane %v4137_v55, 2  ;;  %v4142_v47 = vrot.slane %v4140_v40, 3  ;;  %v7033_v40 = vld [vmem:[%s6366_s22 + $0x78] sm:$0xff]  }
 0x120   : > { %v1498_v1 = vpop.f32.mrb[29].mxu0  ;;  %v1147_v14 = vadd.f32 %v5793_v63, %v1111_v0  ;;  %v1002_v62 = vpop.f32.mrb[29].mxu1  ;;  %v4126_v0 = vsel %vm4028_vm7, %v6947_v61, %v4125_v39  ;;  %v4135_v23 = vsel %vm4028_vm7, %v4125_v39, %v6983_v12  ;;  %v4693_v61 = vrot.slane %v6989_v46, 3 }
 0x121   : > { %v5828_v6 = vpop.f32.mrb[30].mxu0  ;;  %v1619_v17 = vld [vmem:[#allocation2 + $0x50] sm:$0xff]  ;;  %v1145_v49 = vadd.f32 %v1109_v5, %v1002_v62  ;;  %v5794_v18 = vpop.f32.mrb[30].mxu1  ;;  %v1114_v5 = vld [vmem:[#allocation2 + $0x88] sm:$0xff]  ;;  %v4143_v20 = vor.u32 %v4142_v47, %v4139_v53 }
 0x122   : > { %v1501_v11 = vpop.f32.mrb[31].mxu0  ;;  %1183 = vst.msk [vmem:[#allocation2 + $0x70] sm:$0xff] %vm545_vm6, %v1147_v14  ;;  %v1655_v22 = vadd.f32 %v5827_v60, %v1619_v17  ;;  %v1617_v13 = vld [vmem:[#allocation2 + $0x40] sm:$0xff]  ;;  %v1148_v24 = vadd.f32 %v5794_v18, %v1112_v16  ;;  %v1005_v25 = vpop.f32.mrb[31].mxu1  ;;  %v1116_v60 = vld [vmem:[#allocation2 + $0x98] sm:$0xff]  ;;  %v4695_v18 = vrot.slane %v6998_v52, 3  ;;  %v4694_v28 = vsel %vm4673_vm8, %v4691_v36, %v4693_v61 }
 0x123   : > { %1181 = vst.msk [vmem:[#allocation2 + $0x60] sm:$0xff] %vm545_vm6, %v1145_v49  ;;  %v1653_v29 = vadd.f32 %v1617_v13, %v1498_v1  ;;  %v1620_v30 = vld [vmem:[#allocation2 + $0x58] sm:$0xff]  ;;  %v1146_v32 = vadd.f32 %v1110_v26, %v1005_v25  ;;  %v6279_v1 = vld [vmem:[%s6366_s22 + $0x88] sm:$0xff]   ;;  %v4155_v16 = vshrl.u32 %v6277_v54, 16  ;;  %v1119_v26 = vld [vmem:[#allocation2 + $0xb0] sm:$0xff] }
 0x124   : > { %6054 = vmatmul.mubr.msk.bf16.gmra.mrb[136].mxu0 %vm309_vm1, %v4686_v2  ;;  %1691 = vst.msk [vmem:[#allocation2 + $0x50] sm:$0xff] %vm545_vm6, %v1655_v22  ;;  %1184 = vst.msk [vmem:[#allocation2 + $0x78] sm:$0xff] %vm545_vm6, %v1148_v24  ;;  %v1656_v33 = vadd.f32 %v5828_v6, %v1620_v30  ;;  %v1618_v34 = vld [vmem:[#allocation2 + $0x48] sm:$0xff]  ;;  %6020 = vmatmul.mubr.msk.bf16.gmra.mrb[136].mxu1 %vm309_vm1, %v4108_v7  ;;  %v4148_v6 = vrot.slane %v4146_v41, 2  ;;  %v4151_v7 = vrot.slane %v4149_v42, 3  ;;  %v4164_v21 = vshrl.u32 %v6279_v1, 16 }
 0x125   : > { %6057 = vmatprep.mubr.msk.bf16.mxu0 %vm309_vm1, %v4688_v19  ;;  %1689 = vst.msk [vmem:[#allocation2 + $0x40] sm:$0xff] %vm545_vm6, %v1653_v29  ;;  %1182 = vst.msk [vmem:[#allocation2 + $0x68] sm:$0xff] %vm545_vm6, %v1146_v32  ;;  %v1654_v38 = vadd.f32 %v1618_v34, %v1501_v11  ;;  %6023 = vmatprep.mubr.msk.bf16.mxu1 %vm309_vm1, %v4117_v27  ;;  %v4158_v11 = vshll.u32 %v6277_v54, 16  ;;  %v4167_v22 = vshll.u32 %v6279_v1, 16  ;;  %v7026_v29 = vld [vmem:[%s6366_s22 + $0x70] sm:$0xff]   ;;  %v1117_v34 = vld [vmem:[#allocation2 + $0xa0] sm:$0xff] }
 0x126   : > { %1692 = vst.msk [vmem:[#allocation2 + $0x58] sm:$0xff] %vm545_vm6, %v1656_v33  ;;  %v7019_v24 = vor.u32 %v4151_v7, %v4148_v6  ;;  %v6281_v30 = vld [vmem:[%s6366_s22 + $0x90] sm:$0xff]   ;;  %v4696_v55 = vsel %vm4673_vm8, %v4693_v61, %v4695_v18  ;;  %v1120_v36 = vld [vmem:[#allocation2 + $0xb8] sm:$0xff]  ;;  %v4699_v1 = vrot.slane %v7033_v40, 3 }
 0x127   : > { %v5831_v31 = vpop.f32.mrb[32].mxu0  ;;  %1690 = vst.msk [vmem:[#allocation2 + $0x48] sm:$0xff] %vm545_vm6, %v1654_v38  ;;  %v5797_v43 = vpop.f32.mrb[32].mxu1  ;;  %v4157_v38 = vrot.slane %v4155_v16, 2  ;;  %v4160_v39 = vrot.slane %v4158_v11, 3 }
 0x128   : > { %v1514_v45 = vpop.f32.mrb[33].mxu0  ;;  %v1151_v37 = vadd.f32 %v5797_v43, %v1115_v44  ;;  %v1018_v15 = vpop.f32.mrb[33].mxu1  ;;  %v4144_v43 = vsel %vm4028_vm7, %v6983_v12, %v4143_v20  ;;  %v4166_v44 = vrot.slane %v4164_v21, 2  ;;  %v4173_v12 = vshrl.u32 %v6281_v30, 16 }
 0x129   : > { %v5832_v50 = vpop.f32.mrb[34].mxu0  ;;  %v1623_v56 = vld [vmem:[#allocation2 + $0x70] sm:$0xff]  ;;  %v1149_v59 = vadd.f32 %v1113_v48, %v1018_v15  ;;  %v5798_v58 = vpop.f32.mrb[34].mxu1  ;;  %v6285_v11 = vld [vmem:[%s6366_s22 + $0xa0] ss:$0 sps:$4 sm:$0x77]  }
 0x12a   : > { %v1517_v63 = vpop.f32.mrb[35].mxu0  ;;  %1187 = vst.msk [vmem:[#allocation2 + $0x90] sm:$0xff] %vm545_vm6, %v1151_v37  ;;  %v1659_v2 = vadd.f32 %v5831_v31, %v1623_v56  ;;  %v1621_v3 = vld [vmem:[#allocation2 + $0x60] sm:$0xff]  ;;  %v1152_v14 = vadd.f32 %v5798_v58, %v1116_v60  ;;  %v1021_v62 = vpop.f32.mrb[35].mxu1  ;;  %v4175_v7 = vrot.slane %v4173_v12, 2  ;;  %v7096_v12 = vld [vmem:[%s6366_s22 + $0x98] sm:$0xff]  }
 0x12b   : > { %1185 = vst.msk [vmem:[#allocation2 + $0x80] sm:$0xff] %vm545_vm6, %v1149_v59  ;;  %v1657_v8 = vadd.f32 %v1621_v3, %v1514_v45  ;;  %v1624_v9 = vld [vmem:[#allocation2 + $0x78] sm:$0xff]  ;;  %v1150_v10 = vadd.f32 %v1114_v5, %v1021_v62  ;;  %v4169_v45 = vrot.slane %v4167_v22, 3  ;;  %v4176_v59 = vshll.u32 %v6281_v30, 16  ;;  %v1123_v5 = vld [vmem:[#allocation2 + $0xd0] sm:$0xff] }
 0x12c   : > { %6058 = vmatmul.mubr.msk.bf16.gmra.mrb[140].mxu0 %vm309_vm1, %v4690_v57  ;;  %1695 = vst.msk [vmem:[#allocation2 + $0x70] sm:$0xff] %vm545_vm6, %v1659_v2  ;;  %1188 = vst.msk [vmem:[#allocation2 + $0x98] sm:$0xff] %vm545_vm6, %v1152_v14  ;;  %v1660_v17 = vadd.f32 %v5832_v50, %v1624_v9  ;;  %v1622_v49 = vld [vmem:[#allocation2 + $0x68] sm:$0xff]  ;;  %6024 = vmatmul.mubr.msk.bf16.gmra.mrb[140].mxu1 %vm309_vm1, %v4126_v0  ;;  %v4153_v57 = vsel %vm4028_vm7, %v4143_v20, %v7019_v24  ;;  %v7057_v9 = vld [vmem:[%s6366_s22 + $0x80] sm:$0xff]  }
 0x12d   : > { %6061 = vmatprep.mubr.msk.bf16.mxu0 %vm309_vm1, %v4692_v51  ;;  %1693 = vst.msk [vmem:[#allocation2 + $0x60] sm:$0xff] %vm545_vm6, %v1657_v8  ;;  %1186 = vst.msk [vmem:[#allocation2 + $0x88] sm:$0xff] %vm545_vm6, %v1150_v10  ;;  %v1658_v19 = vadd.f32 %v1622_v49, %v1517_v63  ;;  %6027 = vmatprep.mubr.msk.bf16.mxu1 %vm309_vm1, %v4135_v23  ;;  %v1118_v50 = vld [vmem:[#allocation2 + $0xa8] sm:$0xff]  ;;  %v6283_v51 = vld [vmem:[%s6366_s22 + $0x98] sm:$0xff]   ;;  %v4697_v63 = vrot.slane %v7026_v29, 3  ;;  %v4161_v23 = vor.u32 %v4160_v39, %v4157_v38 }
 0x12e   : > { %1696 = vst.msk [vmem:[#allocation2 + $0x78] sm:$0xff] %vm545_vm6, %v1660_v17  ;;  %v7051_v47 = vor.u32 %v4169_v45, %v4166_v44  ;;  %v4182_v3 = vshrl.u32 %v6283_v51, 16  ;;  %v4185_v14 = vshll.u32 %v6283_v51, 16  ;;  %v4178_v8 = vrot.slane %v4176_v59, 3  ;;  %v1121_v17 = vld [vmem:[#allocation2 + $0xc0] sm:$0xff]  ;;  %v1124_v22 = vld [vmem:[#allocation2 + $0xd8] sm:$0xff] }
 0x12f   : > { %v5835_v13 = vpop.f32.mrb[36].mxu0  ;;  %1694 = vst.msk [vmem:[#allocation2 + $0x68] sm:$0xff] %vm545_vm6, %v1658_v19  ;;  %v5801_v25 = vpop.f32.mrb[36].mxu1  ;;  %v4698_v16 = vsel %vm4673_vm8, %v4695_v18, %v4697_v63 }
 0x130   : > { %v1530_v27 = vpop.f32.mrb[37].mxu0  ;;  %v1155_v32 = vadd.f32 %v5801_v25, %v1119_v26  ;;  %v1034_v33 = vpop.f32.mrb[37].mxu1  ;;  %v4162_v25 = vsel %vm4028_vm7, %v7019_v24, %v4161_v23  ;;  %v4171_v26 = vsel %vm4028_vm7, %v4161_v23, %v7051_v47 }
 0x131   : > { %v5836_v35 = vpop.f32.mrb[38].mxu0  ;;  %v1627_v31 = vld [vmem:[#allocation2 + $0x90] sm:$0xff]  ;;  %v1153_v4 = vadd.f32 %v1117_v34, %v1034_v33  ;;  %v5802_v41 = vpop.f32.mrb[38].mxu1  ;;  %v4184_v33 = vrot.slane %v4182_v3, 2  ;;  %v4187_v34 = vrot.slane %v4185_v14, 3 }
 0x132   : > { %v1533_v42 = vpop.f32.mrb[39].mxu0  ;;  %1191 = vst.msk [vmem:[#allocation2 + $0xb0] sm:$0xff] %vm545_vm6, %v1155_v32  ;;  %v1663_v46 = vadd.f32 %v5835_v13, %v1627_v31  ;;  %v1625_v37 = vld [vmem:[#allocation2 + $0x80] sm:$0xff]  ;;  %v1156_v15 = vadd.f32 %v5802_v41, %v1120_v36  ;;  %v1037_v48 = vpop.f32.mrb[39].mxu1  ;;  %v1122_v32 = vld [vmem:[#allocation2 + $0xc8] sm:$0xff]  ;;  %v4179_v31 = vor.u32 %v4178_v8, %v4175_v7 }
 0x133   : > { %1189 = vst.msk [vmem:[#allocation2 + $0xa0] sm:$0xff] %vm545_vm6, %v1153_v4  ;;  %v1661_v53 = vadd.f32 %v1625_v37, %v1530_v27  ;;  %v1628_v54 = vld [vmem:[#allocation2 + $0x98] sm:$0xff]  ;;  %v1154_v56 = vadd.f32 %v1118_v50, %v1037_v48  ;;  %v4700_v27 = vsel %vm4673_vm8, %v4697_v63, %v4699_v1  ;;  %v4701_v4 = vrot.slane %v7057_v9, 3  ;;  %v1127_v37 = vld [vmem:[#allocation2 + $0xf0] sm:$0xff] }
 0x134   : > { %6062 = vmatmul.mubr.msk.bf16.gmra.mrb[144].mxu0 %vm309_vm1, %v4694_v28  ;;  %1699 = vst.msk [vmem:[#allocation2 + $0x90] sm:$0xff] %vm545_vm6, %v1663_v46  ;;  %1192 = vst.msk [vmem:[#allocation2 + $0xb8] sm:$0xff] %vm545_vm6, %v1156_v15  ;;  %v1664_v58 = vadd.f32 %v5836_v35, %v1628_v54  ;;  %v1626_v60 = vld [vmem:[#allocation2 + $0x88] sm:$0xff]  ;;  %6028 = vmatmul.mubr.msk.bf16.gmra.mrb[144].mxu1 %vm309_vm1, %v4144_v43  ;;  %v4194_v43 = vshll.u32 %v6285_v11, 16  ;;  %v7086_v45 = vor.u32 %v4187_v34, %v4184_v33  ;;  %v1128_v63 = vld [vmem:[#allocation2 + $0xf8] sm:$0xff] }
 0x135   : > { %6065 = vmatprep.mubr.msk.bf16.mxu0 %vm309_vm1, %v4696_v55  ;;  %1697 = vst.msk [vmem:[#allocation2 + $0x80] sm:$0xff] %vm545_vm6, %v1661_v53  ;;  %1190 = vst.msk [vmem:[#allocation2 + $0xa8] sm:$0xff] %vm545_vm6, %v1154_v56  ;;  %v1662_v0 = vadd.f32 %v1626_v60, %v1533_v42  ;;  %6031 = vmatprep.mubr.msk.bf16.mxu1 %vm309_vm1, %v4153_v57  ;;  %v7071_v28 = vld [vmem:[%s6366_s22 + $0x88] sm:$0xff]   ;;  %v4191_v42 = vshrl.u32 %v6285_v11, 16  ;;  %v1125_v57 = vld [vmem:[#allocation2 + $0xe0] sm:$0xff]  ;;  %v4180_v53 = vsel %vm4028_vm7, %v7051_v47, %v4179_v31 }
 0x136   : > { %1700 = vst.msk [vmem:[#allocation2 + $0x98] sm:$0xff] %vm545_vm6, %v1664_v58  ;;  %v4703_v36 = vrot.slane %v7071_v28, 3  ;;  %v4702_v54 = vsel %vm4673_vm8, %v4699_v1, %v4701_v4  ;;  %v6286_v56 = vld [vmem:[%s6366_s22 + $0x90] sm:$0xff]   ;;  %v4196_v3 = vrot.slane %v4194_v43, 3  ;;  %v4189_v1 = vsel %vm4028_vm7, %v4179_v31, %v7086_v45 }
 0x137   : > { %v5839_v2 = vpop.f32.mrb[40].mxu0  ;;  %1698 = vst.msk [vmem:[#allocation2 + $0x88] sm:$0xff] %vm545_vm6, %v1662_v0  ;;  %v5805_v62 = vpop.f32.mrb[40].mxu1  ;;  %v6288_v28 = vld [vmem:[%s6366_s22 + $0xa0] ss:$0 sps:$4 sm:$0x77]  }
 0x138   : > { %v1546_v6 = vpop.f32.mrb[41].mxu0  ;;  %v1159_v10 = vadd.f32 %v5805_v62, %v1123_v5  ;;  %v1050_v61 = vpop.f32.mrb[41].mxu1  ;;  %v4704_v23 = vsel %vm4673_vm8, %v4701_v4, %v4703_v36  ;;  %v1126_v5 = vld [vmem:[#allocation2 + $0xe8] sm:$0xff]  ;;  %v4709_v43 = vrot.slane %v6288_v28, 3 }
 0x139   : > { %v5840_v49 = vpop.f32.mrb[42].mxu0  ;;  %v1631_v19 = vld [vmem:[#allocation2 + $0xb0] sm:$0xff]  ;;  %v1157_v20 = vadd.f32 %v1121_v17, %v1050_v61  ;;  %v5806_v21 = vpop.f32.mrb[42].mxu1  ;;  %v4705_v61 = vrot.slane %v6286_v56, 3 }
 0x13a   : > { %v1549_v13 = vpop.f32.mrb[43].mxu0  ;;  %1195 = vst.msk [vmem:[#allocation2 + $0xd0] sm:$0xff] %vm545_vm6, %v1159_v10  ;;  %v1667_v52 = vadd.f32 %v5839_v2, %v1631_v19  ;;  %v1629_v18 = vld [vmem:[#allocation2 + $0xa0] sm:$0xff]  ;;  %v1160_v29 = vadd.f32 %v5806_v21, %v1124_v22  ;;  %v1053_v30 = vpop.f32.mrb[43].mxu1  ;;  %v4193_v2 = vrot.slane %v4191_v42, 2 }
 0x13b   : > { %1193 = vst.msk [vmem:[#allocation2 + $0xc0] sm:$0xff] %vm545_vm6, %v1157_v20  ;;  %v1665_v24 = vadd.f32 %v1629_v18, %v1546_v6  ;;  %v1632_v35 = vld [vmem:[#allocation2 + $0xb8] sm:$0xff]  ;;  %v1158_v55 = vadd.f32 %v1122_v32, %v1053_v30  ;;  %v1131_v20 = vld [vmem:[#allocation2 + $0x110] sm:$0xff] }
 0x13c   : > { %6066 = vmatmul.mubr.msk.bf16.gmra.mrb[148].mxu0 %vm309_vm1, %v4698_v16  ;;  %1703 = vst.msk [vmem:[#allocation2 + $0xb0] sm:$0xff] %vm545_vm6, %v1667_v52  ;;  %1196 = vst.msk [vmem:[#allocation2 + $0xd8] sm:$0xff] %vm545_vm6, %v1160_v29  ;;  %v1668_v38 = vadd.f32 %v5840_v49, %v1632_v35  ;;  %v1630_v39 = vld [vmem:[#allocation2 + $0xa8] sm:$0xff]  ;;  %6032 = vmatmul.mubr.msk.bf16.gmra.mrb[148].mxu1 %vm309_vm1, %v4162_v25  ;;  %v4197_v49 = vor.u32 %v4196_v3, %v4193_v2  ;;  %v4707_v16 = vrot.slane %v7096_v12, 3  ;;  %v1129_v25 = vld [vmem:[#allocation2 + $0x100] sm:$0xff] }
 0x13d   : > { %6069 = vmatprep.mubr.msk.bf16.mxu0 %vm309_vm1, %v4700_v27  ;;  %1701 = vst.msk [vmem:[#allocation2 + $0xa0] sm:$0xff] %vm545_vm6, %v1665_v24  ;;  %1194 = vst.msk [vmem:[#allocation2 + $0xc8] sm:$0xff] %vm545_vm6, %v1158_v55  ;;  %v1666_v41 = vadd.f32 %v1630_v39, %v1549_v13  ;;  %6035 = vmatprep.mubr.msk.bf16.mxu1 %vm309_vm1, %v4171_v26  ;;  %v4706_v27 = vsel %vm4673_vm8, %v4703_v36, %v4705_v61  ;;  %v1132_v30 = vld [vmem:[#allocation2 + $0x118] sm:$0xff]  ;;  %v1130_v39 = vld [vmem:[#allocation2 + $0x108] sm:$0xff] }
 0x13e   : > { %1704 = vst.msk [vmem:[#allocation2 + $0xb8] sm:$0xff] %vm545_vm6, %v1668_v38  ;;  %v4198_v33 = vsel %vm4028_vm7, %v7086_v45, %v4197_v49  ;;  %v4708_v34 = vsel %vm4673_vm8, %v4705_v61, %v4707_v16  ;;  %v2121_v2 = vld [vmem:[#allocation2 + $0x8] sm:$0xff]  ;;  %v2124_v61 = vld [vmem:[#allocation2 + $0x20] sm:$0xff] }
 0x13f   : > { %v5843_v44 = vpop.f32.mrb[44].mxu0  ;;  %1702 = vst.msk [vmem:[#allocation2 + $0xa8] sm:$0xff] %vm545_vm6, %v1666_v41  ;;  %v5809_v46 = vpop.f32.mrb[44].mxu1 }
 0x140   : > { %v1562_v15 = vpop.f32.mrb[45].mxu0  ;;  %v1163_v48 = vadd.f32 %v5809_v46, %v1127_v37  ;;  %v1066_v50 = vpop.f32.mrb[45].mxu1  ;;  %v2122_v37 = vld [vmem:[#allocation2 + $0x10] sm:$0xff] }
 0x141   : > { %v5844_v51 = vpop.f32.mrb[46].mxu0  ;;  %v1635_v59 = vld [vmem:[#allocation2 + $0xd0] sm:$0xff]  ;;  %v1161_v58 = vadd.f32 %v1125_v57, %v1066_v50  ;;  %v5810_v60 = vpop.f32.mrb[46].mxu1  ;;  %v2120_v57 = vld [vmem:[#allocation2] sm:$0xff] }
 0x142   : > { %v1565_v0 = vpop.f32.mrb[47].mxu0  ;;  %1199 = vst.msk [vmem:[#allocation2 + $0xf0] sm:$0xff] %vm545_vm6, %v1163_v48  ;;  %v1671_v14 = vadd.f32 %v5843_v44, %v1635_v59  ;;  %v1633_v47 = vld [vmem:[#allocation2 + $0xc0] sm:$0xff]  ;;  %v1164_v62 = vadd.f32 %v5810_v60, %v1128_v63  ;;  %v1069_v40 = vpop.f32.mrb[47].mxu1  ;;  %v2123_v59 = vld [vmem:[#allocation2 + $0x18] sm:$0xff] }
 0x143   : > { %1197 = vst.msk [vmem:[#allocation2 + $0xe0] sm:$0xff] %vm545_vm6, %v1161_v58  ;;  %v1669_v6 = vadd.f32 %v1633_v47, %v1562_v15  ;;  %v1636_v7 = vld [vmem:[#allocation2 + $0xd8] sm:$0xff]  ;;  %v1162_v8 = vadd.f32 %v1126_v5, %v1069_v40 }
 0x144   : > { %6070 = vmatmul.mubr.msk.bf16.gmra.mrb[152].mxu0 %vm309_vm1, %v4702_v54  ;;  %1707 = vst.msk [vmem:[#allocation2 + $0xd0] sm:$0xff] %vm545_vm6, %v1671_v14  ;;  %1200 = vst.msk [vmem:[#allocation2 + $0xf8] sm:$0xff] %vm545_vm6, %v1164_v62  ;;  %v1672_v9 = vadd.f32 %v5844_v51, %v1636_v7  ;;  %v1634_v10 = vld [vmem:[#allocation2 + $0xc8] sm:$0xff]  ;;  %6036 = vmatmul.mubr.msk.bf16.gmra.mrb[152].mxu1 %vm309_vm1, %v4180_v53  ;;  %v4710_v53 = vsel %vm4673_vm8, %v4707_v16, %v4709_v43  ;;  %v2126_v7 = vld [vmem:[#allocation2 + $0x30] sm:$0xff] }
 0x145   : > { %6073 = vmatprep.mubr.msk.bf16.mxu0 %vm309_vm1, %v4704_v23  ;;  %1705 = vst.msk [vmem:[#allocation2 + $0xc0] sm:$0xff] %vm545_vm6, %v1669_v6  ;;  %1198 = vst.msk [vmem:[#allocation2 + $0xe8] sm:$0xff] %vm545_vm6, %v1162_v8  ;;  %v1670_v17 = vadd.f32 %v1634_v10, %v1565_v0  ;;  %6039 = vmatprep.mubr.msk.bf16.mxu1 %vm309_vm1, %v4189_v1 }
 0x146   : > { %1708 = vst.msk [vmem:[#allocation2 + $0xd8] sm:$0xff] %vm545_vm6, %v1672_v9 }
 0x147   : > { %v5847_v11 = vpop.f32.mrb[48].mxu0  ;;  %1706 = vst.msk [vmem:[#allocation2 + $0xc8] sm:$0xff] %vm545_vm6, %v1670_v17  ;;  %v5813_v19 = vpop.f32.mrb[48].mxu1 }
 0x148   : > { %v1578_v21 = vpop.f32.mrb[49].mxu0  ;;  %v1167_v22 = vadd.f32 %v5813_v19, %v1131_v20  ;;  %v1082_v13 = vpop.f32.mrb[49].mxu1  ;;  %v2127_v19 = vld [vmem:[#allocation2 + $0x38] sm:$0xff] }
 0x149   : > { %v5848_v26 = vpop.f32.mrb[50].mxu0  ;;  %v1639_v52 = vld [vmem:[#allocation2 + $0xf0] sm:$0xff]  ;;  %v1165_v18 = vadd.f32 %v1129_v25, %v1082_v13  ;;  %v5814_v29 = vpop.f32.mrb[50].mxu1 }
 0x14a   : > { %v1581_v32 = vpop.f32.mrb[51].mxu0  ;;  %1203 = vst.msk [vmem:[#allocation2 + $0x110] sm:$0xff] %vm545_vm6, %v1167_v22  ;;  %v1675_v24 = vadd.f32 %v5847_v11, %v1639_v52  ;;  %v1637_v35 = vld [vmem:[#allocation2 + $0xe0] sm:$0xff]  ;;  %v1168_v55 = vadd.f32 %v5814_v29, %v1132_v30  ;;  %v1085_v38 = vpop.f32.mrb[51].mxu1 }
 0x14b   : > { %1201 = vst.msk [vmem:[#allocation2 + $0x100] sm:$0xff] %vm545_vm6, %v1165_v18  ;;  %v1673_v31 = vadd.f32 %v1637_v35, %v1578_v21  ;;  %v1640_v4 = vld [vmem:[#allocation2 + $0xf8] sm:$0xff]  ;;  %v1166_v41 = vadd.f32 %v1130_v39, %v1085_v38  ;;  %v2128_v38 = vld [vmem:[#allocation2 + $0x40] sm:$0xff] }
 0x14c   : > { %6074 = vmatmul.mubr.msk.bf16.gmra.mrb[156].mxu0 %vm309_vm1, %v4706_v27  ;;  %1711 = vst.msk [vmem:[#allocation2 + $0xf0] sm:$0xff] %vm545_vm6, %v1675_v24  ;;  %1204 = vst.msk [vmem:[#allocation2 + $0x118] sm:$0xff] %vm545_vm6, %v1168_v55  ;;  %v1676_v36 = vadd.f32 %v5848_v26, %v1640_v4  ;;  %v1638_v42 = vld [vmem:[#allocation2 + $0xe8] sm:$0xff]  ;;  %6040 = vmatmul.mubr.msk.bf16.gmra.mrb[156].mxu1 %vm309_vm1, %v4198_v33 }
 0x14d   : > { %6077 = vmatprep.mubr.msk.bf16.mxu0 %vm309_vm1, %v4708_v34  ;;  %1709 = vst.msk [vmem:[#allocation2 + $0xe0] sm:$0xff] %vm545_vm6, %v1673_v31  ;;  %1202 = vst.msk [vmem:[#allocation2 + $0x108] sm:$0xff] %vm545_vm6, %v1166_v41  ;;  %v1674_v44 = vadd.f32 %v1638_v42, %v1581_v32  ;;  %v2125_v26 = vld [vmem:[#allocation2 + $0x28] sm:$0xff]  ;;  %v2130_v34 = vld [vmem:[#allocation2 + $0x50] sm:$0xff] }
 0x14e   : > { %1712 = vst.msk [vmem:[#allocation2 + $0xf8] sm:$0xff] %vm545_vm6, %v1676_v36  ;;  %v2131_v36 = vld [vmem:[#allocation2 + $0x58] sm:$0xff] }
 0x14f   : > { %v5851_v45 = vpop.f32.mrb[52].mxu0  ;;  %1710 = vst.msk [vmem:[#allocation2 + $0xe8] sm:$0xff] %vm545_vm6, %v1674_v44  ;;  %v5857_v46 = vpop.f32.mrb[52].mxu1 }
 0x150   : > { %v1594_v15 = vpop.f32.mrb[53].mxu0  ;;  %v2158_v48 = vadd.f32 %v5857_v46, %v2122_v37  ;;  %v1977_v50 = vpop.f32.mrb[53].mxu1  ;;  %v2129_v37 = vld [vmem:[#allocation2 + $0x48] sm:$0xff] }
 0x151   : > { %v5852_v51 = vpop.f32.mrb[54].mxu0  ;;  %v1643_v54 = vld [vmem:[#allocation2 + $0x110] sm:$0xff]  ;;  %v2156_v56 = vadd.f32 %v2120_v57, %v1977_v50  ;;  %v5858_v12 = vpop.f32.mrb[54].mxu1 }
 0x152   : > { %v1597_v58 = vpop.f32.mrb[55].mxu0  ;;  %v1679_v60 = vadd.f32 %v5851_v45, %v1643_v54  ;;  %2194 = vst.msk [vmem:[#allocation2 + $0x10] sm:$0xff] %vm545_vm6, %v2158_v48  ;;  %v1641_v63 = vld [vmem:[#allocation2 + $0x100] sm:$0xff]  ;;  %v2159_v0 = vadd.f32 %v5858_v12, %v2123_v59  ;;  %v1980_v23 = vpop.f32.mrb[55].mxu1  ;;  %v2134_v12 = vld [vmem:[#allocation2 + $0x70] sm:$0xff] }
 0x153   : > { %v1677_v3 = vadd.f32 %v1641_v63, %v1594_v15  ;;  %2192 = vst.msk [vmem:[#allocation2] sm:$0xff] %vm545_vm6, %v2156_v56  ;;  %v1644_v14 = vld [vmem:[#allocation2 + $0x118] sm:$0xff]  ;;  %v2157_v47 = vadd.f32 %v2121_v2, %v1980_v23  ;;  %v2132_v63 = vld [vmem:[#allocation2 + $0x60] sm:$0xff] }
 0x154   : > { %6078 = vmatmul.mubr.msk.bf16.gmra.mrb[160].mxu0 %vm309_vm1, %v4710_v53  ;;  %1715 = vst.msk [vmem:[#allocation2 + $0x110] sm:$0xff] %vm545_vm6, %v1679_v60  ;;  %v1680_v62 = vadd.f32 %v5852_v51, %v1644_v14  ;;  %2195 = vst.msk [vmem:[#allocation2 + $0x18] sm:$0xff] %vm545_vm6, %v2159_v0  ;;  %v1642_v40 = vld [vmem:[#allocation2 + $0x108] sm:$0xff]  ;;  %v2135_v14 = vld [vmem:[#allocation2 + $0x78] sm:$0xff] }
 0x155   : > { %1713 = vst.msk [vmem:[#allocation2 + $0x100] sm:$0xff] %vm545_vm6, %v1677_v3  ;;  %v1678_v5 = vadd.f32 %v1642_v40, %v1597_v58  ;;  %2193 = vst.msk [vmem:[#allocation2 + $0x8] sm:$0xff] %vm545_vm6, %v2157_v47 }
 0x156   : > { %1716 = vst.msk [vmem:[#allocation2 + $0x118] sm:$0xff] %vm545_vm6, %v1680_v62 }
 0x157   : > { %v5895_v1 = vpop.f32.mrb[56].mxu0  ;;  %1714 = vst.msk [vmem:[#allocation2 + $0x108] sm:$0xff] %vm545_vm6, %v1678_v5  ;;  %v5861_v6 = vpop.f32.mrb[56].mxu1 }
 0x158   : > { %v2622_v8 = vpop.f32.mrb[57].mxu0  ;;  %v2162_v9 = vadd.f32 %v5861_v6, %v2126_v7  ;;  %v1993_v10 = vpop.f32.mrb[57].mxu1  ;;  %v2133_v6 = vld [vmem:[#allocation2 + $0x68] sm:$0xff] }
 0x159   : > { %v5896_v17 = vpop.f32.mrb[58].mxu0  ;;  %v2767_v49 = vld [vmem:[#allocation2 + $0x10] sm:$0xff]  ;;  %v2160_v16 = vadd.f32 %v2124_v61, %v1993_v10  ;;  %v5862_v11 = vpop.f32.mrb[58].mxu1 }
 0x15a   : > { %v2625_v20 = vpop.f32.mrb[59].mxu0  ;;  %2198 = vst.msk [vmem:[#allocation2 + $0x30] sm:$0xff] %vm545_vm6, %v2162_v9  ;;  %v2803_v21 = vadd.f32 %v5895_v1, %v2767_v49  ;;  %v2765_v22 = vld [vmem:[#allocation2] sm:$0xff]  ;;  %v2163_v13 = vadd.f32 %v5862_v11, %v2127_v19  ;;  %v1996_v25 = vpop.f32.mrb[59].mxu1  ;;  %v2138_v11 = vld [vmem:[#allocation2 + $0x90] sm:$0xff] }
 0x15b   : > { %2196 = vst.msk [vmem:[#allocation2 + $0x20] sm:$0xff] %vm545_vm6, %v2160_v16  ;;  %v2801_v27 = vadd.f32 %v2765_v22, %v2622_v8  ;;  %v2768_v28 = vld [vmem:[#allocation2 + $0x18] sm:$0xff]  ;;  %v2161_v52 = vadd.f32 %v2125_v26, %v1996_v25  ;;  %v2136_v22 = vld [vmem:[#allocation2 + $0x80] sm:$0xff] }
 0x15c   : > { %2839 = vst.msk [vmem:[#allocation2 + $0x10] sm:$0xff] %vm545_vm6, %v2803_v21  ;;  %2199 = vst.msk [vmem:[#allocation2 + $0x38] sm:$0xff] %vm545_vm6, %v2163_v13  ;;  %v2804_v18 = vadd.f32 %v5896_v17, %v2768_v28  ;;  %v2766_v29 = vld [vmem:[#allocation2 + $0x8] sm:$0xff]  ;;  %v2139_v28 = vld [vmem:[#allocation2 + $0x98] sm:$0xff] }
 0x15d   : > { %2837 = vst.msk [vmem:[#allocation2] sm:$0xff] %vm545_vm6, %v2801_v27  ;;  %2197 = vst.msk [vmem:[#allocation2 + $0x28] sm:$0xff] %vm545_vm6, %v2161_v52  ;;  %v2802_v30 = vadd.f32 %v2766_v29, %v2625_v20 }
 0x15e   : > { %2840 = vst.msk [vmem:[#allocation2 + $0x18] sm:$0xff] %vm545_vm6, %v2804_v18 }
 0x15f   : > { %v5899_v32 = vpop.f32.mrb[60].mxu0  ;;  %2838 = vst.msk [vmem:[#allocation2 + $0x8] sm:$0xff] %vm545_vm6, %v2802_v30  ;;  %v5865_v33 = vpop.f32.mrb[60].mxu1 }
 0x160   : > { %v2638_v24 = vpop.f32.mrb[61].mxu0  ;;  %v2166_v35 = vadd.f32 %v5865_v33, %v2130_v34  ;;  %v2009_v55 = vpop.f32.mrb[61].mxu1  ;;  %v2137_v33 = vld [vmem:[#allocation2 + $0x88] sm:$0xff] }
 0x161   : > { %v5900_v39 = vpop.f32.mrb[62].mxu0  ;;  %v2771_v31 = vld [vmem:[#allocation2 + $0x30] sm:$0xff]  ;;  %v2164_v4 = vadd.f32 %v2128_v38, %v2009_v55  ;;  %v5866_v41 = vpop.f32.mrb[62].mxu1 }
 0x162   : > { %v2641_v42 = vpop.f32.mrb[63].mxu0  ;;  %2202 = vst.msk [vmem:[#allocation2 + $0x50] sm:$0xff] %vm545_vm6, %v2166_v35  ;;  %v2807_v43 = vadd.f32 %v5899_v32, %v2771_v31  ;;  %v2769_v44 = vld [vmem:[#allocation2 + $0x20] sm:$0xff]  ;;  %v2167_v45 = vadd.f32 %v5866_v41, %v2131_v36  ;;  %v2012_v46 = vpop.f32.mrb[63].mxu1  ;;  %v2142_v41 = vld [vmem:[#allocation2 + $0xb0] sm:$0xff] }
 0x163   : > { %2200 = vst.msk [vmem:[#allocation2 + $0x40] sm:$0xff] %vm545_vm6, %v2164_v4  ;;  %v2805_v15 = vadd.f32 %v2769_v44, %v2638_v24  ;;  %v2772_v48 = vld [vmem:[#allocation2 + $0x38] sm:$0xff]  ;;  %v2165_v50 = vadd.f32 %v2129_v37, %v2012_v46  ;;  %v2140_v44 = vld [vmem:[#allocation2 + $0xa0] sm:$0xff] }
 0x164   : > { %2843 = vst.msk [vmem:[#allocation2 + $0x30] sm:$0xff] %vm545_vm6, %v2807_v43  ;;  %2203 = vst.msk [vmem:[#allocation2 + $0x58] sm:$0xff] %vm545_vm6, %v2167_v45  ;;  %v2808_v57 = vadd.f32 %v5900_v39, %v2772_v48  ;;  %v2770_v51 = vld [vmem:[#allocation2 + $0x28] sm:$0xff]  ;;  %v2143_v48 = vld [vmem:[#allocation2 + $0xb8] sm:$0xff] }
 0x165   : > { %2841 = vst.msk [vmem:[#allocation2 + $0x20] sm:$0xff] %vm545_vm6, %v2805_v15  ;;  %2201 = vst.msk [vmem:[#allocation2 + $0x48] sm:$0xff] %vm545_vm6, %v2165_v50  ;;  %v2806_v53 = vadd.f32 %v2770_v51, %v2641_v42 }
 0x166   : > { %2844 = vst.msk [vmem:[#allocation2 + $0x38] sm:$0xff] %vm545_vm6, %v2808_v57 }
 0x167   : > { %v5903_v54 = vpop.f32.mrb[64].mxu0  ;;  %2842 = vst.msk [vmem:[#allocation2 + $0x28] sm:$0xff] %vm545_vm6, %v2806_v53  ;;  %v5869_v56 = vpop.f32.mrb[64].mxu1 }
 0x168   : > { %v2654_v59 = vpop.f32.mrb[65].mxu0  ;;  %v2170_v58 = vadd.f32 %v5869_v56, %v2134_v12  ;;  %v2025_v60 = vpop.f32.mrb[65].mxu1  ;;  %v2141_v56 = vld [vmem:[#allocation2 + $0xa8] sm:$0xff] }
 0x169   : > { %v5904_v0 = vpop.f32.mrb[66].mxu0  ;;  %v2775_v23 = vld [vmem:[#allocation2 + $0x50] sm:$0xff]  ;;  %v2168_v2 = vadd.f32 %v2132_v63, %v2025_v60  ;;  %v5870_v3 = vpop.f32.mrb[66].mxu1 }
 0x16a   : > { %v2657_v47 = vpop.f32.mrb[67].mxu0  ;;  %2206 = vst.msk [vmem:[#allocation2 + $0x70] sm:$0xff] %vm545_vm6, %v2170_v58  ;;  %v2811_v62 = vadd.f32 %v5903_v54, %v2775_v23  ;;  %v2773_v40 = vld [vmem:[#allocation2 + $0x40] sm:$0xff]  ;;  %v2171_v5 = vadd.f32 %v5870_v3, %v2135_v14  ;;  %v2028_v1 = vpop.f32.mrb[67].mxu1  ;;  %v2146_v3 = vld [vmem:[#allocation2 + $0xd0] sm:$0xff] }
 0x16b   : > { %2204 = vst.msk [vmem:[#allocation2 + $0x60] sm:$0xff] %vm545_vm6, %v2168_v2  ;;  %v2809_v7 = vadd.f32 %v2773_v40, %v2654_v59  ;;  %v2776_v8 = vld [vmem:[#allocation2 + $0x58] sm:$0xff]  ;;  %v2169_v9 = vadd.f32 %v2133_v6, %v2028_v1  ;;  %v2144_v40 = vld [vmem:[#allocation2 + $0xc0] sm:$0xff] }
 0x16c   : > { %2847 = vst.msk [vmem:[#allocation2 + $0x50] sm:$0xff] %vm545_vm6, %v2811_v62  ;;  %2207 = vst.msk [vmem:[#allocation2 + $0x78] sm:$0xff] %vm545_vm6, %v2171_v5  ;;  %v2812_v10 = vadd.f32 %v5904_v0, %v2776_v8  ;;  %v2774_v61 = vld [vmem:[#allocation2 + $0x48] sm:$0xff]  ;;  %v2147_v8 = vld [vmem:[#allocation2 + $0xd8] sm:$0xff] }
 0x16d   : > { %2845 = vst.msk [vmem:[#allocation2 + $0x40] sm:$0xff] %vm545_vm6, %v2809_v7  ;;  %2205 = vst.msk [vmem:[#allocation2 + $0x68] sm:$0xff] %vm545_vm6, %v2169_v9  ;;  %v2810_v17 = vadd.f32 %v2774_v61, %v2657_v47 }
 0x16e   : > { %2848 = vst.msk [vmem:[#allocation2 + $0x58] sm:$0xff] %vm545_vm6, %v2812_v10 }
 0x16f   : > { %v5907_v49 = vpop.f32.mrb[68].mxu0  ;;  %2846 = vst.msk [vmem:[#allocation2 + $0x48] sm:$0xff] %vm545_vm6, %v2810_v17  ;;  %v5873_v16 = vpop.f32.mrb[68].mxu1 }
 0x170   : > { %v2670_v19 = vpop.f32.mrb[69].mxu0  ;;  %v2174_v20 = vadd.f32 %v5873_v16, %v2138_v11  ;;  %v2041_v21 = vpop.f32.mrb[69].mxu1  ;;  %v2145_v16 = vld [vmem:[#allocation2 + $0xc8] sm:$0xff] }
 0x171   : > { %v5908_v13 = vpop.f32.mrb[70].mxu0  ;;  %v2779_v25 = vld [vmem:[#allocation2 + $0x70] sm:$0xff]  ;;  %v2172_v26 = vadd.f32 %v2136_v22, %v2041_v21  ;;  %v5874_v27 = vpop.f32.mrb[70].mxu1 }
 0x172   : > { %v2673_v52 = vpop.f32.mrb[71].mxu0  ;;  %2210 = vst.msk [vmem:[#allocation2 + $0x90] sm:$0xff] %vm545_vm6, %v2174_v20  ;;  %v2815_v18 = vadd.f32 %v5907_v49, %v2779_v25  ;;  %v2777_v29 = vld [vmem:[#allocation2 + $0x60] sm:$0xff]  ;;  %v2175_v30 = vadd.f32 %v5874_v27, %v2139_v28  ;;  %v2044_v32 = vpop.f32.mrb[71].mxu1  ;;  %v2150_v27 = vld [vmem:[#allocation2 + $0xf0] sm:$0xff] }
 0x173   : > { %2208 = vst.msk [vmem:[#allocation2 + $0x80] sm:$0xff] %vm545_vm6, %v2172_v26  ;;  %v2813_v34 = vadd.f32 %v2777_v29, %v2670_v19  ;;  %v2780_v24 = vld [vmem:[#allocation2 + $0x78] sm:$0xff]  ;;  %v2173_v35 = vadd.f32 %v2137_v33, %v2044_v32  ;;  %v2148_v29 = vld [vmem:[#allocation2 + $0xe0] sm:$0xff] }
 0x174   : > { %2851 = vst.msk [vmem:[#allocation2 + $0x70] sm:$0xff] %vm545_vm6, %v2815_v18  ;;  %2211 = vst.msk [vmem:[#allocation2 + $0x98] sm:$0xff] %vm545_vm6, %v2175_v30  ;;  %v2816_v55 = vadd.f32 %v5908_v13, %v2780_v24  ;;  %v2778_v38 = vld [vmem:[#allocation2 + $0x68] sm:$0xff]  ;;  %v2151_v24 = vld [vmem:[#allocation2 + $0xf8] sm:$0xff] }
 0x175   : > { %2849 = vst.msk [vmem:[#allocation2 + $0x60] sm:$0xff] %vm545_vm6, %v2813_v34  ;;  %2209 = vst.msk [vmem:[#allocation2 + $0x88] sm:$0xff] %vm545_vm6, %v2173_v35  ;;  %v2814_v39 = vadd.f32 %v2778_v38, %v2673_v52 }
 0x176   : > { %2852 = vst.msk [vmem:[#allocation2 + $0x78] sm:$0xff] %vm545_vm6, %v2816_v55 }
 0x177   : > { %v5911_v31 = vpop.f32.mrb[72].mxu0  ;;  %2850 = vst.msk [vmem:[#allocation2 + $0x68] sm:$0xff] %vm545_vm6, %v2814_v39  ;;  %v5877_v4 = vpop.f32.mrb[72].mxu1 }
 0x178   : > { %v2686_v36 = vpop.f32.mrb[73].mxu0  ;;  %v2178_v42 = vadd.f32 %v5877_v4, %v2142_v41  ;;  %v2057_v43 = vpop.f32.mrb[73].mxu1  ;;  %v2149_v4 = vld [vmem:[#allocation2 + $0xe8] sm:$0xff] }
 0x179   : > { %v5912_v45 = vpop.f32.mrb[74].mxu0  ;;  %v2783_v46 = vld [vmem:[#allocation2 + $0x90] sm:$0xff]  ;;  %v2176_v37 = vadd.f32 %v2140_v44, %v2057_v43  ;;  %v5878_v15 = vpop.f32.mrb[74].mxu1 }
 0x17a   : > { %v2689_v50 = vpop.f32.mrb[75].mxu0  ;;  %2214 = vst.msk [vmem:[#allocation2 + $0xb0] sm:$0xff] %vm545_vm6, %v2178_v42  ;;  %v2819_v57 = vadd.f32 %v5911_v31, %v2783_v46  ;;  %v2781_v51 = vld [vmem:[#allocation2 + $0x80] sm:$0xff]  ;;  %v2179_v53 = vadd.f32 %v5878_v15, %v2143_v48  ;;  %v2060_v54 = vpop.f32.mrb[75].mxu1  ;;  %v2154_v15 = vld [vmem:[#allocation2 + $0x110] sm:$0xff] }
 0x17b   : > { %2212 = vst.msk [vmem:[#allocation2 + $0xa0] sm:$0xff] %vm545_vm6, %v2176_v37  ;;  %v2817_v12 = vadd.f32 %v2781_v51, %v2686_v36  ;;  %v2784_v59 = vld [vmem:[#allocation2 + $0x98] sm:$0xff]  ;;  %v2177_v58 = vadd.f32 %v2141_v56, %v2060_v54  ;;  %v2152_v51 = vld [vmem:[#allocation2 + $0x100] sm:$0xff] }
 0x17c   : > { %2855 = vst.msk [vmem:[#allocation2 + $0x90] sm:$0xff] %vm545_vm6, %v2819_v57  ;;  %2215 = vst.msk [vmem:[#allocation2 + $0xb8] sm:$0xff] %vm545_vm6, %v2179_v53  ;;  %v2820_v60 = vadd.f32 %v5912_v45, %v2784_v59  ;;  %v2782_v63 = vld [vmem:[#allocation2 + $0x88] sm:$0xff]  ;;  %v2155_v59 = vld [vmem:[#allocation2 + $0x118] sm:$0xff] }
 0x17d   : > { %2853 = vst.msk [vmem:[#allocation2 + $0x80] sm:$0xff] %vm545_vm6, %v2817_v12  ;;  %2213 = vst.msk [vmem:[#allocation2 + $0xa8] sm:$0xff] %vm545_vm6, %v2177_v58  ;;  %v2818_v0 = vadd.f32 %v2782_v63, %v2689_v50 }
 0x17e   : > { %2856 = vst.msk [vmem:[#allocation2 + $0x98] sm:$0xff] %vm545_vm6, %v2820_v60 }
 0x17f   : > { %v5915_v23 = vpop.f32.mrb[76].mxu0  ;;  %2854 = vst.msk [vmem:[#allocation2 + $0x88] sm:$0xff] %vm545_vm6, %v2818_v0  ;;  %v5881_v2 = vpop.f32.mrb[76].mxu1 }
 0x180   : > { %v2702_v14 = vpop.f32.mrb[77].mxu0  ;;  %v2182_v47 = vadd.f32 %v5881_v2, %v2146_v3  ;;  %v2073_v62 = vpop.f32.mrb[77].mxu1  ;;  %v2153_v2 = vld [vmem:[#allocation2 + $0x108] sm:$0xff] }
 0x181   : > { %v5916_v5 = vpop.f32.mrb[78].mxu0  ;;  %v2787_v1 = vld [vmem:[#allocation2 + $0xb0] sm:$0xff]  ;;  %v2180_v6 = vadd.f32 %v2144_v40, %v2073_v62  ;;  %v5882_v7 = vpop.f32.mrb[78].mxu1 }
 0x182   : > { %v2705_v9 = vpop.f32.mrb[79].mxu0  ;;  %2218 = vst.msk [vmem:[#allocation2 + $0xd0] sm:$0xff] %vm545_vm6, %v2182_v47  ;;  %v2823_v10 = vadd.f32 %v5915_v23, %v2787_v1  ;;  %v2785_v61 = vld [vmem:[#allocation2 + $0xa0] sm:$0xff]  ;;  %v2183_v17 = vadd.f32 %v5882_v7, %v2147_v8  ;;  %v2076_v49 = vpop.f32.mrb[79].mxu1  ;;  %v3279_v7 = vld [vmem:[#allocation2 + $0x10] sm:$0xff] }
 0x183   : > { %2216 = vst.msk [vmem:[#allocation2 + $0xc0] sm:$0xff] %vm545_vm6, %v2180_v6  ;;  %v2821_v11 = vadd.f32 %v2785_v61, %v2702_v14  ;;  %v2788_v19 = vld [vmem:[#allocation2 + $0xb8] sm:$0xff]  ;;  %v2181_v20 = vadd.f32 %v2145_v16, %v2076_v49  ;;  %v3277_v61 = vld [vmem:[#allocation2] sm:$0xff] }
 0x184   : > { %2859 = vst.msk [vmem:[#allocation2 + $0xb0] sm:$0xff] %vm545_vm6, %v2823_v10  ;;  %2219 = vst.msk [vmem:[#allocation2 + $0xd8] sm:$0xff] %vm545_vm6, %v2183_v17  ;;  %v2824_v21 = vadd.f32 %v5916_v5, %v2788_v19  ;;  %v2786_v22 = vld [vmem:[#allocation2 + $0xa8] sm:$0xff]  ;;  %v3280_v19 = vld [vmem:[#allocation2 + $0x18] sm:$0xff] }
 0x185   : > { %2857 = vst.msk [vmem:[#allocation2 + $0xa0] sm:$0xff] %vm545_vm6, %v2821_v11  ;;  %2217 = vst.msk [vmem:[#allocation2 + $0xc8] sm:$0xff] %vm545_vm6, %v2181_v20  ;;  %v2822_v13 = vadd.f32 %v2786_v22, %v2705_v9 }
 0x186   : > { %2860 = vst.msk [vmem:[#allocation2 + $0xb8] sm:$0xff] %vm545_vm6, %v2824_v21 }
 0x187   : > { %v5919_v25 = vpop.f32.mrb[80].mxu0  ;;  %2858 = vst.msk [vmem:[#allocation2 + $0xa8] sm:$0xff] %vm545_vm6, %v2822_v13  ;;  %v5885_v26 = vpop.f32.mrb[80].mxu1 }
 0x188   : > { %v2718_v28 = vpop.f32.mrb[81].mxu0  ;;  %v2186_v52 = vadd.f32 %v5885_v26, %v2150_v27  ;;  %v2089_v18 = vpop.f32.mrb[81].mxu1  ;;  %v3278_v26 = vld [vmem:[#allocation2 + $0x8] sm:$0xff] }
 0x189   : > { %v5920_v30 = vpop.f32.mrb[82].mxu0  ;;  %v2791_v32 = vld [vmem:[#allocation2 + $0xd0] sm:$0xff]  ;;  %v2184_v33 = vadd.f32 %v2148_v29, %v2089_v18  ;;  %v5886_v34 = vpop.f32.mrb[82].mxu1 }
 0x18a   : > { %v2721_v35 = vpop.f32.mrb[83].mxu0  ;;  %2222 = vst.msk [vmem:[#allocation2 + $0xf0] sm:$0xff] %vm545_vm6, %v2186_v52  ;;  %v2827_v55 = vadd.f32 %v5919_v25, %v2791_v32  ;;  %v2789_v38 = vld [vmem:[#allocation2 + $0xc0] sm:$0xff]  ;;  %v2187_v39 = vadd.f32 %v5886_v34, %v2151_v24  ;;  %v2092_v31 = vpop.f32.mrb[83].mxu1  ;;  %v3283_v34 = vld [vmem:[#allocation2 + $0x30] sm:$0xff] }
 0x18b   : > { %2220 = vst.msk [vmem:[#allocation2 + $0xe0] sm:$0xff] %vm545_vm6, %v2184_v33  ;;  %v2825_v41 = vadd.f32 %v2789_v38, %v2718_v28  ;;  %v2792_v36 = vld [vmem:[#allocation2 + $0xd8] sm:$0xff]  ;;  %v2185_v42 = vadd.f32 %v2149_v4, %v2092_v31  ;;  %v3281_v38 = vld [vmem:[#allocation2 + $0x20] sm:$0xff] }
 0x18c   : > { %2863 = vst.msk [vmem:[#allocation2 + $0xd0] sm:$0xff] %vm545_vm6, %v2827_v55  ;;  %2223 = vst.msk [vmem:[#allocation2 + $0xf8] sm:$0xff] %vm545_vm6, %v2187_v39  ;;  %v2828_v43 = vadd.f32 %v5920_v30, %v2792_v36  ;;  %v2790_v44 = vld [vmem:[#allocation2 + $0xc8] sm:$0xff]  ;;  %v3284_v36 = vld [vmem:[#allocation2 + $0x38] sm:$0xff] }
 0x18d   : > { %2861 = vst.msk [vmem:[#allocation2 + $0xc0] sm:$0xff] %vm545_vm6, %v2825_v41  ;;  %2221 = vst.msk [vmem:[#allocation2 + $0xe8] sm:$0xff] %vm545_vm6, %v2185_v42  ;;  %v2826_v45 = vadd.f32 %v2790_v44, %v2721_v35 }
 0x18e   : > { %2864 = vst.msk [vmem:[#allocation2 + $0xd8] sm:$0xff] %vm545_vm6, %v2828_v43 }
 0x18f   : > { %v5923_v46 = vpop.f32.mrb[84].mxu0  ;;  %2862 = vst.msk [vmem:[#allocation2 + $0xc8] sm:$0xff] %vm545_vm6, %v2826_v45  ;;  %v5889_v37 = vpop.f32.mrb[84].mxu1 }
 0x190   : > { %v2734_v48 = vpop.f32.mrb[85].mxu0  ;;  %v2190_v50 = vadd.f32 %v5889_v37, %v2154_v15  ;;  %v2105_v57 = vpop.f32.mrb[85].mxu1  ;;  %v3282_v37 = vld [vmem:[#allocation2 + $0x28] sm:$0xff] }
 0x191   : > { %v5924_v53 = vpop.f32.mrb[86].mxu0  ;;  %v2795_v54 = vld [vmem:[#allocation2 + $0xf0] sm:$0xff]  ;;  %v2188_v56 = vadd.f32 %v2152_v51, %v2105_v57  ;;  %v5890_v12 = vpop.f32.mrb[86].mxu1 }
 0x192   : > { %v2737_v58 = vpop.f32.mrb[87].mxu0  ;;  %2226 = vst.msk [vmem:[#allocation2 + $0x110] sm:$0xff] %vm545_vm6, %v2190_v50  ;;  %v2831_v60 = vadd.f32 %v5923_v46, %v2795_v54  ;;  %v2793_v63 = vld [vmem:[#allocation2 + $0xe0] sm:$0xff]  ;;  %v2191_v0 = vadd.f32 %v5890_v12, %v2155_v59  ;;  %v2108_v23 = vpop.f32.mrb[87].mxu1  ;;  %v3287_v12 = vld [vmem:[#allocation2 + $0x50] sm:$0xff] }
 0x193   : > { %2224 = vst.msk [vmem:[#allocation2 + $0x100] sm:$0xff] %vm545_vm6, %v2188_v56  ;;  %v2829_v3 = vadd.f32 %v2793_v63, %v2734_v48  ;;  %v2796_v14 = vld [vmem:[#allocation2 + $0xf8] sm:$0xff]  ;;  %v2189_v47 = vadd.f32 %v2153_v2, %v2108_v23  ;;  %v3285_v63 = vld [vmem:[#allocation2 + $0x40] sm:$0xff] }
 0x194   : > { %2867 = vst.msk [vmem:[#allocation2 + $0xf0] sm:$0xff] %vm545_vm6, %v2831_v60  ;;  %2227 = vst.msk [vmem:[#allocation2 + $0x118] sm:$0xff] %vm545_vm6, %v2191_v0  ;;  %v2832_v62 = vadd.f32 %v5924_v53, %v2796_v14  ;;  %v2794_v40 = vld [vmem:[#allocation2 + $0xe8] sm:$0xff]  ;;  %v3288_v14 = vld [vmem:[#allocation2 + $0x58] sm:$0xff] }
 0x195   : > { %2865 = vst.msk [vmem:[#allocation2 + $0xe0] sm:$0xff] %vm545_vm6, %v2829_v3  ;;  %2225 = vst.msk [vmem:[#allocation2 + $0x108] sm:$0xff] %vm545_vm6, %v2189_v47  ;;  %v2830_v5 = vadd.f32 %v2794_v40, %v2737_v58 }
 0x196   : > { %2868 = vst.msk [vmem:[#allocation2 + $0xf8] sm:$0xff] %vm545_vm6, %v2832_v62 }
 0x197   : > { %v5927_v1 = vpop.f32.mrb[88].mxu0  ;;  %2866 = vst.msk [vmem:[#allocation2 + $0xe8] sm:$0xff] %vm545_vm6, %v2830_v5  ;;  %v5933_v6 = vpop.f32.mrb[88].mxu1 }
 0x198   : > { %v2750_v8 = vpop.f32.mrb[89].mxu0  ;;  %v3315_v9 = vadd.f32 %v5933_v6, %v3279_v7  ;;  %v3134_v10 = vpop.f32.mrb[89].mxu1  ;;  %v3286_v6 = vld [vmem:[#allocation2 + $0x48] sm:$0xff] }
 0x199   : > { %v5928_v17 = vpop.f32.mrb[90].mxu0  ;;  %v2799_v49 = vld [vmem:[#allocation2 + $0x110] sm:$0xff]  ;;  %v3313_v16 = vadd.f32 %v3277_v61, %v3134_v10  ;;  %v5934_v11 = vpop.f32.mrb[90].mxu1 }
 0x19a   : > { %v2753_v20 = vpop.f32.mrb[91].mxu0  ;;  %v2835_v21 = vadd.f32 %v5927_v1, %v2799_v49  ;;  %3351 = vst.msk [vmem:[#allocation2 + $0x10] sm:$0xff] %vm545_vm6, %v3315_v9  ;;  %v2797_v22 = vld [vmem:[#allocation2 + $0x100] sm:$0xff]  ;;  %v3316_v13 = vadd.f32 %v5934_v11, %v3280_v19  ;;  %v3137_v25 = vpop.f32.mrb[91].mxu1  ;;  %v3291_v11 = vld [vmem:[#allocation2 + $0x70] sm:$0xff] }
 0x19b   : > { %v2833_v27 = vadd.f32 %v2797_v22, %v2750_v8  ;;  %3349 = vst.msk [vmem:[#allocation2] sm:$0xff] %vm545_vm6, %v3313_v16  ;;  %v2800_v28 = vld [vmem:[#allocation2 + $0x118] sm:$0xff]  ;;  %v3314_v52 = vadd.f32 %v3278_v26, %v3137_v25  ;;  %v3289_v22 = vld [vmem:[#allocation2 + $0x60] sm:$0xff] }
 0x19c   : > { %2871 = vst.msk [vmem:[#allocation2 + $0x110] sm:$0xff] %vm545_vm6, %v2835_v21  ;;  %v2836_v18 = vadd.f32 %v5928_v17, %v2800_v28  ;;  %3352 = vst.msk [vmem:[#allocation2 + $0x18] sm:$0xff] %vm545_vm6, %v3316_v13  ;;  %v2798_v29 = vld [vmem:[#allocation2 + $0x108] sm:$0xff]  ;;  %v3292_v28 = vld [vmem:[#allocation2 + $0x78] sm:$0xff] }
 0x19d   : > { %2869 = vst.msk [vmem:[#allocation2 + $0x100] sm:$0xff] %vm545_vm6, %v2833_v27  ;;  %v2834_v30 = vadd.f32 %v2798_v29, %v2753_v20  ;;  %3350 = vst.msk [vmem:[#allocation2 + $0x8] sm:$0xff] %vm545_vm6, %v3314_v52 }
 0x19e   : > { %2872 = vst.msk [vmem:[#allocation2 + $0x118] sm:$0xff] %vm545_vm6, %v2836_v18 }
 0x19f   : > { %v5971_v32 = vpop.f32.mrb[92].mxu0  ;;  %2870 = vst.msk [vmem:[#allocation2 + $0x108] sm:$0xff] %vm545_vm6, %v2834_v30  ;;  %v5937_v33 = vpop.f32.mrb[92].mxu1 }
 0x1a0   : > { %v3645_v24 = vpop.f32.mrb[93].mxu0  ;;  %v3319_v35 = vadd.f32 %v5937_v33, %v3283_v34  ;;  %v3150_v55 = vpop.f32.mrb[93].mxu1  ;;  %v3290_v33 = vld [vmem:[#allocation2 + $0x68] sm:$0xff] }
 0x1a1   : > { %v5972_v39 = vpop.f32.mrb[94].mxu0  ;;  %v3790_v31 = vld [vmem:[#allocation2 + $0x10] sm:$0xff]  ;;  %v3317_v4 = vadd.f32 %v3281_v38, %v3150_v55  ;;  %v5938_v41 = vpop.f32.mrb[94].mxu1 }
 0x1a2   : > { %v3648_v42 = vpop.f32.mrb[95].mxu0  ;;  %3355 = vst.msk [vmem:[#allocation2 + $0x30] sm:$0xff] %vm545_vm6, %v3319_v35  ;;  %v3826_v43 = vadd.f32 %v5971_v32, %v3790_v31  ;;  %v3788_v44 = vld [vmem:[#allocation2] sm:$0xff]  ;;  %v3320_v45 = vadd.f32 %v5938_v41, %v3284_v36  ;;  %v3153_v46 = vpop.f32.mrb[95].mxu1  ;;  %v3295_v41 = vld [vmem:[#allocation2 + $0x90] sm:$0xff] }
 0x1a3   : > { %3353 = vst.msk [vmem:[#allocation2 + $0x20] sm:$0xff] %vm545_vm6, %v3317_v4  ;;  %v3824_v15 = vadd.f32 %v3788_v44, %v3645_v24  ;;  %v3791_v48 = vld [vmem:[#allocation2 + $0x18] sm:$0xff]  ;;  %v3318_v50 = vadd.f32 %v3282_v37, %v3153_v46  ;;  %v3293_v44 = vld [vmem:[#allocation2 + $0x80] sm:$0xff] }
 0x1a4   : > { %3862 = vst.msk [vmem:[#allocation2 + $0x10] sm:$0xff] %vm545_vm6, %v3826_v43  ;;  %3356 = vst.msk [vmem:[#allocation2 + $0x38] sm:$0xff] %vm545_vm6, %v3320_v45  ;;  %v3827_v57 = vadd.f32 %v5972_v39, %v3791_v48  ;;  %v3789_v51 = vld [vmem:[#allocation2 + $0x8] sm:$0xff]  ;;  %v3296_v48 = vld [vmem:[#allocation2 + $0x98] sm:$0xff] }
 0x1a5   : > { %3860 = vst.msk [vmem:[#allocation2] sm:$0xff] %vm545_vm6, %v3824_v15  ;;  %3354 = vst.msk [vmem:[#allocation2 + $0x28] sm:$0xff] %vm545_vm6, %v3318_v50  ;;  %v3825_v53 = vadd.f32 %v3789_v51, %v3648_v42 }
 0x1a6   : > { %3863 = vst.msk [vmem:[#allocation2 + $0x18] sm:$0xff] %vm545_vm6, %v3827_v57 }
 0x1a7   : > { %v5975_v54 = vpop.f32.mrb[96].mxu0  ;;  %3861 = vst.msk [vmem:[#allocation2 + $0x8] sm:$0xff] %vm545_vm6, %v3825_v53  ;;  %v5941_v56 = vpop.f32.mrb[96].mxu1 }
 0x1a8   : > { %v3661_v59 = vpop.f32.mrb[97].mxu0  ;;  %v3323_v58 = vadd.f32 %v5941_v56, %v3287_v12  ;;  %v3166_v60 = vpop.f32.mrb[97].mxu1  ;;  %v3294_v56 = vld [vmem:[#allocation2 + $0x88] sm:$0xff] }
 0x1a9   : > { %v5976_v0 = vpop.f32.mrb[98].mxu0  ;;  %v3794_v23 = vld [vmem:[#allocation2 + $0x30] sm:$0xff]  ;;  %v3321_v2 = vadd.f32 %v3285_v63, %v3166_v60  ;;  %v5942_v3 = vpop.f32.mrb[98].mxu1 }
 0x1aa   : > { %v3664_v47 = vpop.f32.mrb[99].mxu0  ;;  %3359 = vst.msk [vmem:[#allocation2 + $0x50] sm:$0xff] %vm545_vm6, %v3323_v58  ;;  %v3830_v62 = vadd.f32 %v5975_v54, %v3794_v23  ;;  %v3792_v40 = vld [vmem:[#allocation2 + $0x20] sm:$0xff]  ;;  %v3324_v5 = vadd.f32 %v5942_v3, %v3288_v14  ;;  %v3169_v1 = vpop.f32.mrb[99].mxu1  ;;  %v3299_v3 = vld [vmem:[#allocation2 + $0xb0] sm:$0xff] }
 0x1ab   : > { %3357 = vst.msk [vmem:[#allocation2 + $0x40] sm:$0xff] %vm545_vm6, %v3321_v2  ;;  %v3828_v7 = vadd.f32 %v3792_v40, %v3661_v59  ;;  %v3795_v8 = vld [vmem:[#allocation2 + $0x38] sm:$0xff]  ;;  %v3322_v9 = vadd.f32 %v3286_v6, %v3169_v1  ;;  %v3297_v40 = vld [vmem:[#allocation2 + $0xa0] sm:$0xff] }
 0x1ac   : > { %3866 = vst.msk [vmem:[#allocation2 + $0x30] sm:$0xff] %vm545_vm6, %v3830_v62  ;;  %3360 = vst.msk [vmem:[#allocation2 + $0x58] sm:$0xff] %vm545_vm6, %v3324_v5  ;;  %v3831_v10 = vadd.f32 %v5976_v0, %v3795_v8  ;;  %v3793_v61 = vld [vmem:[#allocation2 + $0x28] sm:$0xff]  ;;  %v3300_v8 = vld [vmem:[#allocation2 + $0xb8] sm:$0xff] }
 0x1ad   : > { %3864 = vst.msk [vmem:[#allocation2 + $0x20] sm:$0xff] %vm545_vm6, %v3828_v7  ;;  %3358 = vst.msk [vmem:[#allocation2 + $0x48] sm:$0xff] %vm545_vm6, %v3322_v9  ;;  %v3829_v17 = vadd.f32 %v3793_v61, %v3664_v47 }
 0x1ae   : > { %3867 = vst.msk [vmem:[#allocation2 + $0x38] sm:$0xff] %vm545_vm6, %v3831_v10 }
 0x1af   : > { %v5979_v49 = vpop.f32.mrb[100].mxu0  ;;  %3865 = vst.msk [vmem:[#allocation2 + $0x28] sm:$0xff] %vm545_vm6, %v3829_v17  ;;  %v5945_v16 = vpop.f32.mrb[100].mxu1 }
 0x1b0   : > { %v3677_v19 = vpop.f32.mrb[101].mxu0  ;;  %v3327_v20 = vadd.f32 %v5945_v16, %v3291_v11  ;;  %v3182_v21 = vpop.f32.mrb[101].mxu1  ;;  %v3298_v16 = vld [vmem:[#allocation2 + $0xa8] sm:$0xff] }
 0x1b1   : > { %v5980_v13 = vpop.f32.mrb[102].mxu0  ;;  %v3798_v25 = vld [vmem:[#allocation2 + $0x50] sm:$0xff]  ;;  %v3325_v26 = vadd.f32 %v3289_v22, %v3182_v21  ;;  %v5946_v27 = vpop.f32.mrb[102].mxu1 }
 0x1b2   : > { %v3680_v52 = vpop.f32.mrb[103].mxu0  ;;  %3363 = vst.msk [vmem:[#allocation2 + $0x70] sm:$0xff] %vm545_vm6, %v3327_v20  ;;  %v3834_v18 = vadd.f32 %v5979_v49, %v3798_v25  ;;  %v3796_v29 = vld [vmem:[#allocation2 + $0x40] sm:$0xff]  ;;  %v3328_v30 = vadd.f32 %v5946_v27, %v3292_v28  ;;  %v3185_v32 = vpop.f32.mrb[103].mxu1  ;;  %v3303_v27 = vld [vmem:[#allocation2 + $0xd0] sm:$0xff] }
 0x1b3   : > { %3361 = vst.msk [vmem:[#allocation2 + $0x60] sm:$0xff] %vm545_vm6, %v3325_v26  ;;  %v3832_v34 = vadd.f32 %v3796_v29, %v3677_v19  ;;  %v3799_v24 = vld [vmem:[#allocation2 + $0x58] sm:$0xff]  ;;  %v3326_v35 = vadd.f32 %v3290_v33, %v3185_v32  ;;  %v3301_v29 = vld [vmem:[#allocation2 + $0xc0] sm:$0xff] }
 0x1b4   : > { %3870 = vst.msk [vmem:[#allocation2 + $0x50] sm:$0xff] %vm545_vm6, %v3834_v18  ;;  %3364 = vst.msk [vmem:[#allocation2 + $0x78] sm:$0xff] %vm545_vm6, %v3328_v30  ;;  %v3835_v55 = vadd.f32 %v5980_v13, %v3799_v24  ;;  %v3797_v38 = vld [vmem:[#allocation2 + $0x48] sm:$0xff]  ;;  %v3304_v24 = vld [vmem:[#allocation2 + $0xd8] sm:$0xff] }
 0x1b5   : > { %3868 = vst.msk [vmem:[#allocation2 + $0x40] sm:$0xff] %vm545_vm6, %v3832_v34  ;;  %3362 = vst.msk [vmem:[#allocation2 + $0x68] sm:$0xff] %vm545_vm6, %v3326_v35  ;;  %v3833_v39 = vadd.f32 %v3797_v38, %v3680_v52 }
 0x1b6   : > { %3871 = vst.msk [vmem:[#allocation2 + $0x58] sm:$0xff] %vm545_vm6, %v3835_v55 }
 0x1b7   : > { %v5983_v31 = vpop.f32.mrb[104].mxu0  ;;  %3869 = vst.msk [vmem:[#allocation2 + $0x48] sm:$0xff] %vm545_vm6, %v3833_v39  ;;  %v5949_v4 = vpop.f32.mrb[104].mxu1 }
 0x1b8   : > { %v3693_v36 = vpop.f32.mrb[105].mxu0  ;;  %v3331_v42 = vadd.f32 %v5949_v4, %v3295_v41  ;;  %v3198_v43 = vpop.f32.mrb[105].mxu1  ;;  %v3302_v4 = vld [vmem:[#allocation2 + $0xc8] sm:$0xff] }
 0x1b9   : > { %v5984_v45 = vpop.f32.mrb[106].mxu0  ;;  %v3802_v46 = vld [vmem:[#allocation2 + $0x70] sm:$0xff]  ;;  %v3329_v37 = vadd.f32 %v3293_v44, %v3198_v43  ;;  %v5950_v15 = vpop.f32.mrb[106].mxu1 }
 0x1ba   : > { %v3696_v50 = vpop.f32.mrb[107].mxu0  ;;  %3367 = vst.msk [vmem:[#allocation2 + $0x90] sm:$0xff] %vm545_vm6, %v3331_v42  ;;  %v3838_v57 = vadd.f32 %v5983_v31, %v3802_v46  ;;  %v3800_v51 = vld [vmem:[#allocation2 + $0x60] sm:$0xff]  ;;  %v3332_v53 = vadd.f32 %v5950_v15, %v3296_v48  ;;  %v3201_v54 = vpop.f32.mrb[107].mxu1  ;;  %v3307_v15 = vld [vmem:[#allocation2 + $0xf0] sm:$0xff] }
 0x1bb   : > { %3365 = vst.msk [vmem:[#allocation2 + $0x80] sm:$0xff] %vm545_vm6, %v3329_v37  ;;  %v3836_v12 = vadd.f32 %v3800_v51, %v3693_v36  ;;  %v3803_v59 = vld [vmem:[#allocation2 + $0x78] sm:$0xff]  ;;  %v3330_v58 = vadd.f32 %v3294_v56, %v3201_v54  ;;  %v3305_v51 = vld [vmem:[#allocation2 + $0xe0] sm:$0xff] }
 0x1bc   : > { %3874 = vst.msk [vmem:[#allocation2 + $0x70] sm:$0xff] %vm545_vm6, %v3838_v57  ;;  %3368 = vst.msk [vmem:[#allocation2 + $0x98] sm:$0xff] %vm545_vm6, %v3332_v53  ;;  %v3839_v60 = vadd.f32 %v5984_v45, %v3803_v59  ;;  %v3801_v63 = vld [vmem:[#allocation2 + $0x68] sm:$0xff]  ;;  %v3308_v59 = vld [vmem:[#allocation2 + $0xf8] sm:$0xff] }
 0x1bd   : > { %3872 = vst.msk [vmem:[#allocation2 + $0x60] sm:$0xff] %vm545_vm6, %v3836_v12  ;;  %3366 = vst.msk [vmem:[#allocation2 + $0x88] sm:$0xff] %vm545_vm6, %v3330_v58  ;;  %v3837_v0 = vadd.f32 %v3801_v63, %v3696_v50 }
 0x1be   : > { %3875 = vst.msk [vmem:[#allocation2 + $0x78] sm:$0xff] %vm545_vm6, %v3839_v60 }
 0x1bf   : > { %v5987_v23 = vpop.f32.mrb[108].mxu0  ;;  %3873 = vst.msk [vmem:[#allocation2 + $0x68] sm:$0xff] %vm545_vm6, %v3837_v0  ;;  %v5953_v2 = vpop.f32.mrb[108].mxu1 }
 0x1c0   : > { %v3709_v14 = vpop.f32.mrb[109].mxu0  ;;  %v3335_v47 = vadd.f32 %v5953_v2, %v3299_v3  ;;  %v3214_v62 = vpop.f32.mrb[109].mxu1  ;;  %v3306_v2 = vld [vmem:[#allocation2 + $0xe8] sm:$0xff] }
 0x1c1   : > { %v5988_v5 = vpop.f32.mrb[110].mxu0  ;;  %v3806_v1 = vld [vmem:[#allocation2 + $0x90] sm:$0xff]  ;;  %v3333_v6 = vadd.f32 %v3297_v40, %v3214_v62  ;;  %v5954_v7 = vpop.f32.mrb[110].mxu1 }
 0x1c2   : > { %v3712_v9 = vpop.f32.mrb[111].mxu0  ;;  %3371 = vst.msk [vmem:[#allocation2 + $0xb0] sm:$0xff] %vm545_vm6, %v3335_v47  ;;  %v3842_v10 = vadd.f32 %v5987_v23, %v3806_v1  ;;  %v3804_v61 = vld [vmem:[#allocation2 + $0x80] sm:$0xff]  ;;  %v3336_v17 = vadd.f32 %v5954_v7, %v3300_v8  ;;  %v3217_v49 = vpop.f32.mrb[111].mxu1  ;;  %v3311_v7 = vld [vmem:[#allocation2 + $0x110] sm:$0xff] }
 0x1c3   : > { %3369 = vst.msk [vmem:[#allocation2 + $0xa0] sm:$0xff] %vm545_vm6, %v3333_v6  ;;  %v3840_v11 = vadd.f32 %v3804_v61, %v3709_v14  ;;  %v3807_v19 = vld [vmem:[#allocation2 + $0x98] sm:$0xff]  ;;  %v3334_v20 = vadd.f32 %v3298_v16, %v3217_v49  ;;  %v3309_v61 = vld [vmem:[#allocation2 + $0x100] sm:$0xff] }
 0x1c4   : > { %3878 = vst.msk [vmem:[#allocation2 + $0x90] sm:$0xff] %vm545_vm6, %v3842_v10  ;;  %3372 = vst.msk [vmem:[#allocation2 + $0xb8] sm:$0xff] %vm545_vm6, %v3336_v17  ;;  %v3843_v21 = vadd.f32 %v5988_v5, %v3807_v19  ;;  %v3805_v22 = vld [vmem:[#allocation2 + $0x88] sm:$0xff]  ;;  %v3312_v19 = vld [vmem:[#allocation2 + $0x118] sm:$0xff] }
 0x1c5   : > { %3876 = vst.msk [vmem:[#allocation2 + $0x80] sm:$0xff] %vm545_vm6, %v3840_v11  ;;  %3370 = vst.msk [vmem:[#allocation2 + $0xa8] sm:$0xff] %vm545_vm6, %v3334_v20  ;;  %v3841_v13 = vadd.f32 %v3805_v22, %v3712_v9 }
 0x1c6   : > { %3879 = vst.msk [vmem:[#allocation2 + $0x98] sm:$0xff] %vm545_vm6, %v3843_v21 }
 0x1c7   : > { %v5991_v25 = vpop.f32.mrb[112].mxu0  ;;  %3877 = vst.msk [vmem:[#allocation2 + $0x88] sm:$0xff] %vm545_vm6, %v3841_v13  ;;  %v5957_v26 = vpop.f32.mrb[112].mxu1 }
 0x1c8   : > { %v3725_v28 = vpop.f32.mrb[113].mxu0  ;;  %v3339_v52 = vadd.f32 %v5957_v26, %v3303_v27  ;;  %v3230_v18 = vpop.f32.mrb[113].mxu1  ;;  %v3310_v26 = vld [vmem:[#allocation2 + $0x108] sm:$0xff] }
 0x1c9   : > { %v5992_v30 = vpop.f32.mrb[114].mxu0  ;;  %v3810_v32 = vld [vmem:[#allocation2 + $0xb0] sm:$0xff]  ;;  %v3337_v33 = vadd.f32 %v3301_v29, %v3230_v18  ;;  %v5958_v34 = vpop.f32.mrb[114].mxu1 }
 0x1ca   : > { %v3728_v35 = vpop.f32.mrb[115].mxu0  ;;  %3375 = vst.msk [vmem:[#allocation2 + $0xd0] sm:$0xff] %vm545_vm6, %v3339_v52  ;;  %v3846_v55 = vadd.f32 %v5991_v25, %v3810_v32  ;;  %v3808_v38 = vld [vmem:[#allocation2 + $0xa0] sm:$0xff]  ;;  %v3340_v39 = vadd.f32 %v5958_v34, %v3304_v24  ;;  %v3233_v31 = vpop.f32.mrb[115].mxu1  ;;  %v4435_v34 = vld [vmem:[#allocation2 + $0x10] sm:$0xff] }
 0x1cb   : > { %3373 = vst.msk [vmem:[#allocation2 + $0xc0] sm:$0xff] %vm545_vm6, %v3337_v33  ;;  %v3844_v41 = vadd.f32 %v3808_v38, %v3725_v28  ;;  %v3811_v36 = vld [vmem:[#allocation2 + $0xb8] sm:$0xff]  ;;  %v3338_v42 = vadd.f32 %v3302_v4, %v3233_v31  ;;  %v4433_v38 = vld [vmem:[#allocation2] sm:$0xff] }
 0x1cc   : > { %3882 = vst.msk [vmem:[#allocation2 + $0xb0] sm:$0xff] %vm545_vm6, %v3846_v55  ;;  %3376 = vst.msk [vmem:[#allocation2 + $0xd8] sm:$0xff] %vm545_vm6, %v3340_v39  ;;  %v3847_v43 = vadd.f32 %v5992_v30, %v3811_v36  ;;  %v3809_v44 = vld [vmem:[#allocation2 + $0xa8] sm:$0xff]  ;;  %v4436_v36 = vld [vmem:[#allocation2 + $0x18] sm:$0xff] }
 0x1cd   : > { %3880 = vst.msk [vmem:[#allocation2 + $0xa0] sm:$0xff] %vm545_vm6, %v3844_v41  ;;  %3374 = vst.msk [vmem:[#allocation2 + $0xc8] sm:$0xff] %vm545_vm6, %v3338_v42  ;;  %v3845_v45 = vadd.f32 %v3809_v44, %v3728_v35 }
 0x1ce   : > { %3883 = vst.msk [vmem:[#allocation2 + $0xb8] sm:$0xff] %vm545_vm6, %v3847_v43 }
 0x1cf   : > { %v5995_v46 = vpop.f32.mrb[116].mxu0  ;;  %3881 = vst.msk [vmem:[#allocation2 + $0xa8] sm:$0xff] %vm545_vm6, %v3845_v45  ;;  %v5961_v37 = vpop.f32.mrb[116].mxu1 }
 0x1d0   : > { %v3741_v48 = vpop.f32.mrb[117].mxu0  ;;  %v3343_v50 = vadd.f32 %v5961_v37, %v3307_v15  ;;  %v3246_v57 = vpop.f32.mrb[117].mxu1  ;;  %v4434_v37 = vld [vmem:[#allocation2 + $0x8] sm:$0xff] }
 0x1d1   : > { %v5996_v53 = vpop.f32.mrb[118].mxu0  ;;  %v3814_v54 = vld [vmem:[#allocation2 + $0xd0] sm:$0xff]  ;;  %v3341_v56 = vadd.f32 %v3305_v51, %v3246_v57  ;;  %v5962_v12 = vpop.f32.mrb[118].mxu1 }
 0x1d2   : > { %v3744_v58 = vpop.f32.mrb[119].mxu0  ;;  %3379 = vst.msk [vmem:[#allocation2 + $0xf0] sm:$0xff] %vm545_vm6, %v3343_v50  ;;  %v3850_v60 = vadd.f32 %v5995_v46, %v3814_v54  ;;  %v3812_v63 = vld [vmem:[#allocation2 + $0xc0] sm:$0xff]  ;;  %v3344_v0 = vadd.f32 %v5962_v12, %v3308_v59  ;;  %v3249_v23 = vpop.f32.mrb[119].mxu1  ;;  %v4439_v12 = vld [vmem:[#allocation2 + $0x30] sm:$0xff] }
 0x1d3   : > { %3377 = vst.msk [vmem:[#allocation2 + $0xe0] sm:$0xff] %vm545_vm6, %v3341_v56  ;;  %v3848_v3 = vadd.f32 %v3812_v63, %v3741_v48  ;;  %v3815_v14 = vld [vmem:[#allocation2 + $0xd8] sm:$0xff]  ;;  %v3342_v47 = vadd.f32 %v3306_v2, %v3249_v23  ;;  %v4437_v63 = vld [vmem:[#allocation2 + $0x20] sm:$0xff] }
 0x1d4   : > { %3886 = vst.msk [vmem:[#allocation2 + $0xd0] sm:$0xff] %vm545_vm6, %v3850_v60  ;;  %3380 = vst.msk [vmem:[#allocation2 + $0xf8] sm:$0xff] %vm545_vm6, %v3344_v0  ;;  %v3851_v62 = vadd.f32 %v5996_v53, %v3815_v14  ;;  %v3813_v40 = vld [vmem:[#allocation2 + $0xc8] sm:$0xff]  ;;  %v4440_v14 = vld [vmem:[#allocation2 + $0x38] sm:$0xff] }
 0x1d5   : > { %3884 = vst.msk [vmem:[#allocation2 + $0xc0] sm:$0xff] %vm545_vm6, %v3848_v3  ;;  %3378 = vst.msk [vmem:[#allocation2 + $0xe8] sm:$0xff] %vm545_vm6, %v3342_v47  ;;  %v3849_v5 = vadd.f32 %v3813_v40, %v3744_v58 }
 0x1d6   : > { %3887 = vst.msk [vmem:[#allocation2 + $0xd8] sm:$0xff] %vm545_vm6, %v3851_v62 }
 0x1d7   : > { %v5999_v1 = vpop.f32.mrb[120].mxu0  ;;  %3885 = vst.msk [vmem:[#allocation2 + $0xc8] sm:$0xff] %vm545_vm6, %v3849_v5  ;;  %v5965_v6 = vpop.f32.mrb[120].mxu1 }
 0x1d8   : > { %v3757_v8 = vpop.f32.mrb[121].mxu0  ;;  %v3347_v9 = vadd.f32 %v5965_v6, %v3311_v7  ;;  %v3262_v10 = vpop.f32.mrb[121].mxu1  ;;  %v4438_v6 = vld [vmem:[#allocation2 + $0x28] sm:$0xff] }
 0x1d9   : > { %v6000_v17 = vpop.f32.mrb[122].mxu0  ;;  %v3818_v49 = vld [vmem:[#allocation2 + $0xf0] sm:$0xff]  ;;  %v3345_v16 = vadd.f32 %v3309_v61, %v3262_v10  ;;  %v5966_v11 = vpop.f32.mrb[122].mxu1 }
 0x1da   : > { %v3760_v20 = vpop.f32.mrb[123].mxu0  ;;  %3383 = vst.msk [vmem:[#allocation2 + $0x110] sm:$0xff] %vm545_vm6, %v3347_v9  ;;  %v3854_v21 = vadd.f32 %v5999_v1, %v3818_v49  ;;  %v3816_v22 = vld [vmem:[#allocation2 + $0xe0] sm:$0xff]  ;;  %v3348_v13 = vadd.f32 %v5966_v11, %v3312_v19  ;;  %v3265_v25 = vpop.f32.mrb[123].mxu1  ;;  %v4443_v11 = vld [vmem:[#allocation2 + $0x50] sm:$0xff] }
 0x1db   : > { %3381 = vst.msk [vmem:[#allocation2 + $0x100] sm:$0xff] %vm545_vm6, %v3345_v16  ;;  %v3852_v27 = vadd.f32 %v3816_v22, %v3757_v8  ;;  %v3819_v28 = vld [vmem:[#allocation2 + $0xf8] sm:$0xff]  ;;  %v3346_v52 = vadd.f32 %v3310_v26, %v3265_v25  ;;  %v4441_v22 = vld [vmem:[#allocation2 + $0x40] sm:$0xff] }
 0x1dc   : > { %3890 = vst.msk [vmem:[#allocation2 + $0xf0] sm:$0xff] %vm545_vm6, %v3854_v21  ;;  %3384 = vst.msk [vmem:[#allocation2 + $0x118] sm:$0xff] %vm545_vm6, %v3348_v13  ;;  %v3855_v18 = vadd.f32 %v6000_v17, %v3819_v28  ;;  %v3817_v29 = vld [vmem:[#allocation2 + $0xe8] sm:$0xff]  ;;  %v4444_v28 = vld [vmem:[#allocation2 + $0x58] sm:$0xff] }
 0x1dd   : > { %3888 = vst.msk [vmem:[#allocation2 + $0xe0] sm:$0xff] %vm545_vm6, %v3852_v27  ;;  %3382 = vst.msk [vmem:[#allocation2 + $0x108] sm:$0xff] %vm545_vm6, %v3346_v52  ;;  %v3853_v30 = vadd.f32 %v3817_v29, %v3760_v20 }
 0x1de   : > { %3891 = vst.msk [vmem:[#allocation2 + $0xf8] sm:$0xff] %vm545_vm6, %v3855_v18 }
 0x1df   : > { %v6003_v32 = vpop.f32.mrb[124].mxu0  ;;  %3889 = vst.msk [vmem:[#allocation2 + $0xe8] sm:$0xff] %vm545_vm6, %v3853_v30  ;;  %v6009_v33 = vpop.f32.mrb[124].mxu1 }
 0x1e0   : > { %v3773_v24 = vpop.f32.mrb[125].mxu0  ;;  %v4471_v35 = vadd.f32 %v6009_v33, %v4435_v34  ;;  %v4290_v55 = vpop.f32.mrb[125].mxu1  ;;  %v4442_v33 = vld [vmem:[#allocation2 + $0x48] sm:$0xff] }
 0x1e1   : > { %v6004_v39 = vpop.f32.mrb[126].mxu0  ;;  %v3822_v31 = vld [vmem:[#allocation2 + $0x110] sm:$0xff]  ;;  %v4469_v4 = vadd.f32 %v4433_v38, %v4290_v55  ;;  %v6010_v41 = vpop.f32.mrb[126].mxu1 }
 0x1e2   : > { %v3776_v42 = vpop.f32.mrb[127].mxu0  ;;  %v3858_v43 = vadd.f32 %v6003_v32, %v3822_v31  ;;  %4507 = vst.msk [vmem:[#allocation2 + $0x10] sm:$0xff] %vm545_vm6, %v4471_v35  ;;  %v3820_v44 = vld [vmem:[#allocation2 + $0x100] sm:$0xff]  ;;  %v4472_v45 = vadd.f32 %v6010_v41, %v4436_v36  ;;  %v4293_v46 = vpop.f32.mrb[127].mxu1 }
 0x1e3   : > { %v3856_v15 = vadd.f32 %v3820_v44, %v3773_v24  ;;  %4505 = vst.msk [vmem:[#allocation2] sm:$0xff] %vm545_vm6, %v4469_v4  ;;  %v3823_v48 = vld [vmem:[#allocation2 + $0x118] sm:$0xff]  ;;  %v4470_v50 = vadd.f32 %v4434_v37, %v4293_v46  ;;  %v4447_v44 = vld [vmem:[#allocation2 + $0x70] sm:$0xff] }
 0x1e4   : > { %3894 = vst.msk [vmem:[#allocation2 + $0x110] sm:$0xff] %vm545_vm6, %v3858_v43  ;;  %v3859_v57 = vadd.f32 %v6004_v39, %v3823_v48  ;;  %4508 = vst.msk [vmem:[#allocation2 + $0x18] sm:$0xff] %vm545_vm6, %v4472_v45  ;;  %v3821_v51 = vld [vmem:[#allocation2 + $0x108] sm:$0xff] }
 0x1e5   : > { %3892 = vst.msk [vmem:[#allocation2 + $0x100] sm:$0xff] %vm545_vm6, %v3856_v15  ;;  %v3857_v53 = vadd.f32 %v3821_v51, %v3776_v42  ;;  %4506 = vst.msk [vmem:[#allocation2 + $0x8] sm:$0xff] %vm545_vm6, %v4470_v50  ;;  %v4445_v15 = vld [vmem:[#allocation2 + $0x60] sm:$0xff] }
 0x1e6   : > { %3895 = vst.msk [vmem:[#allocation2 + $0x118] sm:$0xff] %vm545_vm6, %v3859_v57 }
 0x1e7   : > { %v6047_v54 = vpop.f32.mrb[128].mxu0  ;;  %3893 = vst.msk [vmem:[#allocation2 + $0x108] sm:$0xff] %vm545_vm6, %v3857_v53  ;;  %v6013_v56 = vpop.f32.mrb[128].mxu1  ;;  %v4448_v53 = vld [vmem:[#allocation2 + $0x78] sm:$0xff] }
 0x1e8   : > { %v4802_v59 = vpop.f32.mrb[129].mxu0  ;;  %v4475_v58 = vadd.f32 %v6013_v56, %v4439_v12  ;;  %v4306_v60 = vpop.f32.mrb[129].mxu1 }
 0x1e9   : > { %v6048_v0 = vpop.f32.mrb[130].mxu0  ;;  %v4947_v23 = vld [vmem:[#allocation2 + $0x10] sm:$0xff]  ;;  %v4473_v2 = vadd.f32 %v4437_v63, %v4306_v60  ;;  %v6014_v3 = vpop.f32.mrb[130].mxu1  ;;  %v4446_v60 = vld [vmem:[#allocation2 + $0x68] sm:$0xff] }
 0x1ea   : > { %v4805_v47 = vpop.f32.mrb[131].mxu0  ;;  %4511 = vst.msk [vmem:[#allocation2 + $0x30] sm:$0xff] %vm545_vm6, %v4475_v58  ;;  %v4983_v62 = vadd.f32 %v6047_v54, %v4947_v23  ;;  %v4945_v40 = vld [vmem:[#allocation2] sm:$0xff]  ;;  %v4476_v5 = vadd.f32 %v6014_v3, %v4440_v14  ;;  %v4309_v1 = vpop.f32.mrb[131].mxu1 }
 0x1eb   : > { %4509 = vst.msk [vmem:[#allocation2 + $0x20] sm:$0xff] %vm545_vm6, %v4473_v2  ;;  %v4981_v7 = vadd.f32 %v4945_v40, %v4802_v59  ;;  %v4948_v8 = vld [vmem:[#allocation2 + $0x18] sm:$0xff]  ;;  %v4474_v9 = vadd.f32 %v4438_v6, %v4309_v1 }
 0x1ec   : > { %5019 = vst.msk [vmem:[#allocation2 + $0x10] sm:$0xff] %vm545_vm6, %v4983_v62  ;;  %4512 = vst.msk [vmem:[#allocation2 + $0x38] sm:$0xff] %vm545_vm6, %v4476_v5  ;;  %v4984_v10 = vadd.f32 %v6048_v0, %v4948_v8  ;;  %v4946_v61 = vld [vmem:[#allocation2 + $0x8] sm:$0xff] }
 0x1ed   : > { %5017 = vst.msk [vmem:[#allocation2] sm:$0xff] %vm545_vm6, %v4981_v7  ;;  %4510 = vst.msk [vmem:[#allocation2 + $0x28] sm:$0xff] %vm545_vm6, %v4474_v9  ;;  %v4982_v17 = vadd.f32 %v4946_v61, %v4805_v47  ;;  %v4451_v7 = vld [vmem:[#allocation2 + $0x90] sm:$0xff]  ;;  %v4449_v61 = vld [vmem:[#allocation2 + $0x80] sm:$0xff] }
 0x1ee   : > { %5020 = vst.msk [vmem:[#allocation2 + $0x18] sm:$0xff] %vm545_vm6, %v4984_v10 }
 0x1ef   : > { %v6051_v49 = vpop.f32.mrb[132].mxu0  ;;  %5018 = vst.msk [vmem:[#allocation2 + $0x8] sm:$0xff] %vm545_vm6, %v4982_v17  ;;  %v6017_v16 = vpop.f32.mrb[132].mxu1 }
 0x1f0   : > { %v4818_v19 = vpop.f32.mrb[133].mxu0  ;;  %v4479_v20 = vadd.f32 %v6017_v16, %v4443_v11  ;;  %v4322_v21 = vpop.f32.mrb[133].mxu1 }
 0x1f1   : > { %v6052_v13 = vpop.f32.mrb[134].mxu0  ;;  %v4951_v25 = vld [vmem:[#allocation2 + $0x30] sm:$0xff]  ;;  %v4477_v26 = vadd.f32 %v4441_v22, %v4322_v21  ;;  %v6018_v27 = vpop.f32.mrb[134].mxu1 }
 0x1f2   : > { %v4821_v52 = vpop.f32.mrb[135].mxu0  ;;  %4515 = vst.msk [vmem:[#allocation2 + $0x50] sm:$0xff] %vm545_vm6, %v4479_v20  ;;  %v4987_v18 = vadd.f32 %v6051_v49, %v4951_v25  ;;  %v4949_v29 = vld [vmem:[#allocation2 + $0x20] sm:$0xff]  ;;  %v4480_v30 = vadd.f32 %v6018_v27, %v4444_v28  ;;  %v4325_v32 = vpop.f32.mrb[135].mxu1 }
 0x1f3   : > { %v5055_v34 = vld [vmem:[#allocation2 + $0x10] sm:$0xff]  ;;  %4513 = vst.msk [vmem:[#allocation2 + $0x40] sm:$0xff] %vm545_vm6, %v4477_v26  ;;  %v4985_v24 = vadd.f32 %v4949_v29, %v4818_v19  ;;  %v4952_v35 = vld [vmem:[#allocation2 + $0x38] sm:$0xff]  ;;  %v4478_v55 = vadd.f32 %v4442_v33, %v4325_v32  ;;  %v4450_v26 = vld [vmem:[#allocation2 + $0x88] sm:$0xff] }
 0x1f4   : > { %5091 = vst.msk [vmem:[%s7296_s9 + $0x10] sm:$0xff] %vm545_vm6, %v5055_v34  ;;  %v5053_v38 = vld [vmem:[#allocation2] sm:$0xff]  ;;  %5023 = vst.msk [vmem:[#allocation2 + $0x30] sm:$0xff] %vm545_vm6, %v4987_v18  ;;  %v4988_v39 = vadd.f32 %v6052_v13, %v4952_v35  ;;  %v4950_v31 = vld [vmem:[#allocation2 + $0x28] sm:$0xff] }
 0x1f5   : > { %4516 = vst.msk [vmem:[#allocation2 + $0x58] sm:$0xff] %vm545_vm6, %v4480_v30  ;;  %5089 = vst.msk [vmem:[%s7296_s9] sm:$0xff] %vm545_vm6, %v5053_v38  ;;  %v5056_v4 = vld [vmem:[#allocation2 + $0x18] sm:$0xff]  ;;  %v4986_v41 = vadd.f32 %v4950_v31, %v4821_v52  ;;  %v4455_v38 = vld [vmem:[#allocation2 + $0xb0] sm:$0xff] }
 0x1f6   : > { %5021 = vst.msk [vmem:[#allocation2 + $0x20] sm:$0xff] %vm545_vm6, %v4985_v24  ;;  %4514 = vst.msk [vmem:[#allocation2 + $0x48] sm:$0xff] %vm545_vm6, %v4478_v55  ;;  %v5054_v36 = vld [vmem:[#allocation2 + $0x8] sm:$0xff]  ;;  %v4452_v19 = vld [vmem:[#allocation2 + $0x98] sm:$0xff] }
 0x1f7   : > { %5092 = vst.msk [vmem:[%s7296_s9 + $0x18] sm:$0xff] %vm545_vm6, %v5056_v4  ;;  %5024 = vst.msk [vmem:[#allocation2 + $0x38] sm:$0xff] %vm545_vm6, %v4988_v39  ;;  %v6055_v42 = vpop.f32.mrb[136].mxu0  ;;  %v6021_v43 = vpop.f32.mrb[136].mxu1 }
 0x1f8   : > { %5090 = vst.msk [vmem:[%s7296_s9 + $0x8] sm:$0xff] %vm545_vm6, %v5054_v36  ;;  %5022 = vst.msk [vmem:[#allocation2 + $0x28] sm:$0xff] %vm545_vm6, %v4986_v41  ;;  %v4834_v45 = vpop.f32.mrb[137].mxu0  ;;  %v4483_v46 = vadd.f32 %v6021_v43, %v4447_v44  ;;  %v4338_v37 = vpop.f32.mrb[137].mxu1  ;;  %v4453_v41 = vld [vmem:[#allocation2 + $0xa0] sm:$0xff] }
 0x1f9   : > { %v6056_v48 = vpop.f32.mrb[138].mxu0  ;;  %v4955_v50 = vld [vmem:[#allocation2 + $0x50] sm:$0xff]  ;;  %v4481_v57 = vadd.f32 %v4445_v15, %v4338_v37  ;;  %v6022_v51 = vpop.f32.mrb[138].mxu1 }
 0x1fa   : > { %v4837_v54 = vpop.f32.mrb[139].mxu0  ;;  %4519 = vst.msk [vmem:[#allocation2 + $0x70] sm:$0xff] %vm545_vm6, %v4483_v46  ;;  %v4991_v56 = vadd.f32 %v6055_v42, %v4955_v50  ;;  %v4953_v12 = vld [vmem:[#allocation2 + $0x40] sm:$0xff]  ;;  %v4484_v59 = vadd.f32 %v6022_v51, %v4448_v53  ;;  %v4341_v58 = vpop.f32.mrb[139].mxu1 }
 0x1fb   : > { %v5059_v63 = vld [vmem:[#allocation2 + $0x30] sm:$0xff]  ;;  %4517 = vst.msk [vmem:[#allocation2 + $0x60] sm:$0xff] %vm545_vm6, %v4481_v57  ;;  %v4989_v0 = vadd.f32 %v4953_v12, %v4834_v45  ;;  %v4482_v2 = vadd.f32 %v4446_v60, %v4341_v58  ;;  %v4456_v45 = vld [vmem:[#allocation2 + $0xb8] sm:$0xff]  ;;  %v4454_v57 = vld [vmem:[#allocation2 + $0xa8] sm:$0xff] }
 0x1fc   : > { %v4956_v23 = vld [vmem:[#allocation2 + $0x58] sm:$0xff]  ;;  %5095 = vst.msk [vmem:[%s7296_s9 + $0x30] sm:$0xff] %vm545_vm6, %v5059_v63  ;;  %5027 = vst.msk [vmem:[#allocation2 + $0x50] sm:$0xff] %vm545_vm6, %v4991_v56 }
 0x1fd   : > { %v5057_v3 = vld [vmem:[#allocation2 + $0x20] sm:$0xff]  ;;  %4520 = vst.msk [vmem:[#allocation2 + $0x78] sm:$0xff] %vm545_vm6, %v4484_v59  ;;  %v4992_v14 = vadd.f32 %v6056_v48, %v4956_v23  ;;  %v4954_v47 = vld [vmem:[#allocation2 + $0x48] sm:$0xff]  ;;  %5025 = vst.msk [vmem:[#allocation2 + $0x40] sm:$0xff] %vm545_vm6, %v4989_v0 }
 0x1fe   : > { %5093 = vst.msk [vmem:[%s7296_s9 + $0x20] sm:$0xff] %vm545_vm6, %v5057_v3  ;;  %v5060_v62 = vld [vmem:[#allocation2 + $0x38] sm:$0xff]  ;;  %4518 = vst.msk [vmem:[#allocation2 + $0x68] sm:$0xff] %vm545_vm6, %v4482_v2  ;;  %v4990_v40 = vadd.f32 %v4954_v47, %v4837_v54  ;;  %v4459_v3 = vld [vmem:[#allocation2 + $0xd0] sm:$0xff] }
 0x1ff   : > { %5096 = vst.msk [vmem:[%s7296_s9 + $0x38] sm:$0xff] %vm545_vm6, %v5060_v62  ;;  %v5058_v5 = vld [vmem:[#allocation2 + $0x28] sm:$0xff]  ;;  %5028 = vst.msk [vmem:[#allocation2 + $0x58] sm:$0xff] %vm545_vm6, %v4992_v14  ;;  %v6059_v1 = vpop.f32.mrb[140].mxu0  ;;  %v6025_v6 = vpop.f32.mrb[140].mxu1 }
 0x200   : > { %5094 = vst.msk [vmem:[%s7296_s9 + $0x28] sm:$0xff] %vm545_vm6, %v5058_v5  ;;  %5026 = vst.msk [vmem:[#allocation2 + $0x48] sm:$0xff] %vm545_vm6, %v4990_v40  ;;  %v4850_v8 = vpop.f32.mrb[141].mxu0  ;;  %v4487_v9 = vadd.f32 %v6025_v6, %v4451_v7  ;;  %v4354_v10 = vpop.f32.mrb[141].mxu1  ;;  %v4457_v40 = vld [vmem:[#allocation2 + $0xc0] sm:$0xff] }
 0x201   : > { %v6060_v17 = vpop.f32.mrb[142].mxu0  ;;  %v4959_v49 = vld [vmem:[#allocation2 + $0x70] sm:$0xff]  ;;  %v4485_v16 = vadd.f32 %v4449_v61, %v4354_v10  ;;  %v6026_v11 = vpop.f32.mrb[142].mxu1 }
 0x202   : > { %v4853_v20 = vpop.f32.mrb[143].mxu0  ;;  %4523 = vst.msk [vmem:[#allocation2 + $0x90] sm:$0xff] %vm545_vm6, %v4487_v9  ;;  %v4995_v21 = vadd.f32 %v6059_v1, %v4959_v49  ;;  %v4957_v22 = vld [vmem:[#allocation2 + $0x60] sm:$0xff]  ;;  %v4488_v13 = vadd.f32 %v6026_v11, %v4452_v19  ;;  %v4357_v25 = vpop.f32.mrb[143].mxu1 }
 0x203   : > { %v5063_v27 = vld [vmem:[#allocation2 + $0x50] sm:$0xff]  ;;  %4521 = vst.msk [vmem:[#allocation2 + $0x80] sm:$0xff] %vm545_vm6, %v4485_v16  ;;  %v4993_v28 = vadd.f32 %v4957_v22, %v4850_v8  ;;  %v4486_v18 = vadd.f32 %v4450_v26, %v4357_v25  ;;  %v4460_v8 = vld [vmem:[#allocation2 + $0xd8] sm:$0xff]  ;;  %v4458_v16 = vld [vmem:[#allocation2 + $0xc8] sm:$0xff] }
 0x204   : > { %v4960_v52 = vld [vmem:[#allocation2 + $0x78] sm:$0xff]  ;;  %5099 = vst.msk [vmem:[%s7296_s9 + $0x50] sm:$0xff] %vm545_vm6, %v5063_v27  ;;  %v5061_v29 = vld [vmem:[#allocation2 + $0x40] sm:$0xff]  ;;  %5031 = vst.msk [vmem:[#allocation2 + $0x70] sm:$0xff] %vm545_vm6, %v4995_v21 }
 0x205   : > { %4524 = vst.msk [vmem:[#allocation2 + $0x98] sm:$0xff] %vm545_vm6, %v4488_v13  ;;  %v4996_v30 = vadd.f32 %v6060_v17, %v4960_v52  ;;  %v4958_v32 = vld [vmem:[#allocation2 + $0x68] sm:$0xff]  ;;  %5097 = vst.msk [vmem:[%s7296_s9 + $0x40] sm:$0xff] %vm545_vm6, %v5061_v29  ;;  %v4463_v29 = vld [vmem:[#allocation2 + $0xf0] sm:$0xff] }
 0x206   : > { %v5064_v33 = vld [vmem:[#allocation2 + $0x58] sm:$0xff]  ;;  %5029 = vst.msk [vmem:[#allocation2 + $0x60] sm:$0xff] %vm545_vm6, %v4993_v28  ;;  %4522 = vst.msk [vmem:[#allocation2 + $0x88] sm:$0xff] %vm545_vm6, %v4486_v18  ;;  %v4994_v34 = vadd.f32 %v4958_v32, %v4853_v20 }
 0x207   : > { %5100 = vst.msk [vmem:[%s7296_s9 + $0x58] sm:$0xff] %vm545_vm6, %v5064_v33  ;;  %v5062_v24 = vld [vmem:[#allocation2 + $0x48] sm:$0xff]  ;;  %5032 = vst.msk [vmem:[#allocation2 + $0x78] sm:$0xff] %vm545_vm6, %v4996_v30  ;;  %v6063_v35 = vpop.f32.mrb[144].mxu0  ;;  %v6029_v55 = vpop.f32.mrb[144].mxu1 }
 0x208   : > { %5098 = vst.msk [vmem:[%s7296_s9 + $0x48] sm:$0xff] %vm545_vm6, %v5062_v24  ;;  %5030 = vst.msk [vmem:[#allocation2 + $0x68] sm:$0xff] %vm545_vm6, %v4994_v34  ;;  %v4866_v39 = vpop.f32.mrb[145].mxu0  ;;  %v4491_v31 = vadd.f32 %v6029_v55, %v4455_v38  ;;  %v4370_v4 = vpop.f32.mrb[145].mxu1  ;;  %v4461_v34 = vld [vmem:[#allocation2 + $0xe0] sm:$0xff] }
 0x209   : > { %v6064_v36 = vpop.f32.mrb[146].mxu0  ;;  %v4963_v42 = vld [vmem:[#allocation2 + $0x90] sm:$0xff]  ;;  %v4489_v43 = vadd.f32 %v4453_v41, %v4370_v4  ;;  %v6030_v44 = vpop.f32.mrb[146].mxu1 }
 0x20a   : > { %v4869_v46 = vpop.f32.mrb[147].mxu0  ;;  %4527 = vst.msk [vmem:[#allocation2 + $0xb0] sm:$0xff] %vm545_vm6, %v4491_v31  ;;  %v4999_v37 = vadd.f32 %v6063_v35, %v4963_v42  ;;  %v4961_v15 = vld [vmem:[#allocation2 + $0x80] sm:$0xff]  ;;  %v4492_v48 = vadd.f32 %v6030_v44, %v4456_v45  ;;  %v4373_v50 = vpop.f32.mrb[147].mxu1 }
 0x20b   : > { %v5067_v51 = vld [vmem:[#allocation2 + $0x70] sm:$0xff]  ;;  %4525 = vst.msk [vmem:[#allocation2 + $0xa0] sm:$0xff] %vm545_vm6, %v4489_v43  ;;  %v4997_v53 = vadd.f32 %v4961_v15, %v4866_v39  ;;  %v4490_v56 = vadd.f32 %v4454_v57, %v4373_v50  ;;  %v4464_v39 = vld [vmem:[#allocation2 + $0xf8] sm:$0xff]  ;;  %v4462_v43 = vld [vmem:[#allocation2 + $0xe8] sm:$0xff] }
 0x20c   : > { %v4964_v54 = vld [vmem:[#allocation2 + $0x98] sm:$0xff]  ;;  %5103 = vst.msk [vmem:[%s7296_s9 + $0x70] sm:$0xff] %vm545_vm6, %v5067_v51  ;;  %5035 = vst.msk [vmem:[#allocation2 + $0x90] sm:$0xff] %vm545_vm6, %v4999_v37 }
 0x20d   : > { %v5065_v12 = vld [vmem:[#allocation2 + $0x60] sm:$0xff]  ;;  %4528 = vst.msk [vmem:[#allocation2 + $0xb8] sm:$0xff] %vm545_vm6, %v4492_v48  ;;  %v5000_v59 = vadd.f32 %v6064_v36, %v4964_v54  ;;  %v4962_v58 = vld [vmem:[#allocation2 + $0x88] sm:$0xff]  ;;  %5033 = vst.msk [vmem:[#allocation2 + $0x80] sm:$0xff] %vm545_vm6, %v4997_v53 }
 0x20e   : > { %5101 = vst.msk [vmem:[%s7296_s9 + $0x60] sm:$0xff] %vm545_vm6, %v5065_v12  ;;  %v5068_v60 = vld [vmem:[#allocation2 + $0x78] sm:$0xff]  ;;  %4526 = vst.msk [vmem:[#allocation2 + $0xa8] sm:$0xff] %vm545_vm6, %v4490_v56  ;;  %v4998_v63 = vadd.f32 %v4962_v58, %v4869_v46  ;;  %v4467_v12 = vld [vmem:[#allocation2 + $0x110] sm:$0xff] }
 0x20f   : > { %5104 = vst.msk [vmem:[%s7296_s9 + $0x78] sm:$0xff] %vm545_vm6, %v5068_v60  ;;  %v5066_v0 = vld [vmem:[#allocation2 + $0x68] sm:$0xff]  ;;  %5036 = vst.msk [vmem:[#allocation2 + $0x98] sm:$0xff] %vm545_vm6, %v5000_v59  ;;  %v6067_v23 = vpop.f32.mrb[148].mxu0  ;;  %v6033_v2 = vpop.f32.mrb[148].mxu1 }
 0x210   : > { %5102 = vst.msk [vmem:[%s7296_s9 + $0x68] sm:$0xff] %vm545_vm6, %v5066_v0  ;;  %5034 = vst.msk [vmem:[#allocation2 + $0x88] sm:$0xff] %vm545_vm6, %v4998_v63  ;;  %v4882_v14 = vpop.f32.mrb[149].mxu0  ;;  %v4495_v47 = vadd.f32 %v6033_v2, %v4459_v3  ;;  %v4386_v62 = vpop.f32.mrb[149].mxu1  ;;  %v4465_v63 = vld [vmem:[#allocation2 + $0x100] sm:$0xff] }
 0x211   : > { %v6068_v5 = vpop.f32.mrb[150].mxu0  ;;  %v4967_v1 = vld [vmem:[#allocation2 + $0xb0] sm:$0xff]  ;;  %v4493_v6 = vadd.f32 %v4457_v40, %v4386_v62  ;;  %v6034_v7 = vpop.f32.mrb[150].mxu1 }
 0x212   : > { %v4885_v9 = vpop.f32.mrb[151].mxu0  ;;  %4531 = vst.msk [vmem:[#allocation2 + $0xd0] sm:$0xff] %vm545_vm6, %v4495_v47  ;;  %v5003_v10 = vadd.f32 %v6067_v23, %v4967_v1  ;;  %v4965_v61 = vld [vmem:[#allocation2 + $0xa0] sm:$0xff]  ;;  %v4496_v17 = vadd.f32 %v6034_v7, %v4460_v8  ;;  %v4389_v49 = vpop.f32.mrb[151].mxu1 }
 0x213   : > { %v5071_v11 = vld [vmem:[#allocation2 + $0x90] sm:$0xff]  ;;  %4529 = vst.msk [vmem:[#allocation2 + $0xc0] sm:$0xff] %vm545_vm6, %v4493_v6  ;;  %v5001_v19 = vadd.f32 %v4965_v61, %v4882_v14  ;;  %v4494_v21 = vadd.f32 %v4458_v16, %v4389_v49  ;;  %v4468_v14 = vld [vmem:[#allocation2 + $0x118] sm:$0xff]  ;;  %v4466_v6 = vld [vmem:[#allocation2 + $0x108] sm:$0xff] }
 0x214   : > { %v4968_v20 = vld [vmem:[#allocation2 + $0xb8] sm:$0xff]  ;;  %5107 = vst.msk [vmem:[%s7296_s9 + $0x90] sm:$0xff] %vm545_vm6, %v5071_v11  ;;  %v5069_v22 = vld [vmem:[#allocation2 + $0x80] sm:$0xff]  ;;  %5039 = vst.msk [vmem:[#allocation2 + $0xb0] sm:$0xff] %vm545_vm6, %v5003_v10 }
 0x215   : > { %4532 = vst.msk [vmem:[#allocation2 + $0xd8] sm:$0xff] %vm545_vm6, %v4496_v17  ;;  %v5004_v13 = vadd.f32 %v6068_v5, %v4968_v20  ;;  %v4966_v25 = vld [vmem:[#allocation2 + $0xa8] sm:$0xff]  ;;  %5105 = vst.msk [vmem:[%s7296_s9 + $0x80] sm:$0xff] %vm545_vm6, %v5069_v22 }
 0x216   : > { %v5072_v26 = vld [vmem:[#allocation2 + $0x98] sm:$0xff]  ;;  %5037 = vst.msk [vmem:[#allocation2 + $0xa0] sm:$0xff] %vm545_vm6, %v5001_v19  ;;  %4530 = vst.msk [vmem:[#allocation2 + $0xc8] sm:$0xff] %vm545_vm6, %v4494_v21  ;;  %v5002_v27 = vadd.f32 %v4966_v25, %v4885_v9 }
 0x217   : > { %5108 = vst.msk [vmem:[%s7296_s9 + $0x98] sm:$0xff] %vm545_vm6, %v5072_v26  ;;  %v5070_v28 = vld [vmem:[#allocation2 + $0x88] sm:$0xff]  ;;  %5040 = vst.msk [vmem:[#allocation2 + $0xb8] sm:$0xff] %vm545_vm6, %v5004_v13  ;;  %v6071_v52 = vpop.f32.mrb[152].mxu0  ;;  %v6037_v18 = vpop.f32.mrb[152].mxu1 }
 0x218   : > { %5106 = vst.msk [vmem:[%s7296_s9 + $0x88] sm:$0xff] %vm545_vm6, %v5070_v28  ;;  %5038 = vst.msk [vmem:[#allocation2 + $0xa8] sm:$0xff] %vm545_vm6, %v5002_v27  ;;  %v4898_v30 = vpop.f32.mrb[153].mxu0  ;;  %v4499_v32 = vadd.f32 %v6037_v18, %v4463_v29  ;;  %v4402_v33 = vpop.f32.mrb[153].mxu1 }
 0x219   : > { %v6072_v24 = vpop.f32.mrb[154].mxu0  ;;  %v4971_v35 = vld [vmem:[#allocation2 + $0xd0] sm:$0xff]  ;;  %v4497_v55 = vadd.f32 %v4461_v34, %v4402_v33  ;;  %v6038_v38 = vpop.f32.mrb[154].mxu1 }
 0x21a   : > { %v4901_v31 = vpop.f32.mrb[155].mxu0  ;;  %4535 = vst.msk [vmem:[#allocation2 + $0xf0] sm:$0xff] %vm545_vm6, %v4499_v32  ;;  %v5007_v4 = vadd.f32 %v6071_v52, %v4971_v35  ;;  %v4969_v41 = vld [vmem:[#allocation2 + $0xc0] sm:$0xff]  ;;  %v4500_v36 = vadd.f32 %v6038_v38, %v4464_v39  ;;  %v4405_v42 = vpop.f32.mrb[155].mxu1 }
 0x21b   : > { %v5075_v44 = vld [vmem:[#allocation2 + $0xb0] sm:$0xff]  ;;  %4533 = vst.msk [vmem:[#allocation2 + $0xe0] sm:$0xff] %vm545_vm6, %v4497_v55  ;;  %v5005_v45 = vadd.f32 %v4969_v41, %v4898_v30  ;;  %v4498_v37 = vadd.f32 %v4462_v43, %v4405_v42 }
 0x21c   : > { %v4972_v46 = vld [vmem:[#allocation2 + $0xd8] sm:$0xff]  ;;  %5111 = vst.msk [vmem:[%s7296_s9 + $0xb0] sm:$0xff] %vm545_vm6, %v5075_v44  ;;  %5043 = vst.msk [vmem:[#allocation2 + $0xd0] sm:$0xff] %vm545_vm6, %v5007_v4 }
 0x21d   : > { %v5073_v15 = vld [vmem:[#allocation2 + $0xa0] sm:$0xff]  ;;  %4536 = vst.msk [vmem:[#allocation2 + $0xf8] sm:$0xff] %vm545_vm6, %v4500_v36  ;;  %v5008_v48 = vadd.f32 %v6072_v24, %v4972_v46  ;;  %v4970_v50 = vld [vmem:[#allocation2 + $0xc8] sm:$0xff]  ;;  %5041 = vst.msk [vmem:[#allocation2 + $0xc0] sm:$0xff] %vm545_vm6, %v5005_v45 }
 0x21e   : > { %5109 = vst.msk [vmem:[%s7296_s9 + $0xa0] sm:$0xff] %vm545_vm6, %v5073_v15  ;;  %v5076_v57 = vld [vmem:[#allocation2 + $0xb8] sm:$0xff]  ;;  %4534 = vst.msk [vmem:[#allocation2 + $0xe8] sm:$0xff] %vm545_vm6, %v4498_v37  ;;  %v5006_v51 = vadd.f32 %v4970_v50, %v4901_v31 }
 0x21f   : > { %5112 = vst.msk [vmem:[%s7296_s9 + $0xb8] sm:$0xff] %vm545_vm6, %v5076_v57  ;;  %v5074_v53 = vld [vmem:[#allocation2 + $0xa8] sm:$0xff]  ;;  %5044 = vst.msk [vmem:[#allocation2 + $0xd8] sm:$0xff] %vm545_vm6, %v5008_v48  ;;  %v6075_v54 = vpop.f32.mrb[156].mxu0  ;;  %v6041_v56 = vpop.f32.mrb[156].mxu1 }
 0x220   : > { %5110 = vst.msk [vmem:[%s7296_s9 + $0xa8] sm:$0xff] %vm545_vm6, %v5074_v53  ;;  %5042 = vst.msk [vmem:[#allocation2 + $0xc8] sm:$0xff] %vm545_vm6, %v5006_v51  ;;  %v4914_v59 = vpop.f32.mrb[157].mxu0  ;;  %v4503_v58 = vadd.f32 %v6041_v56, %v4467_v12  ;;  %v4418_v60 = vpop.f32.mrb[157].mxu1 }
 0x221   : > { %v6076_v0 = vpop.f32.mrb[158].mxu0  ;;  %v4975_v23 = vld [vmem:[#allocation2 + $0xf0] sm:$0xff]  ;;  %v4501_v2 = vadd.f32 %v4465_v63, %v4418_v60  ;;  %v6042_v3 = vpop.f32.mrb[158].mxu1 }
 0x222   : > { %v4917_v47 = vpop.f32.mrb[159].mxu0  ;;  %4539 = vst.msk [vmem:[#allocation2 + $0x110] sm:$0xff] %vm545_vm6, %v4503_v58  ;;  %v5011_v62 = vadd.f32 %v6075_v54, %v4975_v23  ;;  %v4973_v40 = vld [vmem:[#allocation2 + $0xe0] sm:$0xff]  ;;  %v4504_v5 = vadd.f32 %v6042_v3, %v4468_v14  ;;  %v4421_v1 = vpop.f32.mrb[159].mxu1 }
 0x223   : > { %v5079_v7 = vld [vmem:[#allocation2 + $0xd0] sm:$0xff]  ;;  %4537 = vst.msk [vmem:[#allocation2 + $0x100] sm:$0xff] %vm545_vm6, %v4501_v2  ;;  %v5009_v8 = vadd.f32 %v4973_v40, %v4914_v59  ;;  %v4502_v10 = vadd.f32 %v4466_v6, %v4421_v1 }
 0x224   : > { %v4976_v9 = vld [vmem:[#allocation2 + $0xf8] sm:$0xff]  ;;  %5115 = vst.msk [vmem:[%s7296_s9 + $0xd0] sm:$0xff] %vm545_vm6, %v5079_v7  ;;  %v5077_v61 = vld [vmem:[#allocation2 + $0xc0] sm:$0xff]  ;;  %5047 = vst.msk [vmem:[#allocation2 + $0xf0] sm:$0xff] %vm545_vm6, %v5011_v62 }
 0x225   : > { %4540 = vst.msk [vmem:[#allocation2 + $0x118] sm:$0xff] %vm545_vm6, %v4504_v5  ;;  %v5012_v17 = vadd.f32 %v6076_v0, %v4976_v9  ;;  %v4974_v49 = vld [vmem:[#allocation2 + $0xe8] sm:$0xff]  ;;  %5113 = vst.msk [vmem:[%s7296_s9 + $0xc0] sm:$0xff] %vm545_vm6, %v5077_v61 }
 0x226   : > { %v5080_v16 = vld [vmem:[#allocation2 + $0xd8] sm:$0xff]  ;;  %5045 = vst.msk [vmem:[#allocation2 + $0xe0] sm:$0xff] %vm545_vm6, %v5009_v8  ;;  %4538 = vst.msk [vmem:[#allocation2 + $0x108] sm:$0xff] %vm545_vm6, %v4502_v10  ;;  %v5010_v11 = vadd.f32 %v4974_v49, %v4917_v47 }
 0x227   : > { %5116 = vst.msk [vmem:[%s7296_s9 + $0xd8] sm:$0xff] %vm545_vm6, %v5080_v16  ;;  %v5078_v19 = vld [vmem:[#allocation2 + $0xc8] sm:$0xff]  ;;  %5048 = vst.msk [vmem:[#allocation2 + $0xf8] sm:$0xff] %vm545_vm6, %v5012_v17  ;;  %v6079_v20 = vpop.f32.mrb[160].mxu0 }
 0x228   : > { %5114 = vst.msk [vmem:[%s7296_s9 + $0xc8] sm:$0xff] %vm545_vm6, %v5078_v19  ;;  %5046 = vst.msk [vmem:[#allocation2 + $0xe8] sm:$0xff] %vm545_vm6, %v5010_v11  ;;  %v4930_v21 = vpop.f32.mrb[161].mxu0 }
 0x229   : > { %v6080_v22 = vpop.f32.mrb[162].mxu0  ;;  %v4979_v13 = vld [vmem:[#allocation2 + $0x110] sm:$0xff] }
 0x22a   : > { %v4933_v25 = vpop.f32.mrb[163].mxu0  ;;  %v5015_v26 = vadd.f32 %v6079_v20, %v4979_v13  ;;  %v4977_v27 = vld [vmem:[#allocation2 + $0x100] sm:$0xff] }
 0x22b   : > { %v5083_v28 = vld [vmem:[#allocation2 + $0xf0] sm:$0xff]  ;;  %v5013_v52 = vadd.f32 %v4977_v27, %v4930_v21 }
 0x22c   : > { %v4980_v18 = vld [vmem:[#allocation2 + $0x118] sm:$0xff]  ;;  %5119 = vst.msk [vmem:[%s7296_s9 + $0xf0] sm:$0xff] %vm545_vm6, %v5083_v28  ;;  %5051 = vst.msk [vmem:[#allocation2 + $0x110] sm:$0xff] %vm545_vm6, %v5015_v26 }
 0x22d   : > { %v5081_v29 = vld [vmem:[#allocation2 + $0xe0] sm:$0xff]  ;;  %v5016_v30 = vadd.f32 %v6080_v22, %v4980_v18  ;;  %v4978_v32 = vld [vmem:[#allocation2 + $0x108] sm:$0xff]  ;;  %5049 = vst.msk [vmem:[#allocation2 + $0x100] sm:$0xff] %vm545_vm6, %v5013_v52 }
 0x22e   : > { %5117 = vst.msk [vmem:[%s7296_s9 + $0xe0] sm:$0xff] %vm545_vm6, %v5081_v29  ;;  %v5084_v33 = vld [vmem:[#allocation2 + $0xf8] sm:$0xff]  ;;  %v5014_v34 = vadd.f32 %v4978_v32, %v4933_v25 }
 0x22f   : > { %5120 = vst.msk [vmem:[%s7296_s9 + $0xf8] sm:$0xff] %vm545_vm6, %v5084_v33  ;;  %v5082_v24 = vld [vmem:[#allocation2 + $0xe8] sm:$0xff]  ;;  %5052 = vst.msk [vmem:[#allocation2 + $0x118] sm:$0xff] %vm545_vm6, %v5016_v30 }
 0x230   : > { %5118 = vst.msk [vmem:[%s7296_s9 + $0xe8] sm:$0xff] %vm545_vm6, %v5082_v24  ;;  %5050 = vst.msk [vmem:[#allocation2 + $0x108] sm:$0xff] %vm545_vm6, %v5014_v34 }
 0x233   : > { %v5087_v35 = vld [vmem:[#allocation2 + $0x110] sm:$0xff] }
 0x234   : > { %5123 = vst.msk [vmem:[%s7296_s9 + $0x110] sm:$0xff] %vm545_vm6, %v5087_v35  ;;  %v5085_v55 = vld [vmem:[#allocation2 + $0x100] sm:$0xff] }
 0x235   : > { %5121 = vst.msk [vmem:[%s7296_s9 + $0x100] sm:$0xff] %vm545_vm6, %v5085_v55 }
 0x236   : > { %v5088_v38 = vld [vmem:[#allocation2 + $0x118] sm:$0xff] }
 0x237   : > { %5124 = vst.msk [vmem:[%s7296_s9 + $0x118] sm:$0xff] %vm545_vm6, %v5088_v38  ;;  %v5086_v39 = vld [vmem:[#allocation2 + $0x108] sm:$0xff] }
 0x238   : > { %5122 = vst.msk [vmem:[%s7296_s9 + $0x108] sm:$0xff] %vm545_vm6, %v5086_v39 }
 0x239 PF: > { %s12_s11 = sadd.s32 1, %s6311_s11   ;;  %s7442_s9 = smov %s6307_s10 }
 0x23a   : > { %p9_p5 = scmp.ge.s32.totalorder %s12_s11, 4   ;;  %s7443_s10 = smov %s7445_s12 }
 0x23c   :  { %11 = sbr.rel (!%p9_p5) target bundleno = 2 (0x2), region = 69 }

</bundles_post_ra>
